<compile_context>
chip_gen: v6e
topology: v6e:2x2x1
jax: 0.10.0
libtpu: 0.0.40
codegen_flags: <defaults>
</compile_context>

<pallas_src>
import functools

import numpy as np

import jax
import jax.numpy as jnp
from jax.experimental import pallas as pl
from jax.experimental.pallas import tpu as pltpu

EPS = 1e-5


def _round_up(v, m):
    return (v + m - 1) // m * m


def _build_tap_masks(N, H, W):
    """(9, N*H*W) float32 {0,1} validity mask per 3x3 tap (zero padding).

    The per-image mask is tiled N times along the fused lane axis.  A lane
    whose rolled source falls outside its own image (image seams or the end
    wraparound) is exactly a lane whose tap is out of bounds, so the mask
    zeroes it — which makes a single roll over the fused N*HW axis correct.
    """
    r = np.arange(H * W) // W
    c = np.arange(H * W) % W
    masks = []
    for dy in range(3):
        for dx in range(3):
            rr, cc = r + dy - 1, c + dx - 1
            ok = (rr >= 0) & (rr < H) & (cc >= 0) & (cc < W)
            masks.append(ok.astype(np.float32))
    m = np.stack(masks, axis=0)                 # (9, HW)
    return jnp.asarray(np.tile(m, (1, N)))      # (9, N*HW)


def _full_spec(shape):
    """Whole-array block (trivially satisfies the (8,128) block constraints)."""
    n = len(shape)
    return pl.BlockSpec(tuple(shape), lambda i: (0,) * n)


def _dense_block_kernel(*refs, N, H, W, in_ch, growth, c_total, cins, cps):
    """Entire DenseBlock fused in one kernel invocation.

    refs layout:
      refs[0]            x_ref      (N, in_ch, HW)       f32
      refs[1]            mask_ref   (9, N*HW)            f32 tap-validity masks
      refs[2+3l+0]       gamma_ref  (cps[l], 1)          f32 (zero-padded past cins[l])
      refs[2+3l+1]       beta_ref   (cps[l], 1)          f32 (zero-padded)
      refs[2+3l+2]       w_ref      (9, growth, cps[l])  bf16 (zero-padded)
      refs[2+3L]         out_ref    (N, c_total, HW)     f32 exact-shape output
      refs[3+3L]         slab_ref   (c_slab, N*HW)       f32 resident feature slab
    """
    HW = H * W
    NHW = N * HW
    L = len(cins)
    x_ref, mask_ref = refs[0], refs[1]
    out_ref = refs[2 + 3 * L]
    slab_ref = refs[3 + 3 * L]
    c_slab = slab_ref.shape[0]

    # Targeted zero-fill: only rows that can be read (through a layer's padded
    # [:cp] view) before being written need zeros; gamma/beta/weights for
    # those rows are zero-padded so they contribute nothing once real data
    # lands there later.
    if c_slab > in_ch:
        slab_ref[in_ch:, :] = jnp.zeros((c_slab - in_ch, NHW), jnp.float32)

    # Input channels: lane offsets n*HW are multiples of 128 -> aligned,
    # lane-dense stores.
    # TODO(synk): at production sizes pass x with memory_space=pl.ANY and DMA
    # its rows straight into the slab so the input isn't held twice in VMEM.
    for n in range(N):
        slab_ref[:in_ch, n * HW:(n + 1) * HW] = x_ref[n]

    inv_cnt = 1.0 / float(NHW)
    taps = [(dy, dx) for dy in range(3) for dx in range(3)]

    for l in range(L):
        cin, cp = cins[l], cps[l]
        g_ref = refs[2 + 3 * l]
        b_ref = refs[3 + 3 * l]
        w_ref = refs[4 + 3 * l]

        # ---- BatchNorm training-mode stats: one pass over the VMEM slab ----
        xl = slab_ref[:cp, :]                                # (cp, NHW) f32
        s1 = jnp.sum(xl, axis=1, keepdims=True)
        s2 = jnp.sum(xl * xl, axis=1, keepdims=True)
        mean = s1 * inv_cnt
        var = jnp.maximum(s2 * inv_cnt - mean * mean, 0.0)   # biased variance
        scale = g_ref[...] * jax.lax.rsqrt(var + EPS)        # (cp, 1)
        shift = b_ref[...] - mean * scale                    # (cp, 1)

        # ---- BN + ReLU in f32, then 9 rolled+masked taps -> 9 MXU matmuls --
        a = jnp.maximum(xl * scale + shift, 0.0)             # (cp, NHW) f32

        acc = jnp.zeros((growth, NHW), jnp.float32)
        for k, (dy, dx) in enumerate(taps):
            off = (dy - 1) * W + (dx - 1)
            shifted = a if off == 0 else pltpu.roll(a, (-off) % NHW, axis=1)
            if dy == 1 and dx == 1:
                masked = shifted              # center tap: mask is all ones
            else:
                # 8 broadcasts per layer (was 9*N per layer before).
                masked = shifted * mask_ref[k:k + 1, :]
            # bf16 operands at the MXU boundary only; f32 accumulation.
            acc = acc + jnp.dot(w_ref[k], masked.astype(jnp.bfloat16),
                                preferred_element_type=jnp.float32)
        # Append the new features to the resident slab (lane-dense store).
        slab_ref[cin:cin + growth, :] = acc

    # Exact-shape output: no padded channels leave the kernel, so the wrapper
    # needs neither a post-kernel channel slice nor any transpose.
    for n in range(N):
        out_ref[n, :, :] = slab_ref[:c_total, n * HW:(n + 1) * HW]


@jax.jit
def dense_block_forward(x_nchw, params):
    """Matches DenseBlock.forward. Input/output NCHW like PyTorch."""
    N, in_ch, H, W = x_nchw.shape
    HW = H * W
    NHW = N * HW
    L = len(params)
    growth = params[0][2].shape[-1]
    c_total = in_ch + L * growth

    x_flat = x_nchw.reshape(N, in_ch, HW)       # NCHW -> (N, C, HW), no transpose
    mask_arr = _build_tap_masks(N, H, W)

    inputs = [x_flat, mask_arr]
    in_specs = [_full_spec(x_flat.shape), _full_spec(mask_arr.shape)]
    cins, cps = [], []
    for l, (gamma, beta, w) in enumerate(params):
        cin = in_ch + l * growth
        assert w.shape == (3, 3, cin, growth)
        cp = _round_up(cin, 16)                 # 16: bf16 sublane packing
        cins.append(cin)
        cps.append(cp)
        g_p = jnp.zeros((cp, 1), jnp.float32).at[:cin, 0].set(gamma)
        b_p = jnp.zeros((cp, 1), jnp.float32).at[:cin, 0].set(beta)
        # HWIO (3,3,cin,growth) -> (9, growth, cp) bf16, zero-padded on cin,
        # tap-major (k = dy*3 + dx) to match the kernel's tap loop.
        wt = jnp.transpose(w, (0, 1, 3, 2)).reshape(9, growth, cin)
        wt = jnp.pad(wt, ((0, 0), (0, 0), (0, cp - cin))).astype(jnp.bfloat16)
        inputs += [g_p, b_p, wt]
        in_specs += [_full_spec(g_p.shape), _full_spec(b_p.shape),
                     _full_spec(wt.shape)]

    c_slab = max(_round_up(c_total, 8), max(cps))

    kernel = functools.partial(
        _dense_block_kernel, N=N, H=H, W=W, in_ch=in_ch, growth=growth,
        c_total=c_total, cins=tuple(cins), cps=tuple(cps))

    out = pl.pallas_call(
        kernel,
        out_shape=jax.ShapeDtypeStruct((N, c_total, HW), jnp.float32),
        grid_spec=pltpu.PrefetchScalarGridSpec(
            num_scalar_prefetch=0,
            grid=(1,),
            in_specs=in_specs,
            out_specs=_full_spec((N, c_total, HW)),
            scratch_shapes=[pltpu.VMEM((c_slab, NHW), jnp.float32)],
        ),
        # TODO(synk): at production DenseNet sizes, re-tile as H row-strips
        # (1-row halo) with a real grid so BlockSpec pipelining overlaps DMA,
        # raise vmem_limit_bytes for v5e/v6e, size strips for v7x's 64 MiB
        # VMEM, and split pixel columns across v7x's 2 TCs with a partial
        # (s1, s2) BN-stats exchange.  Toy shapes fit VMEM with grid=(1,).
        compiler_params=pltpu.CompilerParams(
            dimension_semantics=("arbitrary",)),
    )(*inputs)

    return out.reshape(N, c_total, H, W)


def init_dense_block_params(key, in_channels, growth_rate, num_layers):
    """Deterministic synthetic params. Conv weights stored HWIO for the kernel."""
    params = []
    for i in range(num_layers):
        cin = in_channels + i * growth_rate
        key, wk = jax.random.split(key)
        # PyTorch stores (Cout, Cin, 3, 3); we use HWIO = (3, 3, Cin, Cout).
        w = jax.random.normal(wk, (3, 3, cin, growth_rate), jnp.float32)
        w = w * (1.0 / jnp.sqrt(9.0 * cin))
        gamma = jnp.ones((cin,), jnp.float32)   # BatchNorm2d default init
        beta = jnp.zeros((cin,), jnp.float32)
        params.append((gamma, beta, w))
    return params


def _reference_forward(x_nchw, params):
    """Pure-JAX f32 reference (lax conv, two-pass BN stats) for correctness."""
    feats = [x_nchw]
    for gamma, beta, w in params:
        inp = jnp.concatenate(feats, axis=1)
        mean = jnp.mean(inp, axis=(0, 2, 3), keepdims=True)
        var = jnp.mean(jnp.square(inp - mean), axis=(0, 2, 3), keepdims=True)
        g = gamma.reshape(1, -1, 1, 1)
        b = beta.reshape(1, -1, 1, 1)
        a = jnp.maximum((inp - mean) / jnp.sqrt(var + EPS) * g + b, 0.0)
        out = jax.lax.conv_general_dilated(
            a, w, window_strides=(1, 1), padding="SAME",
            dimension_numbers=("NCHW", "HWIO", "NCHW"))
        feats.append(out)
    return jnp.concatenate(feats, axis=1)


if __name__ == "__main__":
    in_channels, growth_rate, num_layers = 4, 4, 3
    N, H, W = 2, 16, 16

    key = jax.random.PRNGKey(0)
    key, xk = jax.random.split(key)
    x = jax.random.normal(xk, (N, in_channels, H, W), jnp.float32)  # NCHW input

    params = init_dense_block_params(key, in_channels, growth_rate, num_layers)

    out = dense_block_forward(x, params)
    out = jax.block_until_ready(out)

    expected_channels = in_channels + num_layers * growth_rate
    assert out.shape == (N, expected_channels, H, W), out.shape

    ref = _reference_forward(x, params)
    max_err = float(jnp.max(jnp.abs(out - ref)))
    # bf16 MXU operands (f32 accumulation) vs the all-f32 reference.
    assert jnp.allclose(out, ref, rtol=5e-2, atol=5e-2), max_err

    print("KERNEL_OK")
</pallas_src>

<mosaic_0001>
module attributes {stable_mosaic.version = 11 : i64} {
  func.func @_dense_block_kernel(%arg0: i32, %arg1: memref<2x4x256xf32, #tpu.memory_space<vmem>>, %arg2: memref<9x512xf32, #tpu.memory_space<vmem>>, %arg3: memref<16x1xf32, #tpu.memory_space<vmem>>, %arg4: memref<16x1xf32, #tpu.memory_space<vmem>>, %arg5: memref<9x4x16xbf16, #tpu.memory_space<vmem>>, %arg6: memref<16x1xf32, #tpu.memory_space<vmem>>, %arg7: memref<16x1xf32, #tpu.memory_space<vmem>>, %arg8: memref<9x4x16xbf16, #tpu.memory_space<vmem>>, %arg9: memref<16x1xf32, #tpu.memory_space<vmem>>, %arg10: memref<16x1xf32, #tpu.memory_space<vmem>>, %arg11: memref<9x4x16xbf16, #tpu.memory_space<vmem>>, %arg12: memref<2x16x256xf32, #tpu.memory_space<vmem>>, %arg13: memref<16x512xf32, #tpu.memory_space<vmem>>) attributes {dimension_semantics = [#tpu.dimension_semantics<arbitrary>], iteration_bounds = array<i64: 1>, scalar_prefetch = 0 : i64, scratch_operands = 1 : i64, tpu.core_type = #tpu.core_type<tc>, window_params = [{pipeline_mode = #tpu.pipeline_mode<synchronous>, transform_indices = @transform_0, window_bounds = array<i64: 2, 4, 256>}, {pipeline_mode = #tpu.pipeline_mode<synchronous>, transform_indices = @transform_1, window_bounds = array<i64: 9, 512>}, {pipeline_mode = #tpu.pipeline_mode<synchronous>, transform_indices = @transform_2, window_bounds = array<i64: 16, 1>}, {pipeline_mode = #tpu.pipeline_mode<synchronous>, transform_indices = @transform_3, window_bounds = array<i64: 16, 1>}, {pipeline_mode = #tpu.pipeline_mode<synchronous>, transform_indices = @transform_4, window_bounds = array<i64: 9, 4, 16>}, {pipeline_mode = #tpu.pipeline_mode<synchronous>, transform_indices = @transform_5, window_bounds = array<i64: 16, 1>}, {pipeline_mode = #tpu.pipeline_mode<synchronous>, transform_indices = @transform_6, window_bounds = array<i64: 16, 1>}, {pipeline_mode = #tpu.pipeline_mode<synchronous>, transform_indices = @transform_7, window_bounds = array<i64: 9, 4, 16>}, {pipeline_mode = #tpu.pipeline_mode<synchronous>, transform_indices = @transform_8, window_bounds = array<i64: 16, 1>}, {pipeline_mode = #tpu.pipeline_mode<synchronous>, transform_indices = @transform_9, window_bounds = array<i64: 16, 1>}, {pipeline_mode = #tpu.pipeline_mode<synchronous>, transform_indices = @transform_10, window_bounds = array<i64: 9, 4, 16>}, {pipeline_mode = #tpu.pipeline_mode<synchronous>, transform_indices = @transform_11, window_bounds = array<i64: 2, 16, 256>}]} {
    %cst = arith.constant 0.000000e+00 : f32
    %0 = vector.broadcast %cst : f32 to vector<12x512xf32>
    %c4 = arith.constant 4 : index
    %c0 = arith.constant 0 : index
    %1 = vector.load %arg13[%c4, %c0] : memref<16x512xf32, #tpu.memory_space<vmem>>, vector<12x512xf32>
    tpu.vector_store %arg13[%c4, %c0], %0 {strides = array<i32>} : memref<16x512xf32, #tpu.memory_space<vmem>>, vector<12x512xf32>,
    %c0_0 = arith.constant 0 : index
    %c0_1 = arith.constant 0 : index
    %c0_2 = arith.constant 0 : index
    %2 = vector.load %arg1[%c0_0, %c0_1, %c0_2] : memref<2x4x256xf32, #tpu.memory_space<vmem>>, vector<1x4x256xf32>
    %3 = vector.shape_cast %2 : vector<1x4x256xf32> to vector<4x256xf32>
    %c0_3 = arith.constant 0 : index
    %c0_4 = arith.constant 0 : index
    %4 = vector.load %arg13[%c0_3, %c0_4] : memref<16x512xf32, #tpu.memory_space<vmem>>, vector<4x256xf32>
    tpu.vector_store %arg13[%c0_3, %c0_4], %3 {strides = array<i32>} : memref<16x512xf32, #tpu.memory_space<vmem>>, vector<4x256xf32>,
    %c1 = arith.constant 1 : index
    %c0_5 = arith.constant 0 : index
    %c0_6 = arith.constant 0 : index
    %5 = vector.load %arg1[%c1, %c0_5, %c0_6] : memref<2x4x256xf32, #tpu.memory_space<vmem>>, vector<1x4x256xf32>
    %6 = vector.shape_cast %5 : vector<1x4x256xf32> to vector<4x256xf32>
    %c0_7 = arith.constant 0 : index
    %c256 = arith.constant 256 : index
    %7 = vector.load %arg13[%c0_7, %c256] : memref<16x512xf32, #tpu.memory_space<vmem>>, vector<4x256xf32>
    tpu.vector_store %arg13[%c0_7, %c256], %6 {strides = array<i32>} : memref<16x512xf32, #tpu.memory_space<vmem>>, vector<4x256xf32>,
    %c0_8 = arith.constant 0 : index
    %c0_9 = arith.constant 0 : index
    %8 = vector.load %arg13[%c0_8, %c0_9] : memref<16x512xf32, #tpu.memory_space<vmem>>, vector<16x512xf32>
    %cst_10 = arith.constant dense<0.000000e+00> : vector<16xf32>
    %9 = vector.multi_reduction <add>, %8, %cst_10 [1] : vector<16x512xf32> to vector<16xf32>
    %10 = vector.shape_cast %9 : vector<16xf32> to vector<16x1xf32>
    %11 = arith.mulf %8, %8 : vector<16x512xf32>
    %cst_11 = arith.constant dense<0.000000e+00> : vector<16xf32>
    %12 = vector.multi_reduction <add>, %11, %cst_11 [1] : vector<16x512xf32> to vector<16xf32>
    %13 = vector.shape_cast %12 : vector<16xf32> to vector<16x1xf32>
    %cst_12 = arith.constant 0.001953125 : f32
    %14 = vector.broadcast %cst_12 : f32 to vector<16x1xf32>
    %15 = arith.mulf %10, %14 : vector<16x1xf32>
    %cst_13 = arith.constant 0.001953125 : f32
    %16 = vector.broadcast %cst_13 : f32 to vector<16x1xf32>
    %17 = arith.mulf %13, %16 : vector<16x1xf32>
    %18 = arith.mulf %15, %15 : vector<16x1xf32>
    %19 = arith.subf %17, %18 : vector<16x1xf32>
    %cst_14 = arith.constant 0.000000e+00 : f32
    %20 = vector.broadcast %cst_14 : f32 to vector<16x1xf32>
    %21 = arith.maximumf %19, %20 : vector<16x1xf32>
    %c0_15 = arith.constant 0 : index
    %c0_16 = arith.constant 0 : index
    %22 = vector.load %arg3[%c0_15, %c0_16] : memref<16x1xf32, #tpu.memory_space<vmem>>, vector<16x1xf32>
    %cst_17 = arith.constant 9.99999974E-6 : f32
    %23 = vector.broadcast %cst_17 : f32 to vector<16x1xf32>
    %24 = arith.addf %21, %23 : vector<16x1xf32>
    %25 = math.rsqrt %24 : vector<16x1xf32>
    %26 = arith.mulf %22, %25 : vector<16x1xf32>
    %c0_18 = arith.constant 0 : index
    %c0_19 = arith.constant 0 : index
    %27 = vector.load %arg4[%c0_18, %c0_19] : memref<16x1xf32, #tpu.memory_space<vmem>>, vector<16x1xf32>
    %28 = arith.mulf %15, %26 : vector<16x1xf32>
    %29 = arith.subf %27, %28 : vector<16x1xf32>
    %30 = vector.broadcast %26 : vector<16x1xf32> to vector<16x512xf32>
    %31 = arith.mulf %8, %30 : vector<16x512xf32>
    %32 = vector.broadcast %29 : vector<16x1xf32> to vector<16x512xf32>
    %33 = arith.addf %31, %32 : vector<16x512xf32>
    %cst_20 = arith.constant 0.000000e+00 : f32
    %34 = vector.broadcast %cst_20 : f32 to vector<16x512xf32>
    %35 = arith.maximumf %33, %34 : vector<16x512xf32>
    %cst_21 = arith.constant 0.000000e+00 : f32
    %36 = vector.broadcast %cst_21 : f32 to vector<4x512xf32>
    %c17_i32 = arith.constant 17 : i32
    %37 = tpu.dynamic_rotate %35 by %c17_i32 dim 1 : vector<16x512xf32>, i32 -> vector<16x512xf32>
    %c0_22 = arith.constant 0 : index
    %c0_23 = arith.constant 0 : index
    %38 = vector.load %arg2[%c0_22, %c0_23] : memref<9x512xf32, #tpu.memory_space<vmem>>, vector<1x512xf32>
    %39 = vector.broadcast %38 : vector<1x512xf32> to vector<16x512xf32>
    %40 = arith.mulf %37, %39 : vector<16x512xf32>
    %c0_24 = arith.constant 0 : index
    %c0_25 = arith.constant 0 : index
    %c0_26 = arith.constant 0 : index
    %41 = vector.load %arg5[%c0_24, %c0_25, %c0_26] : memref<9x4x16xbf16, #tpu.memory_space<vmem>>, vector<1x4x16xbf16>
    %42 = vector.shape_cast %41 : vector<1x4x16xbf16> to vector<4x16xbf16>
    %43 = arith.truncf %40 : vector<16x512xf32> to vector<16x512xbf16>
    %cst_27 = arith.constant dense<0.000000e+00> : vector<4x512xf32>
    %44 = tpu.matmul %42, %43, %cst_27 {dimension_numbers = #tpu.dot_dimension_numbers<[1], [0], [0], [1], [0, 0, 1, 1], [], []>} : vector<4x16xbf16>, vector<16x512xbf16>, vector<4x512xf32> -> vector<4x512xf32>
    %45 = arith.addf %36, %44 : vector<4x512xf32>
    %c16_i32 = arith.constant 16 : i32
    %46 = tpu.dynamic_rotate %35 by %c16_i32 dim 1 : vector<16x512xf32>, i32 -> vector<16x512xf32>
    %c1_28 = arith.constant 1 : index
    %c0_29 = arith.constant 0 : index
    %47 = vector.load %arg2[%c1_28, %c0_29] : memref<9x512xf32, #tpu.memory_space<vmem>>, vector<1x512xf32>
    %48 = vector.broadcast %47 : vector<1x512xf32> to vector<16x512xf32>
    %49 = arith.mulf %46, %48 : vector<16x512xf32>
    %c1_30 = arith.constant 1 : index
    %c0_31 = arith.constant 0 : index
    %c0_32 = arith.constant 0 : index
    %50 = vector.load %arg5[%c1_30, %c0_31, %c0_32] : memref<9x4x16xbf16, #tpu.memory_space<vmem>>, vector<1x4x16xbf16>
    %51 = vector.shape_cast %50 : vector<1x4x16xbf16> to vector<4x16xbf16>
    %52 = arith.truncf %49 : vector<16x512xf32> to vector<16x512xbf16>
    %cst_33 = arith.constant dense<0.000000e+00> : vector<4x512xf32>
    %53 = tpu.matmul %51, %52, %cst_33 {dimension_numbers = #tpu.dot_dimension_numbers<[1], [0], [0], [1], [0, 0, 1, 1], [], []>} : vector<4x16xbf16>, vector<16x512xbf16>, vector<4x512xf32> -> vector<4x512xf32>
    %54 = arith.addf %45, %53 : vector<4x512xf32>
    %c15_i32 = arith.constant 15 : i32
    %55 = tpu.dynamic_rotate %35 by %c15_i32 dim 1 : vector<16x512xf32>, i32 -> vector<16x512xf32>
    %c2 = arith.constant 2 : index
    %c0_34 = arith.constant 0 : index
    %56 = vector.load %arg2[%c2, %c0_34] : memref<9x512xf32, #tpu.memory_space<vmem>>, vector<1x512xf32>
    %57 = vector.broadcast %56 : vector<1x512xf32> to vector<16x512xf32>
    %58 = arith.mulf %55, %57 : vector<16x512xf32>
    %c2_35 = arith.constant 2 : index
    %c0_36 = arith.constant 0 : index
    %c0_37 = arith.constant 0 : index
    %59 = vector.load %arg5[%c2_35, %c0_36, %c0_37] : memref<9x4x16xbf16, #tpu.memory_space<vmem>>, vector<1x4x16xbf16>
    %60 = vector.shape_cast %59 : vector<1x4x16xbf16> to vector<4x16xbf16>
    %61 = arith.truncf %58 : vector<16x512xf32> to vector<16x512xbf16>
    %cst_38 = arith.constant dense<0.000000e+00> : vector<4x512xf32>
    %62 = tpu.matmul %60, %61, %cst_38 {dimension_numbers = #tpu.dot_dimension_numbers<[1], [0], [0], [1], [0, 0, 1, 1], [], []>} : vector<4x16xbf16>, vector<16x512xbf16>, vector<4x512xf32> -> vector<4x512xf32>
    %63 = arith.addf %54, %62 : vector<4x512xf32>
    %c1_i32 = arith.constant 1 : i32
    %64 = tpu.dynamic_rotate %35 by %c1_i32 dim 1 : vector<16x512xf32>, i32 -> vector<16x512xf32>
    %c3 = arith.constant 3 : index
    %c0_39 = arith.constant 0 : index
    %65 = vector.load %arg2[%c3, %c0_39] : memref<9x512xf32, #tpu.memory_space<vmem>>, vector<1x512xf32>
    %66 = vector.broadcast %65 : vector<1x512xf32> to vector<16x512xf32>
    %67 = arith.mulf %64, %66 : vector<16x512xf32>
    %c3_40 = arith.constant 3 : index
    %c0_41 = arith.constant 0 : index
    %c0_42 = arith.constant 0 : index
    %68 = vector.load %arg5[%c3_40, %c0_41, %c0_42] : memref<9x4x16xbf16, #tpu.memory_space<vmem>>, vector<1x4x16xbf16>
    %69 = vector.shape_cast %68 : vector<1x4x16xbf16> to vector<4x16xbf16>
    %70 = arith.truncf %67 : vector<16x512xf32> to vector<16x512xbf16>
    %cst_43 = arith.constant dense<0.000000e+00> : vector<4x512xf32>
    %71 = tpu.matmul %69, %70, %cst_43 {dimension_numbers = #tpu.dot_dimension_numbers<[1], [0], [0], [1], [0, 0, 1, 1], [], []>} : vector<4x16xbf16>, vector<16x512xbf16>, vector<4x512xf32> -> vector<4x512xf32>
    %72 = arith.addf %63, %71 : vector<4x512xf32>
    %c4_44 = arith.constant 4 : index
    %c0_45 = arith.constant 0 : index
    %c0_46 = arith.constant 0 : index
    %73 = vector.load %arg5[%c4_44, %c0_45, %c0_46] : memref<9x4x16xbf16, #tpu.memory_space<vmem>>, vector<1x4x16xbf16>
    %74 = vector.shape_cast %73 : vector<1x4x16xbf16> to vector<4x16xbf16>
    %75 = arith.truncf %35 : vector<16x512xf32> to vector<16x512xbf16>
    %cst_47 = arith.constant dense<0.000000e+00> : vector<4x512xf32>
    %76 = tpu.matmul %74, %75, %cst_47 {dimension_numbers = #tpu.dot_dimension_numbers<[1], [0], [0], [1], [0, 0, 1, 1], [], []>} : vector<4x16xbf16>, vector<16x512xbf16>, vector<4x512xf32> -> vector<4x512xf32>
    %77 = arith.addf %72, %76 : vector<4x512xf32>
    %c511_i32 = arith.constant 511 : i32
    %78 = tpu.dynamic_rotate %35 by %c511_i32 dim 1 : vector<16x512xf32>, i32 -> vector<16x512xf32>
    %c5 = arith.constant 5 : index
    %c0_48 = arith.constant 0 : index
    %79 = vector.load %arg2[%c5, %c0_48] : memref<9x512xf32, #tpu.memory_space<vmem>>, vector<1x512xf32>
    %80 = vector.broadcast %79 : vector<1x512xf32> to vector<16x512xf32>
    %81 = arith.mulf %78, %80 : vector<16x512xf32>
    %c5_49 = arith.constant 5 : index
    %c0_50 = arith.constant 0 : index
    %c0_51 = arith.constant 0 : index
    %82 = vector.load %arg5[%c5_49, %c0_50, %c0_51] : memref<9x4x16xbf16, #tpu.memory_space<vmem>>, vector<1x4x16xbf16>
    %83 = vector.shape_cast %82 : vector<1x4x16xbf16> to vector<4x16xbf16>
    %84 = arith.truncf %81 : vector<16x512xf32> to vector<16x512xbf16>
    %cst_52 = arith.constant dense<0.000000e+00> : vector<4x512xf32>
    %85 = tpu.matmul %83, %84, %cst_52 {dimension_numbers = #tpu.dot_dimension_numbers<[1], [0], [0], [1], [0, 0, 1, 1], [], []>} : vector<4x16xbf16>, vector<16x512xbf16>, vector<4x512xf32> -> vector<4x512xf32>
    %86 = arith.addf %77, %85 : vector<4x512xf32>
    %c497_i32 = arith.constant 497 : i32
    %87 = tpu.dynamic_rotate %35 by %c497_i32 dim 1 : vector<16x512xf32>, i32 -> vector<16x512xf32>
    %c6 = arith.constant 6 : index
    %c0_53 = arith.constant 0 : index
    %88 = vector.load %arg2[%c6, %c0_53] : memref<9x512xf32, #tpu.memory_space<vmem>>, vector<1x512xf32>
    %89 = vector.broadcast %88 : vector<1x512xf32> to vector<16x512xf32>
    %90 = arith.mulf %87, %89 : vector<16x512xf32>
    %c6_54 = arith.constant 6 : index
    %c0_55 = arith.constant 0 : index
    %c0_56 = arith.constant 0 : index
    %91 = vector.load %arg5[%c6_54, %c0_55, %c0_56] : memref<9x4x16xbf16, #tpu.memory_space<vmem>>, vector<1x4x16xbf16>
    %92 = vector.shape_cast %91 : vector<1x4x16xbf16> to vector<4x16xbf16>
    %93 = arith.truncf %90 : vector<16x512xf32> to vector<16x512xbf16>
    %cst_57 = arith.constant dense<0.000000e+00> : vector<4x512xf32>
    %94 = tpu.matmul %92, %93, %cst_57 {dimension_numbers = #tpu.dot_dimension_numbers<[1], [0], [0], [1], [0, 0, 1, 1], [], []>} : vector<4x16xbf16>, vector<16x512xbf16>, vector<4x512xf32> -> vector<4x512xf32>
    %95 = arith.addf %86, %94 : vector<4x512xf32>
    %c496_i32 = arith.constant 496 : i32
    %96 = tpu.dynamic_rotate %35 by %c496_i32 dim 1 : vector<16x512xf32>, i32 -> vector<16x512xf32>
    %c7 = arith.constant 7 : index
    %c0_58 = arith.constant 0 : index
    %97 = vector.load %arg2[%c7, %c0_58] : memref<9x512xf32, #tpu.memory_space<vmem>>, vector<1x512xf32>
    %98 = vector.broadcast %97 : vector<1x512xf32> to vector<16x512xf32>
    %99 = arith.mulf %96, %98 : vector<16x512xf32>
    %c7_59 = arith.constant 7 : index
    %c0_60 = arith.constant 0 : index
    %c0_61 = arith.constant 0 : index
    %100 = vector.load %arg5[%c7_59, %c0_60, %c0_61] : memref<9x4x16xbf16, #tpu.memory_space<vmem>>, vector<1x4x16xbf16>
    %101 = vector.shape_cast %100 : vector<1x4x16xbf16> to vector<4x16xbf16>
    %102 = arith.truncf %99 : vector<16x512xf32> to vector<16x512xbf16>
    %cst_62 = arith.constant dense<0.000000e+00> : vector<4x512xf32>
    %103 = tpu.matmul %101, %102, %cst_62 {dimension_numbers = #tpu.dot_dimension_numbers<[1], [0], [0], [1], [0, 0, 1, 1], [], []>} : vector<4x16xbf16>, vector<16x512xbf16>, vector<4x512xf32> -> vector<4x512xf32>
    %104 = arith.addf %95, %103 : vector<4x512xf32>
    %c495_i32 = arith.constant 495 : i32
    %105 = tpu.dynamic_rotate %35 by %c495_i32 dim 1 : vector<16x512xf32>, i32 -> vector<16x512xf32>
    %c8 = arith.constant 8 : index
    %c0_63 = arith.constant 0 : index
    %106 = vector.load %arg2[%c8, %c0_63] : memref<9x512xf32, #tpu.memory_space<vmem>>, vector<1x512xf32>
    %107 = vector.broadcast %106 : vector<1x512xf32> to vector<16x512xf32>
    %108 = arith.mulf %105, %107 : vector<16x512xf32>
    %c8_64 = arith.constant 8 : index
    %c0_65 = arith.constant 0 : index
    %c0_66 = arith.constant 0 : index
    %109 = vector.load %arg5[%c8_64, %c0_65, %c0_66] : memref<9x4x16xbf16, #tpu.memory_space<vmem>>, vector<1x4x16xbf16>
    %110 = vector.shape_cast %109 : vector<1x4x16xbf16> to vector<4x16xbf16>
    %111 = arith.truncf %108 : vector<16x512xf32> to vector<16x512xbf16>
    %cst_67 = arith.constant dense<0.000000e+00> : vector<4x512xf32>
    %112 = tpu.matmul %110, %111, %cst_67 {dimension_numbers = #tpu.dot_dimension_numbers<[1], [0], [0], [1], [0, 0, 1, 1], [], []>} : vector<4x16xbf16>, vector<16x512xbf16>, vector<4x512xf32> -> vector<4x512xf32>
    %113 = arith.addf %104, %112 : vector<4x512xf32>
    %c4_68 = arith.constant 4 : index
    %c0_69 = arith.constant 0 : index
    %114 = vector.load %arg13[%c4_68, %c0_69] : memref<16x512xf32, #tpu.memory_space<vmem>>, vector<4x512xf32>
    tpu.vector_store %arg13[%c4_68, %c0_69], %113 {strides = array<i32>} : memref<16x512xf32, #tpu.memory_space<vmem>>, vector<4x512xf32>,
    %c0_70 = arith.constant 0 : index
    %c0_71 = arith.constant 0 : index
    %115 = vector.load %arg13[%c0_70, %c0_71] : memref<16x512xf32, #tpu.memory_space<vmem>>, vector<16x512xf32>
    %cst_72 = arith.constant dense<0.000000e+00> : vector<16xf32>
    %116 = vector.multi_reduction <add>, %115, %cst_72 [1] : vector<16x512xf32> to vector<16xf32>
    %117 = vector.shape_cast %116 : vector<16xf32> to vector<16x1xf32>
    %118 = arith.mulf %115, %115 : vector<16x512xf32>
    %cst_73 = arith.constant dense<0.000000e+00> : vector<16xf32>
    %119 = vector.multi_reduction <add>, %118, %cst_73 [1] : vector<16x512xf32> to vector<16xf32>
    %120 = vector.shape_cast %119 : vector<16xf32> to vector<16x1xf32>
    %cst_74 = arith.constant 0.001953125 : f32
    %121 = vector.broadcast %cst_74 : f32 to vector<16x1xf32>
    %122 = arith.mulf %117, %121 : vector<16x1xf32>
    %cst_75 = arith.constant 0.001953125 : f32
    %123 = vector.broadcast %cst_75 : f32 to vector<16x1xf32>
    %124 = arith.mulf %120, %123 : vector<16x1xf32>
    %125 = arith.mulf %122, %122 : vector<16x1xf32>
    %126 = arith.subf %124, %125 : vector<16x1xf32>
    %cst_76 = arith.constant 0.000000e+00 : f32
    %127 = vector.broadcast %cst_76 : f32 to vector<16x1xf32>
    %128 = arith.maximumf %126, %127 : vector<16x1xf32>
    %c0_77 = arith.constant 0 : index
    %c0_78 = arith.constant 0 : index
    %129 = vector.load %arg6[%c0_77, %c0_78] : memref<16x1xf32, #tpu.memory_space<vmem>>, vector<16x1xf32>
    %cst_79 = arith.constant 9.99999974E-6 : f32
    %130 = vector.broadcast %cst_79 : f32 to vector<16x1xf32>
    %131 = arith.addf %128, %130 : vector<16x1xf32>
    %132 = math.rsqrt %131 : vector<16x1xf32>
    %133 = arith.mulf %129, %132 : vector<16x1xf32>
    %c0_80 = arith.constant 0 : index
    %c0_81 = arith.constant 0 : index
    %134 = vector.load %arg7[%c0_80, %c0_81] : memref<16x1xf32, #tpu.memory_space<vmem>>, vector<16x1xf32>
    %135 = arith.mulf %122, %133 : vector<16x1xf32>
    %136 = arith.subf %134, %135 : vector<16x1xf32>
    %137 = vector.broadcast %133 : vector<16x1xf32> to vector<16x512xf32>
    %138 = arith.mulf %115, %137 : vector<16x512xf32>
    %139 = vector.broadcast %136 : vector<16x1xf32> to vector<16x512xf32>
    %140 = arith.addf %138, %139 : vector<16x512xf32>
    %cst_82 = arith.constant 0.000000e+00 : f32
    %141 = vector.broadcast %cst_82 : f32 to vector<16x512xf32>
    %142 = arith.maximumf %140, %141 : vector<16x512xf32>
    %cst_83 = arith.constant 0.000000e+00 : f32
    %143 = vector.broadcast %cst_83 : f32 to vector<4x512xf32>
    %c17_i32_84 = arith.constant 17 : i32
    %144 = tpu.dynamic_rotate %142 by %c17_i32_84 dim 1 : vector<16x512xf32>, i32 -> vector<16x512xf32>
    %c0_85 = arith.constant 0 : index
    %c0_86 = arith.constant 0 : index
    %145 = vector.load %arg2[%c0_85, %c0_86] : memref<9x512xf32, #tpu.memory_space<vmem>>, vector<1x512xf32>
    %146 = vector.broadcast %145 : vector<1x512xf32> to vector<16x512xf32>
    %147 = arith.mulf %144, %146 : vector<16x512xf32>
    %c0_87 = arith.constant 0 : index
    %c0_88 = arith.constant 0 : index
    %c0_89 = arith.constant 0 : index
    %148 = vector.load %arg8[%c0_87, %c0_88, %c0_89] : memref<9x4x16xbf16, #tpu.memory_space<vmem>>, vector<1x4x16xbf16>
    %149 = vector.shape_cast %148 : vector<1x4x16xbf16> to vector<4x16xbf16>
    %150 = arith.truncf %147 : vector<16x512xf32> to vector<16x512xbf16>
    %cst_90 = arith.constant dense<0.000000e+00> : vector<4x512xf32>
    %151 = tpu.matmul %149, %150, %cst_90 {dimension_numbers = #tpu.dot_dimension_numbers<[1], [0], [0], [1], [0, 0, 1, 1], [], []>} : vector<4x16xbf16>, vector<16x512xbf16>, vector<4x512xf32> -> vector<4x512xf32>
    %152 = arith.addf %143, %151 : vector<4x512xf32>
    %c16_i32_91 = arith.constant 16 : i32
    %153 = tpu.dynamic_rotate %142 by %c16_i32_91 dim 1 : vector<16x512xf32>, i32 -> vector<16x512xf32>
    %c1_92 = arith.constant 1 : index
    %c0_93 = arith.constant 0 : index
    %154 = vector.load %arg2[%c1_92, %c0_93] : memref<9x512xf32, #tpu.memory_space<vmem>>, vector<1x512xf32>
    %155 = vector.broadcast %154 : vector<1x512xf32> to vector<16x512xf32>
    %156 = arith.mulf %153, %155 : vector<16x512xf32>
    %c1_94 = arith.constant 1 : index
    %c0_95 = arith.constant 0 : index
    %c0_96 = arith.constant 0 : index
    %157 = vector.load %arg8[%c1_94, %c0_95, %c0_96] : memref<9x4x16xbf16, #tpu.memory_space<vmem>>, vector<1x4x16xbf16>
    %158 = vector.shape_cast %157 : vector<1x4x16xbf16> to vector<4x16xbf16>
    %159 = arith.truncf %156 : vector<16x512xf32> to vector<16x512xbf16>
    %cst_97 = arith.constant dense<0.000000e+00> : vector<4x512xf32>
    %160 = tpu.matmul %158, %159, %cst_97 {dimension_numbers = #tpu.dot_dimension_numbers<[1], [0], [0], [1], [0, 0, 1, 1], [], []>} : vector<4x16xbf16>, vector<16x512xbf16>, vector<4x512xf32> -> vector<4x512xf32>
    %161 = arith.addf %152, %160 : vector<4x512xf32>
    %c15_i32_98 = arith.constant 15 : i32
    %162 = tpu.dynamic_rotate %142 by %c15_i32_98 dim 1 : vector<16x512xf32>, i32 -> vector<16x512xf32>
    %c2_99 = arith.constant 2 : index
    %c0_100 = arith.constant 0 : index
    %163 = vector.load %arg2[%c2_99, %c0_100] : memref<9x512xf32, #tpu.memory_space<vmem>>, vector<1x512xf32>
    %164 = vector.broadcast %163 : vector<1x512xf32> to vector<16x512xf32>
    %165 = arith.mulf %162, %164 : vector<16x512xf32>
    %c2_101 = arith.constant 2 : index
    %c0_102 = arith.constant 0 : index
    %c0_103 = arith.constant 0 : index
    %166 = vector.load %arg8[%c2_101, %c0_102, %c0_103] : memref<9x4x16xbf16, #tpu.memory_space<vmem>>, vector<1x4x16xbf16>
    %167 = vector.shape_cast %166 : vector<1x4x16xbf16> to vector<4x16xbf16>
    %168 = arith.truncf %165 : vector<16x512xf32> to vector<16x512xbf16>
    %cst_104 = arith.constant dense<0.000000e+00> : vector<4x512xf32>
    %169 = tpu.matmul %167, %168, %cst_104 {dimension_numbers = #tpu.dot_dimension_numbers<[1], [0], [0], [1], [0, 0, 1, 1], [], []>} : vector<4x16xbf16>, vector<16x512xbf16>, vector<4x512xf32> -> vector<4x512xf32>
    %170 = arith.addf %161, %169 : vector<4x512xf32>
    %c1_i32_105 = arith.constant 1 : i32
    %171 = tpu.dynamic_rotate %142 by %c1_i32_105 dim 1 : vector<16x512xf32>, i32 -> vector<16x512xf32>
    %c3_106 = arith.constant 3 : index
    %c0_107 = arith.constant 0 : index
    %172 = vector.load %arg2[%c3_106, %c0_107] : memref<9x512xf32, #tpu.memory_space<vmem>>, vector<1x512xf32>
    %173 = vector.broadcast %172 : vector<1x512xf32> to vector<16x512xf32>
    %174 = arith.mulf %171, %173 : vector<16x512xf32>
    %c3_108 = arith.constant 3 : index
    %c0_109 = arith.constant 0 : index
    %c0_110 = arith.constant 0 : index
    %175 = vector.load %arg8[%c3_108, %c0_109, %c0_110] : memref<9x4x16xbf16, #tpu.memory_space<vmem>>, vector<1x4x16xbf16>
    %176 = vector.shape_cast %175 : vector<1x4x16xbf16> to vector<4x16xbf16>
    %177 = arith.truncf %174 : vector<16x512xf32> to vector<16x512xbf16>
    %cst_111 = arith.constant dense<0.000000e+00> : vector<4x512xf32>
    %178 = tpu.matmul %176, %177, %cst_111 {dimension_numbers = #tpu.dot_dimension_numbers<[1], [0], [0], [1], [0, 0, 1, 1], [], []>} : vector<4x16xbf16>, vector<16x512xbf16>, vector<4x512xf32> -> vector<4x512xf32>
    %179 = arith.addf %170, %178 : vector<4x512xf32>
    %c4_112 = arith.constant 4 : index
    %c0_113 = arith.constant 0 : index
    %c0_114 = arith.constant 0 : index
    %180 = vector.load %arg8[%c4_112, %c0_113, %c0_114] : memref<9x4x16xbf16, #tpu.memory_space<vmem>>, vector<1x4x16xbf16>
    %181 = vector.shape_cast %180 : vector<1x4x16xbf16> to vector<4x16xbf16>
    %182 = arith.truncf %142 : vector<16x512xf32> to vector<16x512xbf16>
    %cst_115 = arith.constant dense<0.000000e+00> : vector<4x512xf32>
    %183 = tpu.matmul %181, %182, %cst_115 {dimension_numbers = #tpu.dot_dimension_numbers<[1], [0], [0], [1], [0, 0, 1, 1], [], []>} : vector<4x16xbf16>, vector<16x512xbf16>, vector<4x512xf32> -> vector<4x512xf32>
    %184 = arith.addf %179, %183 : vector<4x512xf32>
    %c511_i32_116 = arith.constant 511 : i32
    %185 = tpu.dynamic_rotate %142 by %c511_i32_116 dim 1 : vector<16x512xf32>, i32 -> vector<16x512xf32>
    %c5_117 = arith.constant 5 : index
    %c0_118 = arith.constant 0 : index
    %186 = vector.load %arg2[%c5_117, %c0_118] : memref<9x512xf32, #tpu.memory_space<vmem>>, vector<1x512xf32>
    %187 = vector.broadcast %186 : vector<1x512xf32> to vector<16x512xf32>
    %188 = arith.mulf %185, %187 : vector<16x512xf32>
    %c5_119 = arith.constant 5 : index
    %c0_120 = arith.constant 0 : index
    %c0_121 = arith.constant 0 : index
    %189 = vector.load %arg8[%c5_119, %c0_120, %c0_121] : memref<9x4x16xbf16, #tpu.memory_space<vmem>>, vector<1x4x16xbf16>
    %190 = vector.shape_cast %189 : vector<1x4x16xbf16> to vector<4x16xbf16>
    %191 = arith.truncf %188 : vector<16x512xf32> to vector<16x512xbf16>
    %cst_122 = arith.constant dense<0.000000e+00> : vector<4x512xf32>
    %192 = tpu.matmul %190, %191, %cst_122 {dimension_numbers = #tpu.dot_dimension_numbers<[1], [0], [0], [1], [0, 0, 1, 1], [], []>} : vector<4x16xbf16>, vector<16x512xbf16>, vector<4x512xf32> -> vector<4x512xf32>
    %193 = arith.addf %184, %192 : vector<4x512xf32>
    %c497_i32_123 = arith.constant 497 : i32
    %194 = tpu.dynamic_rotate %142 by %c497_i32_123 dim 1 : vector<16x512xf32>, i32 -> vector<16x512xf32>
    %c6_124 = arith.constant 6 : index
    %c0_125 = arith.constant 0 : index
    %195 = vector.load %arg2[%c6_124, %c0_125] : memref<9x512xf32, #tpu.memory_space<vmem>>, vector<1x512xf32>
    %196 = vector.broadcast %195 : vector<1x512xf32> to vector<16x512xf32>
    %197 = arith.mulf %194, %196 : vector<16x512xf32>
    %c6_126 = arith.constant 6 : index
    %c0_127 = arith.constant 0 : index
    %c0_128 = arith.constant 0 : index
    %198 = vector.load %arg8[%c6_126, %c0_127, %c0_128] : memref<9x4x16xbf16, #tpu.memory_space<vmem>>, vector<1x4x16xbf16>
    %199 = vector.shape_cast %198 : vector<1x4x16xbf16> to vector<4x16xbf16>
    %200 = arith.truncf %197 : vector<16x512xf32> to vector<16x512xbf16>
    %cst_129 = arith.constant dense<0.000000e+00> : vector<4x512xf32>
    %201 = tpu.matmul %199, %200, %cst_129 {dimension_numbers = #tpu.dot_dimension_numbers<[1], [0], [0], [1], [0, 0, 1, 1], [], []>} : vector<4x16xbf16>, vector<16x512xbf16>, vector<4x512xf32> -> vector<4x512xf32>
    %202 = arith.addf %193, %201 : vector<4x512xf32>
    %c496_i32_130 = arith.constant 496 : i32
    %203 = tpu.dynamic_rotate %142 by %c496_i32_130 dim 1 : vector<16x512xf32>, i32 -> vector<16x512xf32>
    %c7_131 = arith.constant 7 : index
    %c0_132 = arith.constant 0 : index
    %204 = vector.load %arg2[%c7_131, %c0_132] : memref<9x512xf32, #tpu.memory_space<vmem>>, vector<1x512xf32>
    %205 = vector.broadcast %204 : vector<1x512xf32> to vector<16x512xf32>
    %206 = arith.mulf %203, %205 : vector<16x512xf32>
    %c7_133 = arith.constant 7 : index
    %c0_134 = arith.constant 0 : index
    %c0_135 = arith.constant 0 : index
    %207 = vector.load %arg8[%c7_133, %c0_134, %c0_135] : memref<9x4x16xbf16, #tpu.memory_space<vmem>>, vector<1x4x16xbf16>
    %208 = vector.shape_cast %207 : vector<1x4x16xbf16> to vector<4x16xbf16>
    %209 = arith.truncf %206 : vector<16x512xf32> to vector<16x512xbf16>
    %cst_136 = arith.constant dense<0.000000e+00> : vector<4x512xf32>
    %210 = tpu.matmul %208, %209, %cst_136 {dimension_numbers = #tpu.dot_dimension_numbers<[1], [0], [0], [1], [0, 0, 1, 1], [], []>} : vector<4x16xbf16>, vector<16x512xbf16>, vector<4x512xf32> -> vector<4x512xf32>
    %211 = arith.addf %202, %210 : vector<4x512xf32>
    %c495_i32_137 = arith.constant 495 : i32
    %212 = tpu.dynamic_rotate %142 by %c495_i32_137 dim 1 : vector<16x512xf32>, i32 -> vector<16x512xf32>
    %c8_138 = arith.constant 8 : index
    %c0_139 = arith.constant 0 : index
    %213 = vector.load %arg2[%c8_138, %c0_139] : memref<9x512xf32, #tpu.memory_space<vmem>>, vector<1x512xf32>
    %214 = vector.broadcast %213 : vector<1x512xf32> to vector<16x512xf32>
    %215 = arith.mulf %212, %214 : vector<16x512xf32>
    %c8_140 = arith.constant 8 : index
    %c0_141 = arith.constant 0 : index
    %c0_142 = arith.constant 0 : index
    %216 = vector.load %arg8[%c8_140, %c0_141, %c0_142] : memref<9x4x16xbf16, #tpu.memory_space<vmem>>, vector<1x4x16xbf16>
    %217 = vector.shape_cast %216 : vector<1x4x16xbf16> to vector<4x16xbf16>
    %218 = arith.truncf %215 : vector<16x512xf32> to vector<16x512xbf16>
    %cst_143 = arith.constant dense<0.000000e+00> : vector<4x512xf32>
    %219 = tpu.matmul %217, %218, %cst_143 {dimension_numbers = #tpu.dot_dimension_numbers<[1], [0], [0], [1], [0, 0, 1, 1], [], []>} : vector<4x16xbf16>, vector<16x512xbf16>, vector<4x512xf32> -> vector<4x512xf32>
    %220 = arith.addf %211, %219 : vector<4x512xf32>
    %c8_144 = arith.constant 8 : index
    %c0_145 = arith.constant 0 : index
    %221 = vector.load %arg13[%c8_144, %c0_145] : memref<16x512xf32, #tpu.memory_space<vmem>>, vector<4x512xf32>
    tpu.vector_store %arg13[%c8_144, %c0_145], %220 {strides = array<i32>} : memref<16x512xf32, #tpu.memory_space<vmem>>, vector<4x512xf32>,
    %c0_146 = arith.constant 0 : index
    %c0_147 = arith.constant 0 : index
    %222 = vector.load %arg13[%c0_146, %c0_147] : memref<16x512xf32, #tpu.memory_space<vmem>>, vector<16x512xf32>
    %cst_148 = arith.constant dense<0.000000e+00> : vector<16xf32>
    %223 = vector.multi_reduction <add>, %222, %cst_148 [1] : vector<16x512xf32> to vector<16xf32>
    %224 = vector.shape_cast %223 : vector<16xf32> to vector<16x1xf32>
    %225 = arith.mulf %222, %222 : vector<16x512xf32>
    %cst_149 = arith.constant dense<0.000000e+00> : vector<16xf32>
    %226 = vector.multi_reduction <add>, %225, %cst_149 [1] : vector<16x512xf32> to vector<16xf32>
    %227 = vector.shape_cast %226 : vector<16xf32> to vector<16x1xf32>
    %cst_150 = arith.constant 0.001953125 : f32
    %228 = vector.broadcast %cst_150 : f32 to vector<16x1xf32>
    %229 = arith.mulf %224, %228 : vector<16x1xf32>
    %cst_151 = arith.constant 0.001953125 : f32
    %230 = vector.broadcast %cst_151 : f32 to vector<16x1xf32>
    %231 = arith.mulf %227, %230 : vector<16x1xf32>
    %232 = arith.mulf %229, %229 : vector<16x1xf32>
    %233 = arith.subf %231, %232 : vector<16x1xf32>
    %cst_152 = arith.constant 0.000000e+00 : f32
    %234 = vector.broadcast %cst_152 : f32 to vector<16x1xf32>
    %235 = arith.maximumf %233, %234 : vector<16x1xf32>
    %c0_153 = arith.constant 0 : index
    %c0_154 = arith.constant 0 : index
    %236 = vector.load %arg9[%c0_153, %c0_154] : memref<16x1xf32, #tpu.memory_space<vmem>>, vector<16x1xf32>
    %cst_155 = arith.constant 9.99999974E-6 : f32
    %237 = vector.broadcast %cst_155 : f32 to vector<16x1xf32>
    %238 = arith.addf %235, %237 : vector<16x1xf32>
    %239 = math.rsqrt %238 : vector<16x1xf32>
    %240 = arith.mulf %236, %239 : vector<16x1xf32>
    %c0_156 = arith.constant 0 : index
    %c0_157 = arith.constant 0 : index
    %241 = vector.load %arg10[%c0_156, %c0_157] : memref<16x1xf32, #tpu.memory_space<vmem>>, vector<16x1xf32>
    %242 = arith.mulf %229, %240 : vector<16x1xf32>
    %243 = arith.subf %241, %242 : vector<16x1xf32>
    %244 = vector.broadcast %240 : vector<16x1xf32> to vector<16x512xf32>
    %245 = arith.mulf %222, %244 : vector<16x512xf32>
    %246 = vector.broadcast %243 : vector<16x1xf32> to vector<16x512xf32>
    %247 = arith.addf %245, %246 : vector<16x512xf32>
    %cst_158 = arith.constant 0.000000e+00 : f32
    %248 = vector.broadcast %cst_158 : f32 to vector<16x512xf32>
    %249 = arith.maximumf %247, %248 : vector<16x512xf32>
    %cst_159 = arith.constant 0.000000e+00 : f32
    %250 = vector.broadcast %cst_159 : f32 to vector<4x512xf32>
    %c17_i32_160 = arith.constant 17 : i32
    %251 = tpu.dynamic_rotate %249 by %c17_i32_160 dim 1 : vector<16x512xf32>, i32 -> vector<16x512xf32>
    %c0_161 = arith.constant 0 : index
    %c0_162 = arith.constant 0 : index
    %252 = vector.load %arg2[%c0_161, %c0_162] : memref<9x512xf32, #tpu.memory_space<vmem>>, vector<1x512xf32>
    %253 = vector.broadcast %252 : vector<1x512xf32> to vector<16x512xf32>
    %254 = arith.mulf %251, %253 : vector<16x512xf32>
    %c0_163 = arith.constant 0 : index
    %c0_164 = arith.constant 0 : index
    %c0_165 = arith.constant 0 : index
    %255 = vector.load %arg11[%c0_163, %c0_164, %c0_165] : memref<9x4x16xbf16, #tpu.memory_space<vmem>>, vector<1x4x16xbf16>
    %256 = vector.shape_cast %255 : vector<1x4x16xbf16> to vector<4x16xbf16>
    %257 = arith.truncf %254 : vector<16x512xf32> to vector<16x512xbf16>
    %cst_166 = arith.constant dense<0.000000e+00> : vector<4x512xf32>
    %258 = tpu.matmul %256, %257, %cst_166 {dimension_numbers = #tpu.dot_dimension_numbers<[1], [0], [0], [1], [0, 0, 1, 1], [], []>} : vector<4x16xbf16>, vector<16x512xbf16>, vector<4x512xf32> -> vector<4x512xf32>
    %259 = arith.addf %250, %258 : vector<4x512xf32>
    %c16_i32_167 = arith.constant 16 : i32
    %260 = tpu.dynamic_rotate %249 by %c16_i32_167 dim 1 : vector<16x512xf32>, i32 -> vector<16x512xf32>
    %c1_168 = arith.constant 1 : index
    %c0_169 = arith.constant 0 : index
    %261 = vector.load %arg2[%c1_168, %c0_169] : memref<9x512xf32, #tpu.memory_space<vmem>>, vector<1x512xf32>
    %262 = vector.broadcast %261 : vector<1x512xf32> to vector<16x512xf32>
    %263 = arith.mulf %260, %262 : vector<16x512xf32>
    %c1_170 = arith.constant 1 : index
    %c0_171 = arith.constant 0 : index
    %c0_172 = arith.constant 0 : index
    %264 = vector.load %arg11[%c1_170, %c0_171, %c0_172] : memref<9x4x16xbf16, #tpu.memory_space<vmem>>, vector<1x4x16xbf16>
    %265 = vector.shape_cast %264 : vector<1x4x16xbf16> to vector<4x16xbf16>
    %266 = arith.truncf %263 : vector<16x512xf32> to vector<16x512xbf16>
    %cst_173 = arith.constant dense<0.000000e+00> : vector<4x512xf32>
    %267 = tpu.matmul %265, %266, %cst_173 {dimension_numbers = #tpu.dot_dimension_numbers<[1], [0], [0], [1], [0, 0, 1, 1], [], []>} : vector<4x16xbf16>, vector<16x512xbf16>, vector<4x512xf32> -> vector<4x512xf32>
    %268 = arith.addf %259, %267 : vector<4x512xf32>
    %c15_i32_174 = arith.constant 15 : i32
    %269 = tpu.dynamic_rotate %249 by %c15_i32_174 dim 1 : vector<16x512xf32>, i32 -> vector<16x512xf32>
    %c2_175 = arith.constant 2 : index
    %c0_176 = arith.constant 0 : index
    %270 = vector.load %arg2[%c2_175, %c0_176] : memref<9x512xf32, #tpu.memory_space<vmem>>, vector<1x512xf32>
    %271 = vector.broadcast %270 : vector<1x512xf32> to vector<16x512xf32>
    %272 = arith.mulf %269, %271 : vector<16x512xf32>
    %c2_177 = arith.constant 2 : index
    %c0_178 = arith.constant 0 : index
    %c0_179 = arith.constant 0 : index
    %273 = vector.load %arg11[%c2_177, %c0_178, %c0_179] : memref<9x4x16xbf16, #tpu.memory_space<vmem>>, vector<1x4x16xbf16>
    %274 = vector.shape_cast %273 : vector<1x4x16xbf16> to vector<4x16xbf16>
    %275 = arith.truncf %272 : vector<16x512xf32> to vector<16x512xbf16>
    %cst_180 = arith.constant dense<0.000000e+00> : vector<4x512xf32>
    %276 = tpu.matmul %274, %275, %cst_180 {dimension_numbers = #tpu.dot_dimension_numbers<[1], [0], [0], [1], [0, 0, 1, 1], [], []>} : vector<4x16xbf16>, vector<16x512xbf16>, vector<4x512xf32> -> vector<4x512xf32>
    %277 = arith.addf %268, %276 : vector<4x512xf32>
    %c1_i32_181 = arith.constant 1 : i32
    %278 = tpu.dynamic_rotate %249 by %c1_i32_181 dim 1 : vector<16x512xf32>, i32 -> vector<16x512xf32>
    %c3_182 = arith.constant 3 : index
    %c0_183 = arith.constant 0 : index
    %279 = vector.load %arg2[%c3_182, %c0_183] : memref<9x512xf32, #tpu.memory_space<vmem>>, vector<1x512xf32>
    %280 = vector.broadcast %279 : vector<1x512xf32> to vector<16x512xf32>
    %281 = arith.mulf %278, %280 : vector<16x512xf32>
    %c3_184 = arith.constant 3 : index
    %c0_185 = arith.constant 0 : index
    %c0_186 = arith.constant 0 : index
    %282 = vector.load %arg11[%c3_184, %c0_185, %c0_186] : memref<9x4x16xbf16, #tpu.memory_space<vmem>>, vector<1x4x16xbf16>
    %283 = vector.shape_cast %282 : vector<1x4x16xbf16> to vector<4x16xbf16>
    %284 = arith.truncf %281 : vector<16x512xf32> to vector<16x512xbf16>
    %cst_187 = arith.constant dense<0.000000e+00> : vector<4x512xf32>
    %285 = tpu.matmul %283, %284, %cst_187 {dimension_numbers = #tpu.dot_dimension_numbers<[1], [0], [0], [1], [0, 0, 1, 1], [], []>} : vector<4x16xbf16>, vector<16x512xbf16>, vector<4x512xf32> -> vector<4x512xf32>
    %286 = arith.addf %277, %285 : vector<4x512xf32>
    %c4_188 = arith.constant 4 : index
    %c0_189 = arith.constant 0 : index
    %c0_190 = arith.constant 0 : index
    %287 = vector.load %arg11[%c4_188, %c0_189, %c0_190] : memref<9x4x16xbf16, #tpu.memory_space<vmem>>, vector<1x4x16xbf16>
    %288 = vector.shape_cast %287 : vector<1x4x16xbf16> to vector<4x16xbf16>
    %289 = arith.truncf %249 : vector<16x512xf32> to vector<16x512xbf16>
    %cst_191 = arith.constant dense<0.000000e+00> : vector<4x512xf32>
    %290 = tpu.matmul %288, %289, %cst_191 {dimension_numbers = #tpu.dot_dimension_numbers<[1], [0], [0], [1], [0, 0, 1, 1], [], []>} : vector<4x16xbf16>, vector<16x512xbf16>, vector<4x512xf32> -> vector<4x512xf32>
    %291 = arith.addf %286, %290 : vector<4x512xf32>
    %c511_i32_192 = arith.constant 511 : i32
    %292 = tpu.dynamic_rotate %249 by %c511_i32_192 dim 1 : vector<16x512xf32>, i32 -> vector<16x512xf32>
    %c5_193 = arith.constant 5 : index
    %c0_194 = arith.constant 0 : index
    %293 = vector.load %arg2[%c5_193, %c0_194] : memref<9x512xf32, #tpu.memory_space<vmem>>, vector<1x512xf32>
    %294 = vector.broadcast %293 : vector<1x512xf32> to vector<16x512xf32>
    %295 = arith.mulf %292, %294 : vector<16x512xf32>
    %c5_195 = arith.constant 5 : index
    %c0_196 = arith.constant 0 : index
    %c0_197 = arith.constant 0 : index
    %296 = vector.load %arg11[%c5_195, %c0_196, %c0_197] : memref<9x4x16xbf16, #tpu.memory_space<vmem>>, vector<1x4x16xbf16>
    %297 = vector.shape_cast %296 : vector<1x4x16xbf16> to vector<4x16xbf16>
    %298 = arith.truncf %295 : vector<16x512xf32> to vector<16x512xbf16>
    %cst_198 = arith.constant dense<0.000000e+00> : vector<4x512xf32>
    %299 = tpu.matmul %297, %298, %cst_198 {dimension_numbers = #tpu.dot_dimension_numbers<[1], [0], [0], [1], [0, 0, 1, 1], [], []>} : vector<4x16xbf16>, vector<16x512xbf16>, vector<4x512xf32> -> vector<4x512xf32>
    %300 = arith.addf %291, %299 : vector<4x512xf32>
    %c497_i32_199 = arith.constant 497 : i32
    %301 = tpu.dynamic_rotate %249 by %c497_i32_199 dim 1 : vector<16x512xf32>, i32 -> vector<16x512xf32>
    %c6_200 = arith.constant 6 : index
    %c0_201 = arith.constant 0 : index
    %302 = vector.load %arg2[%c6_200, %c0_201] : memref<9x512xf32, #tpu.memory_space<vmem>>, vector<1x512xf32>
    %303 = vector.broadcast %302 : vector<1x512xf32> to vector<16x512xf32>
    %304 = arith.mulf %301, %303 : vector<16x512xf32>
    %c6_202 = arith.constant 6 : index
    %c0_203 = arith.constant 0 : index
    %c0_204 = arith.constant 0 : index
    %305 = vector.load %arg11[%c6_202, %c0_203, %c0_204] : memref<9x4x16xbf16, #tpu.memory_space<vmem>>, vector<1x4x16xbf16>
    %306 = vector.shape_cast %305 : vector<1x4x16xbf16> to vector<4x16xbf16>
    %307 = arith.truncf %304 : vector<16x512xf32> to vector<16x512xbf16>
    %cst_205 = arith.constant dense<0.000000e+00> : vector<4x512xf32>
    %308 = tpu.matmul %306, %307, %cst_205 {dimension_numbers = #tpu.dot_dimension_numbers<[1], [0], [0], [1], [0, 0, 1, 1], [], []>} : vector<4x16xbf16>, vector<16x512xbf16>, vector<4x512xf32> -> vector<4x512xf32>
    %309 = arith.addf %300, %308 : vector<4x512xf32>
    %c496_i32_206 = arith.constant 496 : i32
    %310 = tpu.dynamic_rotate %249 by %c496_i32_206 dim 1 : vector<16x512xf32>, i32 -> vector<16x512xf32>
    %c7_207 = arith.constant 7 : index
    %c0_208 = arith.constant 0 : index
    %311 = vector.load %arg2[%c7_207, %c0_208] : memref<9x512xf32, #tpu.memory_space<vmem>>, vector<1x512xf32>
    %312 = vector.broadcast %311 : vector<1x512xf32> to vector<16x512xf32>
    %313 = arith.mulf %310, %312 : vector<16x512xf32>
    %c7_209 = arith.constant 7 : index
    %c0_210 = arith.constant 0 : index
    %c0_211 = arith.constant 0 : index
    %314 = vector.load %arg11[%c7_209, %c0_210, %c0_211] : memref<9x4x16xbf16, #tpu.memory_space<vmem>>, vector<1x4x16xbf16>
    %315 = vector.shape_cast %314 : vector<1x4x16xbf16> to vector<4x16xbf16>
    %316 = arith.truncf %313 : vector<16x512xf32> to vector<16x512xbf16>
    %cst_212 = arith.constant dense<0.000000e+00> : vector<4x512xf32>
    %317 = tpu.matmul %315, %316, %cst_212 {dimension_numbers = #tpu.dot_dimension_numbers<[1], [0], [0], [1], [0, 0, 1, 1], [], []>} : vector<4x16xbf16>, vector<16x512xbf16>, vector<4x512xf32> -> vector<4x512xf32>
    %318 = arith.addf %309, %317 : vector<4x512xf32>
    %c495_i32_213 = arith.constant 495 : i32
    %319 = tpu.dynamic_rotate %249 by %c495_i32_213 dim 1 : vector<16x512xf32>, i32 -> vector<16x512xf32>
    %c8_214 = arith.constant 8 : index
    %c0_215 = arith.constant 0 : index
    %320 = vector.load %arg2[%c8_214, %c0_215] : memref<9x512xf32, #tpu.memory_space<vmem>>, vector<1x512xf32>
    %321 = vector.broadcast %320 : vector<1x512xf32> to vector<16x512xf32>
    %322 = arith.mulf %319, %321 : vector<16x512xf32>
    %c8_216 = arith.constant 8 : index
    %c0_217 = arith.constant 0 : index
    %c0_218 = arith.constant 0 : index
    %323 = vector.load %arg11[%c8_216, %c0_217, %c0_218] : memref<9x4x16xbf16, #tpu.memory_space<vmem>>, vector<1x4x16xbf16>
    %324 = vector.shape_cast %323 : vector<1x4x16xbf16> to vector<4x16xbf16>
    %325 = arith.truncf %322 : vector<16x512xf32> to vector<16x512xbf16>
    %cst_219 = arith.constant dense<0.000000e+00> : vector<4x512xf32>
    %326 = tpu.matmul %324, %325, %cst_219 {dimension_numbers = #tpu.dot_dimension_numbers<[1], [0], [0], [1], [0, 0, 1, 1], [], []>} : vector<4x16xbf16>, vector<16x512xbf16>, vector<4x512xf32> -> vector<4x512xf32>
    %327 = arith.addf %318, %326 : vector<4x512xf32>
    %c12 = arith.constant 12 : index
    %c0_220 = arith.constant 0 : index
    %328 = vector.load %arg13[%c12, %c0_220] : memref<16x512xf32, #tpu.memory_space<vmem>>, vector<4x512xf32>
    tpu.vector_store %arg13[%c12, %c0_220], %327 {strides = array<i32>} : memref<16x512xf32, #tpu.memory_space<vmem>>, vector<4x512xf32>,
    %c0_221 = arith.constant 0 : index
    %c0_222 = arith.constant 0 : index
    %329 = vector.load %arg13[%c0_221, %c0_222] : memref<16x512xf32, #tpu.memory_space<vmem>>, vector<16x256xf32>
    %c0_223 = arith.constant 0 : index
    %c0_224 = arith.constant 0 : index
    %c0_225 = arith.constant 0 : index
    %330 = vector.load %arg12[%c0_223, %c0_224, %c0_225] : memref<2x16x256xf32, #tpu.memory_space<vmem>>, vector<1x16x256xf32>
    %331 = vector.shape_cast %330 : vector<1x16x256xf32> to vector<16x256xf32>
    %332 = vector.shape_cast %329 : vector<16x256xf32> to vector<1x16x256xf32>
    tpu.vector_store %arg12[%c0_223, %c0_224, %c0_225], %332 {strides = array<i32>} : memref<2x16x256xf32, #tpu.memory_space<vmem>>, vector<1x16x256xf32>,
    %c0_226 = arith.constant 0 : index
    %c256_227 = arith.constant 256 : index
    %333 = vector.load %arg13[%c0_226, %c256_227] : memref<16x512xf32, #tpu.memory_space<vmem>>, vector<16x256xf32>
    %c1_228 = arith.constant 1 : index
    %c0_229 = arith.constant 0 : index
    %c0_230 = arith.constant 0 : index
    %334 = vector.load %arg12[%c1_228, %c0_229, %c0_230] : memref<2x16x256xf32, #tpu.memory_space<vmem>>, vector<1x16x256xf32>
    %335 = vector.shape_cast %334 : vector<1x16x256xf32> to vector<16x256xf32>
    %336 = vector.shape_cast %333 : vector<16x256xf32> to vector<1x16x256xf32>
    tpu.vector_store %arg12[%c1_228, %c0_229, %c0_230], %336 {strides = array<i32>} : memref<2x16x256xf32, #tpu.memory_space<vmem>>, vector<1x16x256xf32>,
    return
  }
  func.func @transform_0(%arg0: i32) -> (i32, i32, i32) {
    %c0_i32 = arith.constant 0 : i32
    %c0_i32_0 = arith.constant 0 : i32
    %c0_i32_1 = arith.constant 0 : i32
    %c0_i32_2 = arith.constant 0 : i32
    return %c0_i32, %c0_i32_0, %c0_i32_1 : i32, i32, i32
  }
  func.func @transform_1(%arg0: i32) -> (i32, i32) {
    %c0_i32 = arith.constant 0 : i32
    %c0_i32_0 = arith.constant 0 : i32
    %c0_i32_1 = arith.constant 0 : i32
    return %c0_i32, %c0_i32_0 : i32, i32
  }
  func.func @transform_2(%arg0: i32) -> (i32, i32) {
    %c0_i32 = arith.constant 0 : i32
    %c0_i32_0 = arith.constant 0 : i32
    %c0_i32_1 = arith.constant 0 : i32
    return %c0_i32, %c0_i32_0 : i32, i32
  }
  func.func @transform_3(%arg0: i32) -> (i32, i32) {
    %c0_i32 = arith.constant 0 : i32
    %c0_i32_0 = arith.constant 0 : i32
    %c0_i32_1 = arith.constant 0 : i32
    return %c0_i32, %c0_i32_0 : i32, i32
  }
  func.func @transform_4(%arg0: i32) -> (i32, i32, i32) {
    %c0_i32 = arith.constant 0 : i32
    %c0_i32_0 = arith.constant 0 : i32
    %c0_i32_1 = arith.constant 0 : i32
    %c0_i32_2 = arith.constant 0 : i32
    return %c0_i32, %c0_i32_0, %c0_i32_1 : i32, i32, i32
  }
  func.func @transform_5(%arg0: i32) -> (i32, i32) {
    %c0_i32 = arith.constant 0 : i32
    %c0_i32_0 = arith.constant 0 : i32
    %c0_i32_1 = arith.constant 0 : i32
    return %c0_i32, %c0_i32_0 : i32, i32
  }
  func.func @transform_6(%arg0: i32) -> (i32, i32) {
    %c0_i32 = arith.constant 0 : i32
    %c0_i32_0 = arith.constant 0 : i32
    %c0_i32_1 = arith.constant 0 : i32
    return %c0_i32, %c0_i32_0 : i32, i32
  }
  func.func @transform_7(%arg0: i32) -> (i32, i32, i32) {
    %c0_i32 = arith.constant 0 : i32
    %c0_i32_0 = arith.constant 0 : i32
    %c0_i32_1 = arith.constant 0 : i32
    %c0_i32_2 = arith.constant 0 : i32
    return %c0_i32, %c0_i32_0, %c0_i32_1 : i32, i32, i32
  }
  func.func @transform_8(%arg0: i32) -> (i32, i32) {
    %c0_i32 = arith.constant 0 : i32
    %c0_i32_0 = arith.constant 0 : i32
    %c0_i32_1 = arith.constant 0 : i32
    return %c0_i32, %c0_i32_0 : i32, i32
  }
  func.func @transform_9(%arg0: i32) -> (i32, i32) {
    %c0_i32 = arith.constant 0 : i32
    %c0_i32_0 = arith.constant 0 : i32
    %c0_i32_1 = arith.constant 0 : i32
    return %c0_i32, %c0_i32_0 : i32, i32
  }
  func.func @transform_10(%arg0: i32) -> (i32, i32, i32) {
    %c0_i32 = arith.constant 0 : i32
    %c0_i32_0 = arith.constant 0 : i32
    %c0_i32_1 = arith.constant 0 : i32
    %c0_i32_2 = arith.constant 0 : i32
    return %c0_i32, %c0_i32_0, %c0_i32_1 : i32, i32, i32
  }
  func.func @transform_11(%arg0: i32) -> (i32, i32, i32) {
    %c0_i32 = arith.constant 0 : i32
    %c0_i32_0 = arith.constant 0 : i32
    %c0_i32_1 = arith.constant 0 : i32
    %c0_i32_2 = arith.constant 0 : i32
    return %c0_i32, %c0_i32_0, %c0_i32_1 : i32, i32, i32
  }
}

</mosaic_0001>

<bundles_post_ra>
// kernel: dense_block_forward.1
= control target key start
LH: loop header
LB: loop body
LE: loop exit
PB: predicated region body
PF: predicated region fallthrough
CT: control target
= control target key end

     0   :  { %v4416_v0 = vmov 0.0   ;;  %v4417_v19 = vmov 0   ;;  %s4420_s28 = smov 15   ;;  %s4421_s29 = smov 1   ;;  %vm288_vm1 = vcmask 130048   ;;  %s5907_s0 = inlined_call_operand.vmem [shape: f32[2,4,256], index: 0, kind: input, shape index: {}]   ;;  %s5908_s2 = inlined_call_operand.vmem [shape: f32[16,1], index: 2, kind: input, shape index: {}]   ;;  %s5909_s3 = inlined_call_operand.vmem [shape: f32[16,1], index: 3, kind: input, shape index: {}]   ;;  %s5910_s1 = inlined_call_operand.vmem [shape: f32[9,512], index: 1, kind: input, shape index: {}]   ;;  %s5911_s4 = inlined_call_operand.vmem [shape: bf16[9,4,16], index: 4, kind: input, shape index: {}]   ;;  %s5912_s11 = inlined_call_operand.vmem [shape: f32[2,16,256], index: 11, kind: output, shape index: {}]   ;;  %s5913_s5 = inlined_call_operand.vmem [shape: f32[16,1], index: 5, kind: input, shape index: {}]   ;;  %s5914_s6 = inlined_call_operand.vmem [shape: f32[16,1], index: 6, kind: input, shape index: {}]   ;;  %s5915_s7 = inlined_call_operand.vmem [shape: bf16[9,4,16], index: 7, kind: input, shape index: {}]   ;;  %s5916_s8 = inlined_call_operand.vmem [shape: f32[16,1], index: 8, kind: input, shape index: {}]   ;;  %s5917_s9 = inlined_call_operand.vmem [shape: f32[16,1], index: 9, kind: input, shape index: {}]   ;;  %s5918_s10 = inlined_call_operand.vmem [shape: bf16[9,4,16], index: 10, kind: input, shape index: {}]  }
   0x1   :  { %39 = vst [vmem:[#allocation2 + $0x30] sm:$0xf0] %v4416_v0  ;;  %40 = vst [vmem:[#allocation2] sm:$0xf0] %v4416_v0  ;;  %v47_v1 = vld [vmem:[%s5907_s0] sm:$0xff]  ;;  %v4281_v2 = vld [vmem:[%s5907_s0 + $0x8] sm:$0xff]  ;;  %4395 = vset.pattern.permute.xlu0 %v4417_v19  ;;  %4396 = vset.pattern.permute.xlu1 %v4417_v19 }
   0x2   :  { %41 = vst [vmem:[#allocation2 + $0x18] sm:$0xf0] %v4416_v0  ;;  %42 = vst [vmem:[#allocation2 + $0x10] sm:$0xf0] %v4416_v0  ;;  %v49_v3 = vcombine.high %v47_v1, %v47_v1  ;;  %v56_v4 = vcombine.high %v4281_v2, %v4281_v2  ;;  %324 = vmatprep.mubr.bf16.mxu0 %v4417_v19  ;;  %365 = vmatprep.mubr.bf16.mxu1 %v4417_v19  ;;  %v106_v36 = vld [vmem:[%s5908_s2] sm:$0xff]  ;;  %v107_v39 = vld [vmem:[%s5908_s2 + $0x8] sm:$0xff] }
   0x3   :  { %43 = vst [vmem:[#allocation2 + $0x8] sm:$0xff] %v4416_v0  ;;  %44 = vst [vmem:[#allocation2 + $0x20] sm:$0xff] %v4416_v0  ;;  %v115_v42 = vld [vmem:[%s5909_s3 + $0x8] sm:$0xff]  ;;  %v114_v46 = vld [vmem:[%s5909_s3] sm:$0xff]  ;;  %s4418_s2 = smov 16   ;;  %s4419_s3 = smov 17  }
   0x4   :  { %45 = vst [vmem:[#allocation2 + $0x28] sm:$0xff] %v4416_v0  ;;  %46 = vst [vmem:[#allocation2 + $0x38] sm:$0xff] %v4416_v0  ;;  %s4422_s30 = smov 127   ;;  %s4423_s12 = smov 113  }
   0x5   :  { %51 = vst [vmem:[#allocation2 + $0x30] sm:$0xf] %v47_v1  ;;  %58 = vst [vmem:[#allocation2 + $0x18] sm:$0xf] %v4281_v2  ;;  %s4424_s13 = smov 112   ;;  %s4425_s14 = smov 111  }
   0x6   :  { %52 = vst [vmem:[#allocation2] sm:$0xf] %v49_v3  ;;  %59 = vst [vmem:[#allocation2 + $0x10] sm:$0xf] %v56_v4 }
   0xc   :  { %v4492_v5 = vld [vmem:[#allocation2 + $0x30] sm:$0xff]  ;;  %v4494_v6 = vld [vmem:[#allocation2 + $0x18] sm:$0xff] }
   0xd   :  { %v78_v7 = vmul.f32 %v4492_v5, %v4492_v5  ;;  %v4498_v8 = vld [vmem:[#allocation2] sm:$0xff]  ;;  %v4500_v9 = vld [vmem:[#allocation2 + $0x10] sm:$0xff]  ;;  %v80_v12 = vmul.f32 %v4494_v6, %v4494_v6 }
   0xe   :  { %v68_v10 = vadd.f32 %v4498_v8, %v4492_v5  ;;  %v79_v11 = vmul.f32 %v4498_v8, %v4498_v8  ;;  %v81_v14 = vmul.f32 %v4500_v9, %v4500_v9 }
  0x10   :  { %v69_v13 = vadd.f32 %v68_v10, %v4494_v6  ;;  %v86_v15 = vadd.f32 %v79_v11, %v78_v7 }
  0x12   :  { %v70_v16 = vadd.f32 %v69_v13, %v4500_v9  ;;  %v87_v17 = vadd.f32 %v86_v15, %v80_v12  ;;  %v4282_v13 = vld [vmem:[%s5910_s1 + $0x1] ss:$8 sm:$0xf] }
  0x14   :  { %71 = vadd.xlane.f32.xlu0 %v70_v16  ;;  %v88_v18 = vadd.f32 %v87_v17, %v81_v14 }
  0x16   :  { %89 = vadd.xlane.f32.xlu1 %v88_v18 }
  0x18   :  { %76 = vadd.xlane.f32.xlu0 %v4416_v0 }
  0x1a   :  { %94 = vadd.xlane.f32.xlu1 %v4416_v0 }
  0x9d   :  { %v72_v20 = vpop.xlane.xlu0 %71 }
  0x9e   :  { %v96_v21 = vmul.f32 0.001953125, %v72_v20 }
  0x9f   :  { %v90_v22 = vpop.xlane.xlu1 %89 }
  0xa0   :  { %v100_v23 = vmul.f32 %v96_v21, %v96_v21  ;;  %v98_v24 = vmul.f32 0.001953125, %v90_v22 }
  0xa1   :  { %v77_v25 = vpop.xlane.xlu0 %76 }
  0xa2   :  { %v102_v26 = vsub.f32 %v98_v24, %v100_v23  ;;  %v97_v27 = vmul.f32 0.001953125, %v77_v25 }
  0xa3   :  { %v95_v28 = vpop.xlane.xlu1 %94 }
  0xa4   :  { %v104_v29 = vmax.f32 %v102_v26, 0.0  ;;  %v101_v30 = vmul.f32 %v97_v27, %v97_v27  ;;  %v99_v31 = vmul.f32 0.001953125, %v95_v28 }
  0xa6   :  { %v108_v32 = vadd.f32 1e-05, %v104_v29  ;;  %v103_v33 = vsub.f32 %v99_v31, %v101_v30 }
  0xa8   :  { %4399 = vrsqrt.f32 %v108_v32  ;;  %v105_v34 = vmax.f32 %v103_v33, 0.0 }
  0xaa   :  { %v109_v35 = vadd.f32 1e-05, %v105_v34 }
  0xac   :  { %4401 = vrsqrt.f32 %v109_v35 }
  0xb5   :  { %v4400_v37 = vpop.eup %4399 }
  0xb6   :  { %v112_v38 = vmul.f32 %v4400_v37, %v106_v36 }
  0xb8   :  { %122 = vperm.xlu0 %4395, %v112_v38   ;;  %v116_v45 = vmul.f32 %v112_v38, %v96_v21 }
  0xb9   :  { %v4402_v40 = vpop.eup %4401 }
  0xba   :  { %v113_v41 = vmul.f32 %v4402_v40, %v107_v39  ;;  %v118_v47 = vsub.f32 %v114_v46, %v116_v45  ;;  %v4283_v46 = vld [vmem:[%s5911_s4 + $0x2] sm:$0x3] }
  0xbc   :  { %127 = vperm.xlu1 %4396, %v113_v41   ;;  %v117_v43 = vmul.f32 %v113_v41, %v97_v27 }
  0xbe   :  { %v119_v44 = vsub.f32 %v115_v42, %v117_v43 }
  0xc0   :  { %145 = vperm.xlu1 %4396, %v119_v44  }
  0xc4   :  { %140 = vperm.xlu1 %4396, %v118_v47   ;;  %v191_v47 = vld [vmem:[%s5910_s1] ss:$8 sm:$0xf] }
 0x133   :  { %v123_v52 = vpop.permute.xlu0 %122 }
 0x134   :  { %v130_v55 = vmul.f32 %v123_v52, %v4492_v5  ;;  %v131_v57 = vmul.f32 %v123_v52, %v4498_v8  ;;  %v133_v60 = vmul.f32 %v123_v52, %v4500_v9  ;;  %v132_v63 = vmul.f32 %v123_v52, %v4494_v6 }
 0x135   :  { %v180_v5 = vlaneseq }
 0x137   :  { %v128_v48 = vpop.permute.xlu1 %127  ;;  %v194_v8 = vshrl.u32 %v180_v5, 7  ;;  %v4662_v9 = vand.u32 127, %v180_v5 }
 0x138   :  { %v134_v49 = vmul.f32 0.0, %v128_v48 }
 0x139   :  { %v4666_v10 = vsub.s32 1, %v194_v8  ;;  %vm242_vm0 = vcmp.lt.s32.totalorder %v4662_v9, 16  ;;  %v4676_v14 = vsub.s32 0, %v194_v8  ;;  %v4683_v20 = vsub.s32 3, %v194_v8 }
 0x13a   :  { %v4689_v22 = vsub.s32 2, %v194_v8  ;;  %vm182_vm2 = vcmp.lt.s32.totalorder %v4662_v9, 17  ;;  %vm475_vm3 = vcmp.lt.s32.totalorder %v4662_v9, 15  ;;  %vm626_vm4 = vcmp.lt.s32.totalorder %v4662_v9, 1 }
 0x13b   :  { %v146_v50 = vpop.permute.xlu1 %145  ;;  %v261_v15 = vrot.slane %v4282_v13, %v4666_v10  ;;  %v257_v25 = vrot.slane %v4282_v13, %v4676_v14  ;;  %v269_v31 = vrot.slane %v4282_v13, %v4683_v20  ;;  %v200_v52 = vrot.slane %v191_v47, %v4666_v10 }
 0x13c   :  { %v152_v51 = vadd.f32 %v146_v50, %v134_v49  ;;  %v265_v34 = vrot.slane %v4282_v13, %v4689_v22  ;;  %v208_v8 = vrot.slane %v191_v47, %v4683_v20  ;;  %vm872_vm5 = vcmp.lt.s32.totalorder %v4662_v9, 127 }
 0x13d   :  { %vm1023_vm6 = vcmp.lt.s32.totalorder %v4662_v9, 113  ;;  %vm1174_vm7 = vcmp.lt.s32.totalorder %v4662_v9, 112  ;;  %vm1325_vm8 = vcmp.lt.s32.totalorder %v4662_v9, 111 }
 0x13e   :  { %v4528_v53 = vmax.f32 %v152_v51, 0.0 }
 0x13f   :  { %v141_v54 = vpop.permute.xlu1 %140 }
 0x140   :  { %240 = vrot.lane.b32.xlu0 %v4528_v53, %s4418_s2  ;;  %228 = vrot.lane.b32.xlu1 %v4528_v53, %s4418_s2  ;;  %v148_v56 = vadd.f32 %v141_v54, %v130_v55  ;;  %v149_v58 = vadd.f32 %v141_v54, %v131_v57  ;;  %v151_v61 = vadd.f32 %v141_v54, %v133_v60 }
 0x141   :  { %v150_v0 = vadd.f32 %v141_v54, %v132_v63  ;;  %v196_v60 = vrot.slane %v191_v47, %v4676_v14 }
 0x142   :  { %v4540_v59 = vmax.f32 %v148_v56, 0.0  ;;  %v4547_v62 = vmax.f32 %v149_v58, 0.0  ;;  %v4554_v1 = vmax.f32 %v151_v61, 0.0 }
 0x143   :  { %v4560_v2 = vmax.f32 %v150_v0, 0.0 }
 0x144   :  { %236 = vrot.lane.b32.xlu0 %v4528_v53, %s4418_s2  ;;  %232 = vrot.lane.b32.xlu1 %v4528_v53, %s4418_s2 }
 0x148   :  { %166 = vrot.lane.b32.xlu0 %v4528_v53, %s4419_s3  ;;  %226 = vrot.lane.b32.xlu1 %v4540_v59, %s4418_s2 }
 0x14c   :  { %170 = vrot.lane.b32.xlu0 %v4528_v53, %s4419_s3  ;;  %230 = vrot.lane.b32.xlu1 %v4547_v62, %s4418_s2 }
 0x150   :  { %178 = vrot.lane.b32.xlu0 %v4528_v53, %s4419_s3  ;;  %238 = vrot.lane.b32.xlu1 %v4554_v1, %s4418_s2 }
 0x154   :  { %174 = vrot.lane.b32.xlu0 %v4528_v53, %s4419_s3  ;;  %234 = vrot.lane.b32.xlu1 %v4560_v2, %s4418_s2 }
 0x158   :  { %461 = vrot.lane.b32.xlu0 %v4528_v53, %s4420_s28  ;;  %164 = vrot.lane.b32.xlu1 %v4540_v59, %s4419_s3 }
 0x15c   :  { %465 = vrot.lane.b32.xlu0 %v4528_v53, %s4420_s28  ;;  %168 = vrot.lane.b32.xlu1 %v4547_v62, %s4419_s3 }
 0x160   :  { %473 = vrot.lane.b32.xlu0 %v4528_v53, %s4420_s28  ;;  %176 = vrot.lane.b32.xlu1 %v4554_v1, %s4419_s3 }
 0x164   :  { %469 = vrot.lane.b32.xlu0 %v4528_v53, %s4420_s28  ;;  %172 = vrot.lane.b32.xlu1 %v4560_v2, %s4419_s3 }
 0x168   :  { %612 = vrot.lane.b32.xlu0 %v4528_v53, %s4421_s29  ;;  %459 = vrot.lane.b32.xlu1 %v4540_v59, %s4420_s28 }
 0x16c   :  { %616 = vrot.lane.b32.xlu0 %v4528_v53, %s4421_s29  ;;  %463 = vrot.lane.b32.xlu1 %v4547_v62, %s4420_s28 }
 0x170   :  { %624 = vrot.lane.b32.xlu0 %v4528_v53, %s4421_s29  ;;  %471 = vrot.lane.b32.xlu1 %v4554_v1, %s4420_s28 }
 0x174   :  { %620 = vrot.lane.b32.xlu0 %v4528_v53, %s4421_s29  ;;  %467 = vrot.lane.b32.xlu1 %v4560_v2, %s4420_s28 }
 0x178   :  { %862 = vrot.lane.b32.xlu0 %v4528_v53, %s4422_s30  ;;  %610 = vrot.lane.b32.xlu1 %v4540_v59, %s4421_s29 }
 0x17c   :  { %866 = vrot.lane.b32.xlu0 %v4528_v53, %s4422_s30  ;;  %614 = vrot.lane.b32.xlu1 %v4547_v62, %s4421_s29 }
 0x180   :  { %858 = vrot.lane.b32.xlu0 %v4528_v53, %s4422_s30  ;;  %622 = vrot.lane.b32.xlu1 %v4554_v1, %s4421_s29 }
 0x184   :  { %870 = vrot.lane.b32.xlu0 %v4528_v53, %s4422_s30  ;;  %618 = vrot.lane.b32.xlu1 %v4560_v2, %s4421_s29 }
 0x188   :  { %1013 = vrot.lane.b32.xlu0 %v4528_v53, %s4423_s12  ;;  %860 = vrot.lane.b32.xlu1 %v4547_v62, %s4422_s30 }
 0x18c   :  { %1017 = vrot.lane.b32.xlu0 %v4528_v53, %s4423_s12  ;;  %864 = vrot.lane.b32.xlu1 %v4560_v2, %s4422_s30 }
 0x190   :  { %1009 = vrot.lane.b32.xlu0 %v4528_v53, %s4423_s12  ;;  %856 = vrot.lane.b32.xlu1 %v4540_v59, %s4422_s30 }
 0x194   :  { %1021 = vrot.lane.b32.xlu0 %v4528_v53, %s4423_s12  ;;  %868 = vrot.lane.b32.xlu1 %v4554_v1, %s4422_s30 }
 0x198   :  { %1164 = vrot.lane.b32.xlu0 %v4528_v53, %s4424_s13  ;;  %1011 = vrot.lane.b32.xlu1 %v4547_v62, %s4423_s12 }
 0x19c   :  { %1168 = vrot.lane.b32.xlu0 %v4528_v53, %s4424_s13  ;;  %1015 = vrot.lane.b32.xlu1 %v4560_v2, %s4423_s12 }
 0x1a0   :  { %1160 = vrot.lane.b32.xlu0 %v4528_v53, %s4424_s13  ;;  %1007 = vrot.lane.b32.xlu1 %v4540_v59, %s4423_s12 }
 0x1a4   :  { %1172 = vrot.lane.b32.xlu0 %v4528_v53, %s4424_s13  ;;  %1019 = vrot.lane.b32.xlu1 %v4554_v1, %s4423_s12 }
 0x1a8   :  { %1315 = vrot.lane.b32.xlu0 %v4528_v53, %s4425_s14  ;;  %1162 = vrot.lane.b32.xlu1 %v4547_v62, %s4424_s13 }
 0x1ac   :  { %1319 = vrot.lane.b32.xlu0 %v4528_v53, %s4425_s14  ;;  %1166 = vrot.lane.b32.xlu1 %v4560_v2, %s4424_s13 }
 0x1b0   :  { %1311 = vrot.lane.b32.xlu0 %v4528_v53, %s4425_s14  ;;  %1158 = vrot.lane.b32.xlu1 %v4540_v59, %s4424_s13 }
 0x1b2   :  { %v241_v3 = vpop.permute.xlu0 %240  ;;  %v229_v4 = vpop.permute.xlu1 %228 }
 0x1b3   :  { %v250_v26 = vsel %vm242_vm0, %v241_v3, %v229_v4 }
 0x1b4   :  { %1323 = vrot.lane.b32.xlu0 %v4528_v53, %s4425_s14  ;;  %1170 = vrot.lane.b32.xlu1 %v4554_v1, %s4424_s13  ;;  %v278_v33 = vmul.f32 %v257_v25, %v250_v26 }
 0x1b6   :  { %v237_v6 = vpop.permute.xlu0 %236  ;;  %v233_v7 = vpop.permute.xlu1 %232 }
 0x1b7   :  { %v248_v17 = vsel %vm242_vm0, %v229_v4, %v233_v7  ;;  %v246_v35 = vsel %vm242_vm0, %v233_v7, %v237_v6  ;;  %v244_v37 = vsel %vm242_vm0, %v237_v6, %v241_v3  ;;  %v204_v7 = vrot.slane %v191_v47, %v4689_v22 }
 0x1b8   :  { %1313 = vrot.lane.b32.xlu1 %v4547_v62, %s4425_s14  ;;  %v279_v24 = vmul.f32 %v261_v15, %v248_v17  ;;  %v281_v43 = vmul.f32 %v269_v31, %v244_v37  ;;  %v280_v45 = vmul.f32 %v265_v34, %v246_v35 }
 0x1ba   :  { %v4668_v11 = vpop.permute.xlu0 %166  ;;  %v227_v12 = vpop.permute.xlu1 %226 }
 0x1bc   :  { %1317 = vrot.lane.b32.xlu1 %v4560_v2, %s4425_s14 }
 0x1be   :  { %v4679_v16 = vpop.permute.xlu0 %170  ;;  %v231_v18 = vpop.permute.xlu1 %230 }
 0x1bf   :  { %v247_v21 = vsel %vm242_vm0, %v227_v12, %v231_v18  ;;  %v188_v54 = vsel %vm182_vm2, %v4668_v11, %v4679_v16 }
 0x1c0   :  { %1309 = vrot.lane.b32.xlu1 %v4540_v59, %s4425_s14  ;;  %v275_v23 = vmul.f32 %v261_v15, %v247_v21  ;;  %v218_v58 = vmul.f32 %v200_v52, %v188_v54 }
 0x1c2   :  { %v179_v27 = vpop.permute.xlu0 %178  ;;  %v239_v28 = vpop.permute.xlu1 %238  ;;  %v285_v29 = vpack.c.bf16 %v279_v24, %v275_v23 }
 0x1c3   :  { %v249_v30 = vsel %vm242_vm0, %v239_v28, %v227_v12  ;;  %v190_v63 = vsel %vm182_vm2, %v179_v27, %v4668_v11 }
 0x1c4   :  { %1321 = vrot.lane.b32.xlu1 %v4554_v1, %s4425_s14  ;;  %306 = vmatprep.subr.bf16.mxu0 %v285_v29  ;;  %v274_v32 = vmul.f32 %v257_v25, %v249_v30  ;;  %v217_v6 = vmul.f32 %v196_v60, %v190_v63 }
 0x1c6   :  { %v175_v36 = vpop.permute.xlu0 %174  ;;  %v235_v38 = vpop.permute.xlu1 %234  ;;  %v284_v39 = vpack.c.bf16 %v278_v33, %v274_v32 }
 0x1c7   :  { %v245_v40 = vsel %vm242_vm0, %v231_v18, %v235_v38  ;;  %v243_v41 = vsel %vm242_vm0, %v235_v38, %v239_v28  ;;  %v184_v13 = vsel %vm182_vm2, %v175_v36, %v179_v27  ;;  %v186_v11 = vsel %vm182_vm2, %v4679_v16, %v175_v36  ;;  %v221_v27 = vld [vmem:[%s5911_s4] sm:$0x3]  ;;  %v4288_v16 = vld [vmem:[%s5910_s1 + $0x2] ss:$8 sm:$0xf] }
 0x1c8   :  { %307 = vmatpush1.bf16.msra.mxu0 %v284_v39  ;;  %v277_v42 = vmul.f32 %v269_v31, %v243_v41  ;;  %v276_v44 = vmul.f32 %v265_v34, %v245_v40  ;;  %v219_v24 = vmul.f32 %v204_v7, %v186_v11  ;;  %v220_v25 = vmul.f32 %v208_v8, %v184_v13 }
 0x1c9   :  { %v494_v33 = vrot.slane %v4288_v16, %v4666_v10  ;;  %v490_v39 = vrot.slane %v4288_v16, %v4676_v14  ;;  %v498_v47 = vrot.slane %v4288_v16, %v4689_v22 }
 0x1ca   :  { %v462_v48 = vpop.permute.xlu0 %461  ;;  %v165_v49 = vpop.permute.xlu1 %164  ;;  %v287_v50 = vpack.c.bf16 %v281_v43, %v277_v42  ;;  %v286_v51 = vpack.c.bf16 %v280_v45, %v276_v44 }
 0x1cb   :  { %4284 = vmatmul.mubr.msk.bf16.vlgmr.msra.gmra.mxu0 %vm288_vm1, %v4283_v46 }
 0x1cc   :  { %347 = vmatprep.subr.bf16.mxu1 %v287_v50  ;;  %409 = vmatprep.mubr.bf16.mxu0 %v4417_v19 }
 0x1cd   :  { %348 = vmatpush1.bf16.msra.mxu1 %v286_v51 }
 0x1ce   :  { %v4722_v55 = vpop.permute.xlu0 %465  ;;  %v169_v56 = vpop.permute.xlu1 %168 }
 0x1cf   :  { %v187_v57 = vsel %vm182_vm2, %v165_v49, %v169_v56  ;;  %v481_v34 = vsel %vm475_vm3, %v462_v48, %v4722_v55 }
 0x1d0   :  { %v214_v61 = vmul.f32 %v200_v52, %v187_v57  ;;  %4285 = vmatmul.mubr.msk.bf16.vlgmr.msra.gmra.mxu1 %vm288_vm1, %v4283_v46  ;;  %v512_v38 = vmul.f32 %v494_v33, %v481_v34 }
 0x1d1   :  { %450 = vmatprep.mubr.bf16.mxu1 %v4417_v19 }
 0x1d2   :  { %v474_v0 = vpop.permute.xlu0 %473  ;;  %v177_v3 = vpop.permute.xlu1 %176  ;;  %v223_v4 = vpack.c.bf16 %v218_v58, %v214_v61 }
 0x1d3   :  { %v189_v5 = vsel %vm182_vm2, %v177_v3, %v165_v49  ;;  %v483_v41 = vsel %vm475_vm3, %v474_v0, %v462_v48  ;;  %v502_v49 = vrot.slane %v4288_v16, %v4683_v20 }
 0x1d4   :  { %v213_v12 = vmul.f32 %v196_v60, %v189_v5  ;;  %391 = vmatprep.subr.bf16.mxu0 %v223_v4  ;;  %v511_v46 = vmul.f32 %v490_v39, %v483_v41 }
 0x1d6   :  { %v470_v15 = vpop.permute.xlu0 %469  ;;  %v222_v17 = vpack.c.bf16 %v217_v6, %v213_v12  ;;  %v173_v18 = vpop.permute.xlu1 %172 }
 0x1d7   :  { %v183_v21 = vsel %vm182_vm2, %v173_v18, %v177_v3  ;;  %v185_v23 = vsel %vm182_vm2, %v169_v56, %v173_v18  ;;  %v477_v51 = vsel %vm475_vm3, %v470_v15, %v474_v0  ;;  %v479_v48 = vsel %vm475_vm3, %v4722_v55, %v470_v15  ;;  %v4289_v0 = vld [vmem:[%s5911_s4 + $0x4] sm:$0x3]  ;;  %v4292_v55 = vld [vmem:[%s5910_s1 + $0x3] ss:$8 sm:$0xf] }
 0x1d8   :  { %v215_v26 = vmul.f32 %v204_v7, %v185_v23  ;;  %v216_v28 = vmul.f32 %v208_v8, %v183_v21  ;;  %392 = vmatpush1.bf16.msra.mxu0 %v222_v17  ;;  %v513_v60 = vmul.f32 %v498_v47, %v479_v48  ;;  %v514_v61 = vmul.f32 %v502_v49, %v477_v51 }
 0x1d9   :  { %v645_v8 = vrot.slane %v4292_v55, %v4666_v10  ;;  %v641_v18 = vrot.slane %v4292_v55, %v4676_v14  ;;  %v649_v16 = vrot.slane %v4292_v55, %v4689_v22  ;;  %v766_v51 = vpack.c.bf16 %v4528_v53, %v4554_v1 }
 0x1da   :  { %v613_v29 = vpop.permute.xlu0 %612  ;;  %v224_v30 = vpack.c.bf16 %v219_v24, %v215_v26  ;;  %v460_v31 = vpop.permute.xlu1 %459  ;;  %v225_v32 = vpack.c.bf16 %v220_v25, %v216_v28 }
 0x1db   :  { %4286 = vmatmul.mubr.msk.bf16.vlgmr.msra.gmra.mxu0 %vm288_vm1, %v221_v27 }
 0x1dc   :  { %432 = vmatprep.subr.bf16.mxu1 %v225_v32  ;;  %556 = vmatprep.mubr.bf16.mxu0 %v4417_v19 }
 0x1dd   :  { %433 = vmatpush1.bf16.msra.mxu1 %v224_v30  ;;  %v653_v30 = vrot.slane %v4292_v55, %v4683_v20 }
 0x1de   :  { %v4758_v35 = vpop.permute.xlu0 %616  ;;  %v464_v36 = vpop.permute.xlu1 %463 }
 0x1df   :  { %v480_v37 = vsel %vm475_vm3, %v460_v31, %v464_v36  ;;  %v632_v12 = vsel %vm626_vm4, %v613_v29, %v4758_v35 }
 0x1e0   :  { %v508_v40 = vmul.f32 %v494_v33, %v480_v37  ;;  %4287 = vmatmul.mubr.msk.bf16.vlgmr.msra.gmra.mxu1 %vm288_vm1, %v221_v27  ;;  %v663_v17 = vmul.f32 %v645_v8, %v632_v12 }
 0x1e1   :  { %597 = vmatprep.mubr.bf16.mxu1 %v4417_v19 }
 0x1e2   :  { %v625_v42 = vpop.permute.xlu0 %624  ;;  %v472_v43 = vpop.permute.xlu1 %471  ;;  %v518_v44 = vpack.c.bf16 %v512_v38, %v508_v40 }
 0x1e3   :  { %v482_v45 = vsel %vm475_vm3, %v472_v43, %v460_v31  ;;  %v634_v23 = vsel %vm626_vm4, %v625_v42, %v613_v29 }
 0x1e4   :  { %v507_v50 = vmul.f32 %v490_v39, %v482_v45  ;;  %538 = vmatprep.subr.bf16.mxu0 %v518_v44  ;;  %v662_v27 = vmul.f32 %v641_v18, %v634_v23  ;;  %v764_v39 = vpack.c.bf16 %v4528_v53, %v4547_v62  ;;  %v4299_v44 = vld [vmem:[%s5910_s1 + $0x5] ss:$8 sm:$0xf] }
 0x1e5   :  { %v887_v1 = vrot.slane %v4299_v44, %v4676_v14 }
 0x1e6   :  { %v621_v52 = vpop.permute.xlu0 %620  ;;  %v517_v54 = vpack.c.bf16 %v511_v46, %v507_v50  ;;  %v468_v56 = vpop.permute.xlu1 %467  ;;  %v891_v50 = vrot.slane %v4299_v44, %v4666_v10 }
 0x1e7   :  { %v476_v57 = vsel %vm475_vm3, %v468_v56, %v472_v43  ;;  %v478_v58 = vsel %vm475_vm3, %v464_v36, %v468_v56  ;;  %v628_v32 = vsel %vm626_vm4, %v621_v52, %v625_v42  ;;  %v630_v29 = vsel %vm626_vm4, %v4758_v35, %v621_v52  ;;  %v4293_v35 = vld [vmem:[%s5911_s4 + $0x6] sm:$0x3] }
 0x1e8   :  { %v509_v63 = vmul.f32 %v498_v47, %v478_v58  ;;  %v510_v3 = vmul.f32 %v502_v49, %v476_v57  ;;  %539 = vmatpush1.bf16.msra.mxu0 %v517_v54  ;;  %v664_v40 = vmul.f32 %v649_v16, %v630_v29  ;;  %v665_v41 = vmul.f32 %v653_v30, %v628_v32 }
 0x1e9   :  { %v763_v49 = vpack.c.bf16 %v4528_v53, %v4540_v59  ;;  %v765_v56 = vpack.c.bf16 %v4528_v53, %v4560_v2 }
 0x1ea   :  { %v4786_v4 = vpop.permute.xlu0 %862  ;;  %v519_v5 = vpack.c.bf16 %v513_v60, %v509_v63  ;;  %v611_v6 = vpop.permute.xlu1 %610  ;;  %v520_v7 = vpack.c.bf16 %v514_v61, %v510_v3  ;;  %v4296_v60 = vld [vmem:[%s5911_s4 + $0x8] sm:$0x3]  ;;  %v895_v3 = vrot.slane %v4299_v44, %v4689_v22 }
 0x1eb   :  { %4290 = vmatmul.mubr.msk.bf16.vlgmr.msra.gmra.mxu0 %vm288_vm1, %v4289_v0 }
 0x1ec   :  { %579 = vmatprep.subr.bf16.mxu1 %v520_v7  ;;  %707 = vmatprep.mubr.bf16.mxu0 %v4417_v19 }
 0x1ed   :  { %580 = vmatpush1.bf16.msra.mxu1 %v519_v5 }
 0x1ee   :  { %v4795_v13 = vpop.permute.xlu0 %866  ;;  %v615_v11 = vpop.permute.xlu1 %614 }
 0x1ef   :  { %v631_v15 = vsel %vm626_vm4, %v611_v6, %v615_v11  ;;  %v876_v48 = vsel %vm872_vm5, %v4786_v4, %v4795_v13 }
 0x1f0   :  { %v659_v21 = vmul.f32 %v645_v8, %v631_v15  ;;  %4291 = vmatmul.mubr.msk.bf16.vlgmr.msra.gmra.mxu1 %vm288_vm1, %v4289_v0  ;;  %v909_v57 = vmul.f32 %v891_v50, %v876_v48  ;;  %v899_v0 = vrot.slane %v4299_v44, %v4683_v20 }
 0x1f1   :  { %748 = vmatprep.mubr.bf16.mxu1 %v4417_v19 }
 0x1f2   :  { %v4803_v24 = vpop.permute.xlu0 %858  ;;  %v623_v25 = vpop.permute.xlu1 %622  ;;  %v669_v26 = vpack.c.bf16 %v663_v17, %v659_v21 }
 0x1f3   :  { %v633_v28 = vsel %vm626_vm4, %v623_v25, %v611_v6  ;;  %v878_v61 = vsel %vm872_vm5, %v4803_v24, %v4786_v4 }
 0x1f4   :  { %v658_v31 = vmul.f32 %v641_v18, %v633_v28  ;;  %689 = vmatprep.subr.bf16.mxu0 %v669_v26  ;;  %v908_v5 = vmul.f32 %v887_v1, %v878_v61 }
 0x1f6   :  { %v871_v33 = vpop.permute.xlu0 %870  ;;  %v668_v34 = vpack.c.bf16 %v662_v27, %v658_v31  ;;  %v619_v36 = vpop.permute.xlu1 %618 }
 0x1f7   :  { %v627_v37 = vsel %vm626_vm4, %v619_v36, %v623_v25  ;;  %v629_v38 = vsel %vm626_vm4, %v615_v11, %v619_v36  ;;  %v874_v4 = vsel %vm872_vm5, %v4795_v13, %v871_v33  ;;  %v880_v7 = vsel %vm872_vm5, %v871_v33, %v4803_v24  ;;  %v4300_v24 = vld [vmem:[%s5911_s4 + $0xa] sm:$0x3]  ;;  %v4303_v25 = vld [vmem:[%s5910_s1 + $0x6] ss:$8 sm:$0xf] }
 0x1f8   :  { %v660_v43 = vmul.f32 %v649_v16, %v629_v38  ;;  %v661_v42 = vmul.f32 %v653_v30, %v627_v37  ;;  %690 = vmatpush1.bf16.msra.mxu0 %v668_v34  ;;  %v910_v15 = vmul.f32 %v895_v3, %v874_v4  ;;  %v911_v21 = vmul.f32 %v899_v0, %v880_v7 }
 0x1f9   :  { %784 = vmatprep.subr.bf16.mxu0 %v764_v39  ;;  %v1042_v30 = vrot.slane %v4303_v25, %v4666_v10  ;;  %v1038_v36 = vrot.slane %v4303_v25, %v4676_v14 }
 0x1fa   :  { %v4827_v45 = vpop.permute.xlu0 %1013  ;;  %v670_v46 = vpack.c.bf16 %v664_v40, %v660_v43  ;;  %v861_v62 = vpop.permute.xlu1 %860  ;;  %v671_v47 = vpack.c.bf16 %v665_v41, %v661_v42  ;;  %v1046_v42 = vrot.slane %v4303_v25, %v4689_v22 }
 0x1fb   :  { %4294 = vmatmul.mubr.msk.bf16.vlgmr.msra.gmra.mxu0 %vm288_vm1, %v4293_v35 }
 0x1fc   :  { %730 = vmatprep.subr.bf16.mxu1 %v671_v47  ;;  %785 = vmatpush1.bf16.msra.mxu0 %v763_v49 }
 0x1fd   :  { %731 = vmatpush1.bf16.msra.mxu1 %v670_v46  ;;  %802 = vmatprep.mubr.bf16.mxu0 %v4417_v19 }
 0x1fe   :  { %v4840_v52 = vpop.permute.xlu0 %1017  ;;  %v865_v59 = vpop.permute.xlu1 %864  ;;  %825 = vmatprep.subr.bf16.mxu1 %v766_v51 }
 0x1ff   :  { %v875_v54 = vsel %vm872_vm5, %v861_v62, %v865_v59  ;;  %v1027_v31 = vsel %vm1023_vm6, %v4827_v45, %v4840_v52 }
 0x200   :  { %v905_v58 = vmul.f32 %v891_v50, %v875_v54  ;;  %4295 = vmatmul.mubr.msk.bf16.vlgmr.msra.gmra.mxu1 %vm288_vm1, %v4293_v35  ;;  %v1060_v34 = vmul.f32 %v1042_v30, %v1027_v31  ;;  %v1050_v35 = vrot.slane %v4303_v25, %v4683_v20 }
 0x201   :  { %826 = vmatpush1.bf16.msra.mxu1 %v765_v56  ;;  %843 = vmatprep.mubr.bf16.mxu1 %v4417_v19 }
 0x202   :  { %v1010_v63 = vpop.permute.xlu0 %1009  ;;  %v857_v53 = vpop.permute.xlu1 %856  ;;  %v915_v2 = vpack.c.bf16 %v909_v57, %v905_v58  ;;  %v4307_v57 = vld [vmem:[%s5910_s1 + $0x7] ss:$8 sm:$0xf] }
 0x203   :  { %v877_v55 = vsel %vm872_vm5, %v857_v53, %v861_v62  ;;  %4297 = vmatmul.mubr.msk.bf16.vlgmr.msra.gmra.mxu0 %vm288_vm1, %v4296_v60  ;;  %v1029_v38 = vsel %vm1023_vm6, %v1010_v63, %v4827_v45 }
 0x204   :  { %v904_v6 = vmul.f32 %v887_v1, %v877_v55  ;;  %935 = vmatprep.subr.bf16.mxu0 %v915_v2  ;;  %953 = vmatprep.mubr.bf16.mxu0 %v4417_v19  ;;  %v1059_v43 = vmul.f32 %v1038_v36, %v1029_v38  ;;  %v1189_v55 = vrot.slane %v4307_v57, %v4676_v14 }
 0x206   :  { %v1022_v8 = vpop.permute.xlu0 %1021  ;;  %v914_v12 = vpack.c.bf16 %v908_v5, %v904_v6  ;;  %v869_v11 = vpop.permute.xlu1 %868 }
 0x207   :  { %v873_v17 = vsel %vm872_vm5, %v865_v59, %v869_v11  ;;  %v879_v18 = vsel %vm872_vm5, %v869_v11, %v857_v53  ;;  %v1025_v62 = vsel %vm1023_vm6, %v4840_v52, %v1022_v8  ;;  %v1031_v45 = vsel %vm1023_vm6, %v1022_v8, %v1010_v63  ;;  %v4304_v52 = vld [vmem:[%s5911_s4 + $0xc] sm:$0x3] }
 0x208   :  { %v906_v13 = vmul.f32 %v895_v3, %v873_v17  ;;  %v907_v23 = vmul.f32 %v899_v0, %v879_v18  ;;  %4298 = vmatmul.mubr.msk.bf16.vlgmr.msra.gmra.mxu1 %vm288_vm1, %v4296_v60  ;;  %936 = vmatpush1.bf16.msra.mxu0 %v914_v12  ;;  %v1061_v48 = vmul.f32 %v1046_v42, %v1025_v62 }
 0x209   :  { %994 = vmatprep.mubr.bf16.mxu1 %v4417_v19  ;;  %v1062_v59 = vmul.f32 %v1050_v35, %v1031_v45  ;;  %v1193_v63 = vrot.slane %v4307_v57, %v4666_v10  ;;  %v1201_v17 = vrot.slane %v4307_v57, %v4683_v20 }
 0x20a   :  { %v1165_v26 = vpop.permute.xlu0 %1164  ;;  %v916_v28 = vpack.c.bf16 %v910_v15, %v906_v13  ;;  %v1012_v27 = vpop.permute.xlu1 %1011  ;;  %v917_v16 = vpack.c.bf16 %v911_v21, %v907_v23  ;;  %v1197_v15 = vrot.slane %v4307_v57, %v4689_v22 }
 0x20b   :  { %4301 = vmatmul.mubr.msk.bf16.vlgmr.msra.gmra.mxu0 %vm288_vm1, %v4300_v24 }
 0x20c   :  { %976 = vmatprep.subr.bf16.mxu1 %v917_v16  ;;  %1104 = vmatprep.mubr.bf16.mxu0 %v4417_v19 }
 0x20d   :  { %977 = vmatpush1.bf16.msra.mxu1 %v916_v28 }
 0x20e   :  { %v1016_v32 = vpop.permute.xlu1 %1015  ;;  %v1169_v29 = vpop.permute.xlu0 %1168 }
 0x20f   :  { %v1026_v33 = vsel %vm1023_vm6, %v1012_v27, %v1016_v32  ;;  %v1178_v53 = vsel %vm1174_vm7, %v1165_v26, %v1169_v29 }
 0x210   :  { %v1056_v37 = vmul.f32 %v1042_v30, %v1026_v33  ;;  %4302 = vmatmul.mubr.msk.bf16.vlgmr.msra.gmra.mxu1 %vm288_vm1, %v4300_v24  ;;  %v1211_v0 = vmul.f32 %v1193_v63, %v1178_v53  ;;  %v4312_v53 = vld [vmem:[%s5911_s4 + $0x10] sm:$0x3] }
 0x211   :  { %1145 = vmatprep.mubr.bf16.mxu1 %v4417_v19 }
 0x212   :  { %v1008_v39 = vpop.permute.xlu1 %1007  ;;  %v1066_v40 = vpack.c.bf16 %v1060_v34, %v1056_v37  ;;  %v1161_v46 = vpop.permute.xlu0 %1160 }
 0x213   :  { %v1028_v41 = vsel %vm1023_vm6, %v1008_v39, %v1012_v27  ;;  %v1180_v6 = vsel %vm1174_vm7, %v1161_v46, %v1165_v26 }
 0x214   :  { %v1055_v44 = vmul.f32 %v1038_v36, %v1028_v41  ;;  %1086 = vmatprep.subr.bf16.mxu0 %v1066_v40  ;;  %v1210_v11 = vmul.f32 %v1189_v55, %v1180_v6 }
 0x216   :  { %v1065_v47 = vpack.c.bf16 %v1059_v43, %v1055_v44  ;;  %v1020_v49 = vpop.permute.xlu1 %1019  ;;  %v1173_v58 = vpop.permute.xlu0 %1172 }
 0x217   :  { %v1024_v50 = vsel %vm1023_vm6, %v1016_v32, %v1020_v49  ;;  %v1030_v51 = vsel %vm1023_vm6, %v1020_v49, %v1008_v39  ;;  %v1176_v21 = vsel %vm1174_vm7, %v1169_v29, %v1173_v58  ;;  %v1182_v13 = vsel %vm1174_vm7, %v1173_v58, %v1161_v46  ;;  %v4308_v32 = vld [vmem:[%s5911_s4 + $0xe] sm:$0x3]  ;;  %v4311_v29 = vld [vmem:[%s5910_s1 + $0x20] ss:$8 sm:$0xf] }
 0x218   :  { %v1057_v54 = vmul.f32 %v1046_v42, %v1024_v50  ;;  %v1058_v56 = vmul.f32 %v1050_v35, %v1030_v51  ;;  %1087 = vmatpush1.bf16.msra.mxu0 %v1065_v47  ;;  %v1212_v27 = vmul.f32 %v1197_v15, %v1176_v21  ;;  %v1213_v16 = vmul.f32 %v1201_v17, %v1182_v13 }
 0x219   :  { %v1344_v37 = vrot.slane %v4311_v29, %v4666_v10  ;;  %v1340_v42 = vrot.slane %v4311_v29, %v4676_v14  ;;  %v1348_v50 = vrot.slane %v4311_v29, %v4689_v22  ;;  %v1352_v51 = vrot.slane %v4311_v29, %v4683_v20 }
 0x21a   :  { %v1067_v1 = vpack.c.bf16 %v1061_v48, %v1057_v54  ;;  %v1163_v60 = vpop.permute.xlu1 %1162  ;;  %v1068_v61 = vpack.c.bf16 %v1062_v59, %v1058_v56  ;;  %v1316_v5 = vpop.permute.xlu0 %1315 }
 0x21b   :  { %4305 = vmatmul.mubr.msk.bf16.vlgmr.msra.gmra.mxu0 %vm288_vm1, %v4304_v52 }
 0x21c   :  { %1127 = vmatprep.subr.bf16.mxu1 %v1068_v61  ;;  %1255 = vmatprep.mubr.bf16.mxu0 %v4417_v19 }
 0x21d   :  { %1128 = vmatpush1.bf16.msra.mxu1 %v1067_v1 }
 0x21e   :  { %v1167_v2 = vpop.permute.xlu1 %1166  ;;  %v1320_v23 = vpop.permute.xlu0 %1319 }
 0x21f   :  { %v1177_v3 = vsel %vm1174_vm7, %v1163_v60, %v1167_v2  ;;  %v1329_v39 = vsel %vm1325_vm8, %v1316_v5, %v1320_v23 }
 0x220   :  { %v1207_v4 = vmul.f32 %v1193_v63, %v1177_v3  ;;  %4306 = vmatmul.mubr.msk.bf16.vlgmr.msra.gmra.mxu1 %vm288_vm1, %v4304_v52  ;;  %v1362_v43 = vmul.f32 %v1344_v37, %v1329_v39 }
 0x221   :  { %1296 = vmatprep.mubr.bf16.mxu1 %v4417_v19 }
 0x222   :  { %v1159_v7 = vpop.permute.xlu1 %1158  ;;  %v1217_v8 = vpack.c.bf16 %v1211_v0, %v1207_v4  ;;  %v1312_v38 = vpop.permute.xlu0 %1311  ;;  %v4979_v0 = vld [vmem:[#allocation2 + $0x8] sm:$0xff] }
 0x223   :  { %v1179_v12 = vsel %vm1174_vm7, %v1159_v7, %v1163_v60  ;;  %v1331_v44 = vsel %vm1325_vm8, %v1312_v38, %v1316_v5 }
 0x224   :  { %v1206_v18 = vmul.f32 %v1189_v55, %v1179_v12  ;;  %1237 = vmatprep.subr.bf16.mxu0 %v1217_v8  ;;  %v1361_v49 = vmul.f32 %v1340_v42, %v1331_v44  ;;  %v1489_v55 = vadd.f32 %v4979_v0, %v4979_v0 }
 0x226   :  { %v1216_v24 = vpack.c.bf16 %v1210_v11, %v1206_v18  ;;  %v1171_v25 = vpop.permute.xlu1 %1170  ;;  %v1324_v46 = vpop.permute.xlu0 %1323  ;;  %v1490_v4 = vadd.f32 %v4979_v0, %v1489_v55 }
 0x227   :  { %v1175_v26 = vsel %vm1174_vm7, %v1167_v2, %v1171_v25  ;;  %v1181_v28 = vsel %vm1174_vm7, %v1171_v25, %v1159_v7  ;;  %v1327_v59 = vsel %vm1325_vm8, %v1320_v23, %v1324_v46  ;;  %v1333_v54 = vsel %vm1325_vm8, %v1324_v46, %v1312_v38 }
 0x228   :  { %v1208_v30 = vmul.f32 %v1197_v15, %v1175_v26  ;;  %v1209_v31 = vmul.f32 %v1201_v17, %v1181_v28  ;;  %1238 = vmatpush1.bf16.msra.mxu0 %v1216_v24  ;;  %v1363_v58 = vmul.f32 %v1348_v50, %v1327_v59  ;;  %v1364_v60 = vmul.f32 %v1352_v51, %v1333_v54 }
 0x229   :  { %v1491_v7 = vadd.f32 %v4979_v0, %v1490_v4 }
 0x22a   :  { %v1218_v33 = vpack.c.bf16 %v1212_v27, %v1208_v30  ;;  %v1314_v34 = vpop.permute.xlu1 %1313  ;;  %v1219_v36 = vpack.c.bf16 %v1213_v16, %v1209_v31 }
 0x22b   :  { %4309 = vmatmul.mubr.msk.bf16.vlgmr.msra.gmra.mxu0 %vm288_vm1, %v4308_v32  ;;  %1492 = vadd.xlane.f32.xlu0 %v1491_v7 }
 0x22c   :  { %1278 = vmatprep.subr.bf16.mxu1 %v1219_v36  ;;  %1406 = vmatprep.mubr.bf16.mxu0 %v4417_v19 }
 0x22d   :  { %1279 = vmatpush1.bf16.msra.mxu1 %v1218_v33 }
 0x22e   :  { %v1318_v40 = vpop.permute.xlu1 %1317 }
 0x22f   :  { %v1328_v41 = vsel %vm1325_vm8, %v1314_v34, %v1318_v40 }
 0x230   :  { %v1358_v35 = vmul.f32 %v1344_v37, %v1328_v41  ;;  %4310 = vmatmul.mubr.msk.bf16.vlgmr.msra.gmra.mxu1 %vm288_vm1, %v4308_v32 }
 0x231   :  { %1447 = vmatprep.mubr.bf16.mxu1 %v4417_v19 }
 0x232   :  { %v1310_v62 = vpop.permute.xlu1 %1309  ;;  %v1368_v45 = vpack.c.bf16 %v1362_v43, %v1358_v35 }
 0x233   :  { %v1330_v47 = vsel %vm1325_vm8, %v1310_v62, %v1314_v34 }
 0x234   :  { %v1357_v48 = vmul.f32 %v1340_v42, %v1330_v47  ;;  %1388 = vmatprep.subr.bf16.mxu0 %v1368_v45 }
 0x236   :  { %v1367_v56 = vpack.c.bf16 %v1361_v49, %v1357_v48  ;;  %v1322_v52 = vpop.permute.xlu1 %1321 }
 0x237   :  { %v1326_v57 = vsel %vm1325_vm8, %v1318_v40, %v1322_v52  ;;  %v1332_v1 = vsel %vm1325_vm8, %v1322_v52, %v1310_v62 }
 0x238   :  { %v1359_v61 = vmul.f32 %v1348_v50, %v1326_v57  ;;  %v1360_v63 = vmul.f32 %v1352_v51, %v1332_v1  ;;  %1389 = vmatpush1.bf16.msra.mxu0 %v1367_v56 }
 0x23a   :  { %v1369_v2 = vpack.c.bf16 %v1363_v58, %v1359_v61  ;;  %v1370_v3 = vpack.c.bf16 %v1364_v60, %v1360_v63 }
 0x23b   :  { %4313 = vmatmul.mubr.msk.bf16.vlgmr.msra.gmra.mxu0 %vm288_vm1, %v4312_v53 }
 0x23c   :  { %1429 = vmatprep.subr.bf16.mxu1 %v1370_v3  ;;  %1734 = vmatprep.mubr.bf16.mxu0 %v4417_v19 }
 0x23d   :  { %1430 = vmatpush1.bf16.msra.mxu1 %v1369_v2 }
 0x240   :  { %4314 = vmatmul.mubr.msk.bf16.vlgmr.msra.gmra.mxu1 %vm288_vm1, %v4312_v53 }
 0x241   :  { %1775 = vmatprep.mubr.bf16.mxu1 %v4417_v19 }
 0x28b   :  { %v326_v5 = vpop.f32.mrf.mxu0 }
 0x28d   :  { %v328_v6 = vpop.f32.mrf.mxu0 }
 0x28f   :  { %v330_v8 = vpop.f32.mrf.mxu0 }
 0x290   :  { %v367_v12 = vpop.f32.mrf.mxu1 }
 0x291   :  { %v331_v11 = vpop.f32.mrf.mxu0 }
 0x292   :  { %v369_v15 = vpop.f32.mrf.mxu1 }
 0x294   :  { %v371_v17 = vpop.f32.mrf.mxu1 }
 0x296   :  { %v372_v18 = vpop.f32.mrf.mxu1 }
 0x29b   :  { %v411_v21 = vpop.f32.mrf.mxu0 }
 0x29c   :  { %v412_v13 = vadd.f32 %v411_v21, %v326_v5 }
 0x29d   :  { %v413_v23 = vpop.f32.mrf.mxu0 }
 0x29e   :  { %v414_v24 = vadd.f32 %v413_v23, %v328_v6 }
 0x29f   :  { %v415_v25 = vpop.f32.mrf.mxu0 }
 0x2a0   :  { %v452_v26 = vpop.f32.mrf.mxu1 }
 0x2a1   :  { %v453_v28 = vadd.f32 %v452_v26, %v367_v12  ;;  %v416_v27 = vpop.f32.mrf.mxu0 }
 0x2a2   :  { %v454_v16 = vpop.f32.mrf.mxu1 }
 0x2a3   :  { %v455_v30 = vadd.f32 %v454_v16, %v369_v15 }
 0x2a4   :  { %v456_v31 = vpop.f32.mrf.mxu1 }
 0x2a6   :  { %v457_v32 = vpop.f32.mrf.mxu1 }
 0x2ab   :  { %v558_v29 = vpop.f32.mrf.mxu0 }
 0x2ac   :  { %v606_v33 = vadd.f32 %v558_v29, %v412_v13 }
 0x2ad   :  { %v560_v34 = vpop.f32.mrf.mxu0 }
 0x2ae   :  { %v607_v36 = vadd.f32 %v560_v34, %v414_v24 }
 0x2af   :  { %v562_v37 = vpop.f32.mrf.mxu0 }
 0x2b0   :  { %v599_v38 = vpop.f32.mrf.mxu1 }
 0x2b1   :  { %v608_v39 = vadd.f32 %v599_v38, %v453_v28  ;;  %v563_v40 = vpop.f32.mrf.mxu0 }
 0x2b2   :  { %v601_v41 = vpop.f32.mrf.mxu1 }
 0x2b3   :  { %v609_v43 = vadd.f32 %v601_v41, %v455_v30 }
 0x2b4   :  { %v603_v42 = vpop.f32.mrf.mxu1 }
 0x2b6   :  { %v604_v35 = vpop.f32.mrf.mxu1 }
 0x2bb   :  { %v709_v44 = vpop.f32.mrf.mxu0 }
 0x2bc   :  { %v757_v23 = vadd.f32 %v709_v44, %v606_v33 }
 0x2bd   :  { %v711_v46 = vpop.f32.mrf.mxu0 }
 0x2be   :  { %v758_v28 = vadd.f32 %v711_v46, %v607_v36 }
 0x2bf   :  { %v713_v62 = vpop.f32.mrf.mxu0 }
 0x2c0   :  { %v750_v45 = vpop.f32.mrf.mxu1 }
 0x2c1   :  { %v714_v47 = vpop.f32.mrf.mxu0  ;;  %v759_v29 = vadd.f32 %v750_v45, %v608_v39 }
 0x2c2   :  { %v752_v49 = vpop.f32.mrf.mxu1 }
 0x2c3   :  { %v804_v50 = vpop.f32.mrf.mxu0  ;;  %v760_v38 = vadd.f32 %v752_v49, %v609_v43 }
 0x2c4   :  { %v754_v51 = vpop.f32.mrf.mxu1  ;;  %v852_v27 = vadd.f32 %v804_v50, %v757_v23 }
 0x2c5   :  { %v806_v48 = vpop.f32.mrf.mxu0 }
 0x2c6   :  { %v755_v59 = vpop.f32.mrf.mxu1  ;;  %v853_v30 = vadd.f32 %v806_v48, %v758_v28 }
 0x2c7   :  { %v808_v54 = vpop.f32.mrf.mxu0 }
 0x2c8   :  { %v845_v56 = vpop.f32.mrf.mxu1 }
 0x2c9   :  { %v809_v52 = vpop.f32.mrf.mxu0  ;;  %v854_v40 = vadd.f32 %v845_v56, %v759_v29 }
 0x2ca   :  { %v847_v57 = vpop.f32.mrf.mxu1 }
 0x2cb   :  { %v955_v1 = vpop.f32.mrf.mxu0  ;;  %v855_v35 = vadd.f32 %v847_v57, %v760_v38 }
 0x2cc   :  { %v849_v58 = vpop.f32.mrf.mxu1  ;;  %v1003_v31 = vadd.f32 %v955_v1, %v852_v27 }
 0x2cd   :  { %v957_v60 = vpop.f32.mrf.mxu0 }
 0x2ce   :  { %v850_v61 = vpop.f32.mrf.mxu1  ;;  %v1004_v34 = vadd.f32 %v957_v60, %v853_v30 }
 0x2cf   :  { %v959_v63 = vpop.f32.mrf.mxu0 }
 0x2d0   :  { %v996_v53 = vpop.f32.mrf.mxu1  ;;  %v1498_v63 = vmul.f32 %v4979_v0, %v4979_v0 }
 0x2d1   :  { %v960_v2 = vpop.f32.mrf.mxu0  ;;  %v1005_v62 = vadd.f32 %v996_v53, %v854_v40 }
 0x2d2   :  { %v998_v3 = vpop.f32.mrf.mxu1 }
 0x2d3   :  { %v1006_v51 = vadd.f32 %v998_v3, %v855_v35 }
 0x2d4   :  { %v1000_v55 = vpop.f32.mrf.mxu1 }
 0x2d5   :  { %v1507_v55 = vadd.f32 %v1498_v63, %v1498_v63 }
 0x2d6   :  { %v1001_v5 = vpop.f32.mrf.mxu1 }
 0x2db   :  { %v1106_v4 = vpop.f32.mrf.mxu0 }
 0x2dc   :  { %v1154_v37 = vadd.f32 %v1106_v4, %v1003_v31 }
 0x2dd   :  { %v1108_v6 = vpop.f32.mrf.mxu0 }
 0x2de   :  { %v1155_v41 = vadd.f32 %v1108_v6, %v1004_v34 }
 0x2df   :  { %v1110_v7 = vpop.f32.mrf.mxu0 }
 0x2e0   :  { %v1147_v8 = vpop.f32.mrf.mxu1 }
 0x2e1   :  { %v1111_v12 = vpop.f32.mrf.mxu0  ;;  %v1156_v59 = vadd.f32 %v1147_v8, %v1005_v62  ;;  %v1522_v62 = vld [vmem:[%s5913_s5] sm:$0xff] }
 0x2e2   :  { %v1149_v11 = vpop.f32.mrf.mxu1 }
 0x2e3   :  { %v1157_v48 = vadd.f32 %v1149_v11, %v1006_v51 }
 0x2e4   :  { %v1151_v15 = vpop.f32.mrf.mxu1 }
 0x2e5   :  { %v1508_v15 = vadd.f32 %v1507_v55, %v1498_v63 }
 0x2e6   :  { %v1152_v17 = vpop.f32.mrf.mxu1 }
 0x2eb   :  { %v1257_v18 = vpop.f32.mrf.mxu0 }
 0x2ec   :  { %v1305_v42 = vadd.f32 %v1257_v18, %v1154_v37 }
 0x2ed   :  { %v1259_v21 = vpop.f32.mrf.mxu0 }
 0x2ee   :  { %v1306_v33 = vadd.f32 %v1259_v21, %v1155_v41 }
 0x2ef   :  { %v1261_v13 = vpop.f32.mrf.mxu0 }
 0x2f0   :  { %v1298_v24 = vpop.f32.mrf.mxu1 }
 0x2f1   :  { %v1262_v25 = vpop.f32.mrf.mxu0  ;;  %v1307_v54 = vadd.f32 %v1298_v24, %v1156_v59  ;;  %v1509_v24 = vadd.f32 %v1508_v15, %v1498_v63 }
 0x2f2   :  { %v1300_v26 = vpop.f32.mrf.mxu1  ;;  %v1493_v25 = vpop.xlane.xlu0 %1492 }
 0x2f3   :  { %v1308_v43 = vadd.f32 %v1300_v26, %v1157_v48  ;;  %v1513_v28 = vmul.f32 0.001953125, %v1493_v25 }
 0x2f4   :  { %v1302_v16 = vpop.f32.mrf.mxu1 }
 0x2f5   :  { %v1517_v29 = vmul.f32 %v1513_v28, %v1513_v28 }
 0x2f6   :  { %v1303_v32 = vpop.f32.mrf.mxu1 }
 0x2fb   :  { %v1408_v47 = vpop.f32.mrf.mxu0 }
 0x2fc   :  { %v1456_v44 = vadd.f32 %v1408_v47, %v1305_v42 }
 0x2fd   :  { %v1410_v36 = vpop.f32.mrf.mxu0 }
 0x2fe   :  { %v1464_v46 = vrot.slane %v1456_v44, 4  ;;  %v1457_v50 = vadd.f32 %v1410_v36, %v1306_v33  ;;  %v1523_v33 = vld [vmem:[%s5913_s5 + $0x8] sm:$0xff] }
 0x2ff   :  { %v1412_v52 = vpop.f32.mrf.mxu0 }
 0x300   :  { %1472 = vst [vmem:[#allocation2 + $0x30] sm:$0xf0] %v1464_v46  ;;  %v1465_v39 = vrot.slane %v1457_v50, 4  ;;  %v1449_v45 = vpop.f32.mrf.mxu1  ;;  %v1531_v46 = vld [vmem:[%s5914_s6 + $0x8] sm:$0xff]  ;;  %v1530_v50 = vld [vmem:[%s5914_s6] sm:$0xff] }
 0x301   :  { %v1458_v49 = vadd.f32 %v1449_v45, %v1307_v54  ;;  %v1413_v56 = vpop.f32.mrf.mxu0 }
 0x302   :  { %1473 = vst [vmem:[#allocation2] sm:$0xf0] %v1465_v39  ;;  %v1451_v57 = vpop.f32.mrf.mxu1 }
 0x303   :  { %v1466_v1 = vrot.slane %v1458_v49, 4  ;;  %v1459_v58 = vadd.f32 %v1451_v57, %v1308_v43 }
 0x304   :  { %v1453_v60 = vpop.f32.mrf.mxu1 }
 0x305   :  { %1474 = vst [vmem:[#allocation2 + $0x18] sm:$0xf0] %v1466_v1  ;;  %v1467_v61 = vrot.slane %v1459_v58, 4 }
 0x306   :  { %v1454_v53 = vpop.f32.mrf.mxu1 }
 0x307   :  { %v4987_v2 = vld [vmem:[#allocation2 + $0x30] sm:$0xff]  ;;  %1475 = vst [vmem:[#allocation2 + $0x10] sm:$0xf0] %v1467_v61 }
 0x308   :  { %4264 = vst [vmem:[%s5912_s11] sm:$0xff] %v4987_v2  ;;  %v1494_v4 = vmul.f32 %v4987_v2, %v4987_v2 }
 0x309   :  { %v4993_v3 = vld [vmem:[#allocation2] sm:$0xff] }
 0x30a   :  { %4265 = vst [vmem:[%s5912_s11 + $0x8] sm:$0xff] %v4993_v3  ;;  %v1484_v5 = vadd.f32 %v4993_v3, %v4987_v2  ;;  %v1495_v6 = vmul.f32 %v4993_v3, %v4993_v3 }
 0x30c   :  { %v5005_v7 = vld [vmem:[#allocation2 + $0x18] sm:$0xff]  ;;  %v1502_v8 = vadd.f32 %v1495_v6, %v1494_v4 }
 0x30d   :  { %4381 = vst [vmem:[%s5912_s11 + $0x20] sm:$0xff] %v5005_v7  ;;  %v1485_v12 = vadd.f32 %v5005_v7, %v1484_v5  ;;  %v1496_v11 = vmul.f32 %v5005_v7, %v5005_v7 }
 0x30e   :  { %v4269_v17 = vld [vmem:[#allocation2 + $0x10] sm:$0xff] }
 0x30f   :  { %4382 = vst [vmem:[%s5912_s11 + $0x28] sm:$0xff] %v4269_v17  ;;  %v5017_v18 = vadd.f32 %v4269_v17, %v1485_v12  ;;  %v1497_v21 = vmul.f32 %v4269_v17, %v4269_v17  ;;  %v1503_v13 = vadd.f32 %v1502_v8, %v1496_v11 }
 0x311   :  { %1487 = vadd.xlane.f32.xlu1 %v5017_v18  ;;  %v1504_v23 = vadd.f32 %v1503_v13, %v1497_v21 }
 0x313   :  { %1505 = vadd.xlane.f32.xlu0 %v1504_v23 }
 0x315   :  { %1510 = vadd.xlane.f32.xlu1 %v1509_v24 }
 0x39a   :  { %v1488_v26 = vpop.xlane.xlu1 %1487 }
 0x39b   :  { %v1512_v27 = vmul.f32 0.001953125, %v1488_v26 }
 0x39c   :  { %v1506_v16 = vpop.xlane.xlu0 %1505 }
 0x39d   :  { %v1516_v30 = vmul.f32 %v1512_v27, %v1512_v27  ;;  %v1514_v31 = vmul.f32 0.001953125, %v1506_v16 }
 0x39e   :  { %v1511_v32 = vpop.xlane.xlu1 %1510 }
 0x39f   :  { %v1518_v34 = vsub.f32 %v1514_v31, %v1516_v30  ;;  %v1515_v37 = vmul.f32 0.001953125, %v1511_v32 }
 0x3a1   :  { %v1520_v38 = vmax.f32 %v1518_v34, 0.0  ;;  %v1519_v40 = vsub.f32 %v1515_v37, %v1517_v29 }
 0x3a3   :  { %v1524_v41 = vadd.f32 1e-05, %v1520_v38  ;;  %v1521_v42 = vmax.f32 %v1519_v40, 0.0 }
 0x3a5   :  { %4403 = vrsqrt.f32 %v1524_v41  ;;  %v1525_v35 = vadd.f32 1e-05, %v1521_v42 }
 0x3a7   :  { %4405 = vrsqrt.f32 %v1525_v35 }
 0x3b2   :  { %v4404_v47 = vpop.eup %4403 }
 0x3b3   :  { %v1528_v44 = vmul.f32 %v4404_v47, %v1522_v62 }
 0x3b4   :  { %v4406_v51 = vpop.eup %4405 }
 0x3b5   :  { %1538 = vperm.xlu0 %4395, %v1528_v44   ;;  %v1529_v59 = vmul.f32 %v4406_v51, %v1523_v33  ;;  %v1532_v36 = vmul.f32 %v1528_v44, %v1512_v27 }
 0x3b7   :  { %1543 = vperm.xlu1 %4396, %v1529_v59   ;;  %v1533_v48 = vmul.f32 %v1529_v59, %v1513_v28  ;;  %v1534_v52 = vsub.f32 %v1530_v50, %v1532_v36  ;;  %v4316_v59 = vld [vmem:[%s5915_s7 + $0x2] sm:$0x3]  ;;  %v1604_v36 = vld [vmem:[%s5910_s1] ss:$8 sm:$0xf] }
 0x3b9   :  { %v1535_v54 = vsub.f32 %v1531_v46, %v1533_v48 }
 0x3bb   :  { %1561 = vperm.xlu0 %4395, %v1535_v54   ;;  %1556 = vperm.xlu1 %4396, %v1534_v52   ;;  %v1613_v52 = vrot.slane %v1604_v36, %v4666_v10 }
 0x430   :  { %v1539_v39 = vpop.permute.xlu0 %1538 }
 0x431   :  { %v1546_v43 = vmul.f32 %v4987_v2, %v1539_v39  ;;  %v1547_v1 = vmul.f32 %v4993_v3, %v1539_v39  ;;  %v1549_v55 = vmul.f32 %v4269_v17, %v1539_v39  ;;  %v1548_v5 = vmul.f32 %v5005_v7, %v1539_v39  ;;  %v4315_v7 = vld [vmem:[%s5910_s1 + $0x1] ss:$8 sm:$0xf] }
 0x432   :  { %v1544_v45 = vpop.permute.xlu1 %1543  ;;  %v1672_v11 = vrot.slane %v4315_v7, %v4666_v10  ;;  %v1668_v25 = vrot.slane %v4315_v7, %v4676_v14  ;;  %v1676_v31 = vrot.slane %v4315_v7, %v4689_v22  ;;  %v1680_v34 = vrot.slane %v4315_v7, %v4683_v20 }
 0x433   :  { %v1550_v49 = vmul.f32 %v4979_v0, %v1544_v45  ;;  %v1617_v7 = vrot.slane %v1604_v36, %v4689_v22 }
 0x436   :  { %v1562_v56 = vpop.permute.xlu0 %1561  ;;  %v1557_v57 = vpop.permute.xlu1 %1556 }
 0x437   :  { %v1568_v58 = vadd.f32 %v1562_v56, %v1550_v49  ;;  %v1564_v60 = vadd.f32 %v1557_v57, %v1546_v43  ;;  %v1565_v63 = vadd.f32 %v1557_v57, %v1547_v1  ;;  %v1567_v2 = vadd.f32 %v1557_v57, %v1549_v55 }
 0x438   :  { %v1566_v3 = vadd.f32 %v1557_v57, %v1548_v5  ;;  %v1609_v1 = vrot.slane %v1604_v36, %v4676_v14 }
 0x439   :  { %v5035_v61 = vmax.f32 %v1568_v58, 0.0  ;;  %v5037_v53 = vmax.f32 %v1564_v60, 0.0  ;;  %v5043_v0 = vmax.f32 %v1565_v63, 0.0  ;;  %v5050_v4 = vmax.f32 %v1567_v2, 0.0 }
 0x43a   :  { %v5056_v6 = vmax.f32 %v1566_v3, 0.0 }
 0x43b   :  { %1641 = vrot.lane.b32.xlu0 %v5035_v61, %s4418_s2  ;;  %1639 = vrot.lane.b32.xlu1 %v5037_v53, %s4418_s2 }
 0x43f   :  { %1645 = vrot.lane.b32.xlu0 %v5035_v61, %s4418_s2  ;;  %1643 = vrot.lane.b32.xlu1 %v5043_v0, %s4418_s2 }
 0x443   :  { %1653 = vrot.lane.b32.xlu0 %v5035_v61, %s4418_s2  ;;  %1651 = vrot.lane.b32.xlu1 %v5050_v4, %s4418_s2 }
 0x447   :  { %1649 = vrot.lane.b32.xlu0 %v5035_v61, %s4418_s2  ;;  %1647 = vrot.lane.b32.xlu1 %v5056_v6, %s4418_s2 }
 0x44b   :  { %1582 = vrot.lane.b32.xlu0 %v5035_v61, %s4419_s3  ;;  %1580 = vrot.lane.b32.xlu1 %v5037_v53, %s4419_s3 }
 0x44f   :  { %1586 = vrot.lane.b32.xlu0 %v5035_v61, %s4419_s3  ;;  %1584 = vrot.lane.b32.xlu1 %v5043_v0, %s4419_s3 }
 0x453   :  { %1594 = vrot.lane.b32.xlu0 %v5035_v61, %s4419_s3  ;;  %1592 = vrot.lane.b32.xlu1 %v5050_v4, %s4419_s3 }
 0x457   :  { %1590 = vrot.lane.b32.xlu0 %v5035_v61, %s4419_s3  ;;  %1588 = vrot.lane.b32.xlu1 %v5056_v6, %s4419_s3 }
 0x45b   :  { %1871 = vrot.lane.b32.xlu0 %v5035_v61, %s4420_s28  ;;  %1869 = vrot.lane.b32.xlu1 %v5037_v53, %s4420_s28 }
 0x45f   :  { %1875 = vrot.lane.b32.xlu0 %v5035_v61, %s4420_s28  ;;  %1873 = vrot.lane.b32.xlu1 %v5043_v0, %s4420_s28 }
 0x463   :  { %1883 = vrot.lane.b32.xlu0 %v5035_v61, %s4420_s28  ;;  %1881 = vrot.lane.b32.xlu1 %v5050_v4, %s4420_s28 }
 0x467   :  { %1879 = vrot.lane.b32.xlu0 %v5035_v61, %s4420_s28  ;;  %1877 = vrot.lane.b32.xlu1 %v5056_v6, %s4420_s28 }
 0x46b   :  { %2020 = vrot.lane.b32.xlu0 %v5035_v61, %s4421_s29  ;;  %2018 = vrot.lane.b32.xlu1 %v5037_v53, %s4421_s29 }
 0x46f   :  { %2024 = vrot.lane.b32.xlu0 %v5035_v61, %s4421_s29  ;;  %2022 = vrot.lane.b32.xlu1 %v5043_v0, %s4421_s29 }
 0x473   :  { %2032 = vrot.lane.b32.xlu0 %v5035_v61, %s4421_s29  ;;  %2030 = vrot.lane.b32.xlu1 %v5050_v4, %s4421_s29 }
 0x477   :  { %2028 = vrot.lane.b32.xlu0 %v5035_v61, %s4421_s29  ;;  %2026 = vrot.lane.b32.xlu1 %v5056_v6, %s4421_s29 }
 0x47b   :  { %2268 = vrot.lane.b32.xlu0 %v5035_v61, %s4422_s30  ;;  %2266 = vrot.lane.b32.xlu1 %v5043_v0, %s4422_s30 }
 0x47f   :  { %2272 = vrot.lane.b32.xlu0 %v5035_v61, %s4422_s30  ;;  %2270 = vrot.lane.b32.xlu1 %v5056_v6, %s4422_s30 }
 0x483   :  { %2264 = vrot.lane.b32.xlu0 %v5035_v61, %s4422_s30  ;;  %2262 = vrot.lane.b32.xlu1 %v5037_v53, %s4422_s30 }
 0x487   :  { %2276 = vrot.lane.b32.xlu0 %v5035_v61, %s4422_s30  ;;  %2274 = vrot.lane.b32.xlu1 %v5050_v4, %s4422_s30 }
 0x48b   :  { %2417 = vrot.lane.b32.xlu0 %v5035_v61, %s4423_s12  ;;  %2415 = vrot.lane.b32.xlu1 %v5043_v0, %s4423_s12 }
 0x48f   :  { %2421 = vrot.lane.b32.xlu0 %v5035_v61, %s4423_s12  ;;  %2419 = vrot.lane.b32.xlu1 %v5056_v6, %s4423_s12 }
 0x493   :  { %2413 = vrot.lane.b32.xlu0 %v5035_v61, %s4423_s12  ;;  %2411 = vrot.lane.b32.xlu1 %v5037_v53, %s4423_s12 }
 0x497   :  { %2425 = vrot.lane.b32.xlu0 %v5035_v61, %s4423_s12  ;;  %2423 = vrot.lane.b32.xlu1 %v5050_v4, %s4423_s12 }
 0x49b   :  { %2566 = vrot.lane.b32.xlu0 %v5035_v61, %s4424_s13  ;;  %2564 = vrot.lane.b32.xlu1 %v5043_v0, %s4424_s13 }
 0x49f   :  { %2570 = vrot.lane.b32.xlu0 %v5035_v61, %s4424_s13  ;;  %2568 = vrot.lane.b32.xlu1 %v5056_v6, %s4424_s13 }
 0x4a3   :  { %2562 = vrot.lane.b32.xlu0 %v5035_v61, %s4424_s13  ;;  %2560 = vrot.lane.b32.xlu1 %v5037_v53, %s4424_s13 }
 0x4a7   :  { %2574 = vrot.lane.b32.xlu0 %v5035_v61, %s4424_s13  ;;  %2572 = vrot.lane.b32.xlu1 %v5050_v4, %s4424_s13 }
 0x4ab   :  { %2715 = vrot.lane.b32.xlu0 %v5035_v61, %s4425_s14  ;;  %2713 = vrot.lane.b32.xlu1 %v5043_v0, %s4425_s14 }
 0x4ad   :  { %v1642_v8 = vpop.permute.xlu0 %1641  ;;  %v1640_v12 = vpop.permute.xlu1 %1639 }
 0x4af   :  { %2719 = vrot.lane.b32.xlu0 %v5035_v61, %s4425_s14  ;;  %2717 = vrot.lane.b32.xlu1 %v5056_v6, %s4425_s14 }
 0x4b1   :  { %v1646_v15 = vpop.permute.xlu0 %1645  ;;  %v1644_v17 = vpop.permute.xlu1 %1643 }
 0x4b2   :  { %v1660_v21 = vsel %vm242_vm0, %v1642_v8, %v1646_v15  ;;  %v1659_v13 = vsel %vm242_vm0, %v1640_v12, %v1644_v17 }
 0x4b3   :  { %v1690_v23 = vmul.f32 %v1672_v11, %v1660_v21  ;;  %v1686_v24 = vmul.f32 %v1672_v11, %v1659_v13  ;;  %2711 = vrot.lane.b32.xlu0 %v5035_v61, %s4425_s14  ;;  %2709 = vrot.lane.b32.xlu1 %v5037_v53, %s4425_s14 }
 0x4b5   :  { %v1654_v26 = vpop.permute.xlu0 %1653  ;;  %v1652_v28 = vpop.permute.xlu1 %1651  ;;  %v1696_v27 = vpack.c.bf16 %v1690_v23, %v1686_v24 }
 0x4b6   :  { %v1662_v16 = vsel %vm242_vm0, %v1654_v26, %v1642_v8  ;;  %v1661_v30 = vsel %vm242_vm0, %v1652_v28, %v1640_v12  ;;  %v1621_v8 = vrot.slane %v1604_v36, %v4683_v20 }
 0x4b7   :  { %v1689_v32 = vmul.f32 %v1668_v25, %v1662_v16  ;;  %v1685_v29 = vmul.f32 %v1668_v25, %v1661_v30  ;;  %2723 = vrot.lane.b32.xlu0 %v5035_v61, %s4425_s14  ;;  %2721 = vrot.lane.b32.xlu1 %v5050_v4, %s4425_s14  ;;  %v4321_v16 = vld [vmem:[%s5910_s1 + $0x2] ss:$8 sm:$0xf] }
 0x4b8   :  { %1716 = vmatprep.subr.bf16.mxu0 %v1696_v27  ;;  %v1634_v27 = vld [vmem:[%s5915_s7] sm:$0x3] }
 0x4b9   :  { %v1695_v37 = vpack.c.bf16 %v1689_v32, %v1685_v29  ;;  %v1650_v38 = vpop.permute.xlu0 %1649  ;;  %v1648_v40 = vpop.permute.xlu1 %1647 }
 0x4ba   :  { %v1656_v41 = vsel %vm242_vm0, %v1650_v38, %v1654_v26  ;;  %v1658_v42 = vsel %vm242_vm0, %v1646_v15, %v1650_v38  ;;  %v1655_v35 = vsel %vm242_vm0, %v1648_v40, %v1652_v28  ;;  %v1657_v62 = vsel %vm242_vm0, %v1644_v17, %v1648_v40 }
 0x4bb   :  { %v1691_v47 = vmul.f32 %v1676_v31, %v1658_v42  ;;  %v1692_v33 = vmul.f32 %v1680_v34, %v1656_v41  ;;  %v1687_v44 = vmul.f32 %v1676_v31, %v1657_v62  ;;  %v1688_v51 = vmul.f32 %v1680_v34, %v1655_v35  ;;  %1717 = vmatpush1.bf16.msra.mxu0 %v1695_v37 }
 0x4bc   :  { %v1902_v34 = vrot.slane %v4321_v16, %v4666_v10  ;;  %v1898_v62 = vrot.slane %v4321_v16, %v4676_v14 }
 0x4bd   :  { %v1697_v46 = vpack.c.bf16 %v1691_v47, %v1687_v44  ;;  %v1583_v50 = vpop.permute.xlu0 %1582  ;;  %v1581_v48 = vpop.permute.xlu1 %1580  ;;  %v1698_v54 = vpack.c.bf16 %v1692_v33, %v1688_v51 }
 0x4be   :  { %4317 = vmatmul.mubr.msk.bf16.vlgmr.msra.gmra.mxu0 %vm288_vm1, %v4316_v59 }
 0x4bf   :  { %1757 = vmatprep.subr.bf16.mxu1 %v1698_v54  ;;  %1819 = vmatprep.mubr.bf16.mxu0 %v4417_v19 }
 0x4c0   :  { %1758 = vmatpush1.bf16.msra.mxu1 %v1697_v46 }
 0x4c1   :  { %v1587_v39 = vpop.permute.xlu0 %1586  ;;  %v1585_v45 = vpop.permute.xlu1 %1584 }
 0x4c2   :  { %v1601_v43 = vsel %vm182_vm2, %v1583_v50, %v1587_v39  ;;  %v1600_v49 = vsel %vm182_vm2, %v1581_v48, %v1585_v45 }
 0x4c3   :  { %v1631_v56 = vmul.f32 %v1613_v52, %v1601_v43  ;;  %v1627_v57 = vmul.f32 %v1613_v52, %v1600_v49  ;;  %4318 = vmatmul.mubr.msk.bf16.vlgmr.msra.gmra.mxu1 %vm288_vm1, %v4316_v59 }
 0x4c4   :  { %1860 = vmatprep.mubr.bf16.mxu1 %v4417_v19 }
 0x4c5   :  { %v1595_v58 = vpop.permute.xlu0 %1594  ;;  %v1593_v60 = vpop.permute.xlu1 %1592  ;;  %v1636_v63 = vpack.c.bf16 %v1631_v56, %v1627_v57 }
 0x4c6   :  { %v1603_v55 = vsel %vm182_vm2, %v1595_v58, %v1583_v50  ;;  %v1602_v2 = vsel %vm182_vm2, %v1593_v60, %v1581_v48  ;;  %v1906_v50 = vrot.slane %v4321_v16, %v4689_v22  ;;  %v1910_v48 = vrot.slane %v4321_v16, %v4683_v20 }
 0x4c7   :  { %v1630_v5 = vmul.f32 %v1609_v1, %v1603_v55  ;;  %v1626_v3 = vmul.f32 %v1609_v1, %v1602_v2  ;;  %1801 = vmatprep.subr.bf16.mxu0 %v1636_v63  ;;  %v4325_v63 = vld [vmem:[%s5910_s1 + $0x3] ss:$8 sm:$0xf]  ;;  %v4322_v55 = vld [vmem:[%s5915_s7 + $0x4] sm:$0x3] }
 0x4c9   :  { %v1635_v12 = vpack.c.bf16 %v1630_v5, %v1626_v3  ;;  %v1591_v11 = vpop.permute.xlu0 %1590  ;;  %v1589_v15 = vpop.permute.xlu1 %1588 }
 0x4ca   :  { %v1597_v17 = vsel %vm182_vm2, %v1591_v11, %v1595_v58  ;;  %v1599_v21 = vsel %vm182_vm2, %v1587_v39, %v1591_v11  ;;  %v1596_v13 = vsel %vm182_vm2, %v1589_v15, %v1593_v60  ;;  %v1598_v23 = vsel %vm182_vm2, %v1585_v45, %v1589_v15 }
 0x4cb   :  { %v1632_v24 = vmul.f32 %v1617_v7, %v1599_v21  ;;  %v1633_v25 = vmul.f32 %v1621_v8, %v1597_v17  ;;  %v1628_v26 = vmul.f32 %v1617_v7, %v1598_v23  ;;  %v1629_v28 = vmul.f32 %v1621_v8, %v1596_v13  ;;  %1802 = vmatpush1.bf16.msra.mxu0 %v1635_v12 }
 0x4cc   :  { %v2051_v8 = vrot.slane %v4325_v63, %v4666_v10  ;;  %v2047_v13 = vrot.slane %v4325_v63, %v4676_v14 }
 0x4cd   :  { %v1637_v30 = vpack.c.bf16 %v1632_v24, %v1628_v26  ;;  %v1872_v31 = vpop.permute.xlu0 %1871  ;;  %v1870_v32 = vpop.permute.xlu1 %1869  ;;  %v1638_v29 = vpack.c.bf16 %v1633_v25, %v1629_v28 }
 0x4ce   :  { %4319 = vmatmul.mubr.msk.bf16.vlgmr.msra.gmra.mxu0 %vm288_vm1, %v1634_v27 }
 0x4cf   :  { %1842 = vmatprep.subr.bf16.mxu1 %v1638_v29  ;;  %1964 = vmatprep.mubr.bf16.mxu0 %v4417_v19 }
 0x4d0   :  { %1843 = vmatpush1.bf16.msra.mxu1 %v1637_v30  ;;  %v2055_v30 = vrot.slane %v4325_v63, %v4689_v22 }
 0x4d1   :  { %v1876_v37 = vpop.permute.xlu0 %1875  ;;  %v1874_v38 = vpop.permute.xlu1 %1873 }
 0x4d2   :  { %v1890_v40 = vsel %vm475_vm3, %v1872_v31, %v1876_v37  ;;  %v1889_v41 = vsel %vm475_vm3, %v1870_v32, %v1874_v38 }
 0x4d3   :  { %v1920_v42 = vmul.f32 %v1902_v34, %v1890_v40  ;;  %v1916_v35 = vmul.f32 %v1902_v34, %v1889_v41  ;;  %4320 = vmatmul.mubr.msk.bf16.vlgmr.msra.gmra.mxu1 %vm288_vm1, %v1634_v27 }
 0x4d4   :  { %2005 = vmatprep.mubr.bf16.mxu1 %v4417_v19 }
 0x4d5   :  { %v1884_v47 = vpop.permute.xlu0 %1883  ;;  %v1882_v33 = vpop.permute.xlu1 %1881  ;;  %v1926_v44 = vpack.c.bf16 %v1920_v42, %v1916_v35 }
 0x4d6   :  { %v1892_v51 = vsel %vm475_vm3, %v1884_v47, %v1872_v31  ;;  %v1891_v59 = vsel %vm475_vm3, %v1882_v33, %v1870_v32  ;;  %v2059_v31 = vrot.slane %v4325_v63, %v4683_v20 }
 0x4d7   :  { %v1919_v36 = vmul.f32 %v1898_v62, %v1892_v51  ;;  %v1915_v46 = vmul.f32 %v1898_v62, %v1891_v59  ;;  %1946 = vmatprep.subr.bf16.mxu0 %v1926_v44  ;;  %v4332_v44 = vld [vmem:[%s5910_s1 + $0x5] ss:$8 sm:$0xf] }
 0x4d9   :  { %v1925_v54 = vpack.c.bf16 %v1919_v36, %v1915_v46  ;;  %v1880_v52 = vpop.permute.xlu0 %1879  ;;  %v1878_v39 = vpop.permute.xlu1 %1877 }
 0x4da   :  { %v1886_v45 = vsel %vm475_vm3, %v1880_v52, %v1884_v47  ;;  %v1888_v43 = vsel %vm475_vm3, %v1876_v37, %v1880_v52  ;;  %v1885_v49 = vsel %vm475_vm3, %v1878_v39, %v1882_v33  ;;  %v1887_v56 = vsel %vm475_vm3, %v1874_v38, %v1878_v39 }
 0x4db   :  { %v1921_v57 = vmul.f32 %v1906_v50, %v1888_v43  ;;  %v1922_v1 = vmul.f32 %v1910_v48, %v1886_v45  ;;  %v1917_v58 = vmul.f32 %v1906_v50, %v1887_v56  ;;  %v1918_v60 = vmul.f32 %v1910_v48, %v1885_v49  ;;  %2873 = vadd.xlane.f32.xlu1 %v5017_v18 }
 0x4dc   :  { %1947 = vmatpush1.bf16.msra.mxu0 %v1925_v54  ;;  %v2170_v37 = vpack.c.bf16 %v5035_v61, %v5043_v0  ;;  %v4326_v0 = vld [vmem:[%s5915_s7 + $0x6] sm:$0x3]  ;;  %v2169_v50 = vpack.c.bf16 %v5035_v61, %v5037_v53  ;;  %v2295_v48 = vrot.slane %v4332_v44, %v4666_v10  ;;  %v2172_v54 = vpack.c.bf16 %v5035_v61, %v5050_v4 }
 0x4dd   :  { %v1927_v2 = vpack.c.bf16 %v1921_v57, %v1917_v58  ;;  %v2021_v5 = vpop.permute.xlu0 %2020  ;;  %v2019_v3 = vpop.permute.xlu1 %2018  ;;  %v1928_v7 = vpack.c.bf16 %v1922_v1, %v1918_v60  ;;  %v2171_v43 = vpack.c.bf16 %v5035_v61, %v5056_v6  ;;  %v2291_v4 = vrot.slane %v4332_v44, %v4676_v14  ;;  %v4329_v57 = vld [vmem:[%s5915_s7 + $0x8] sm:$0x3] }
 0x4de   :  { %v2299_v6 = vrot.slane %v4332_v44, %v4689_v22 }
 0x4df   :  { %1987 = vmatprep.subr.bf16.mxu1 %v1928_v7  ;;  %4323 = vmatmul.mubr.msk.bf16.vlgmr.msra.gmra.mxu0 %vm288_vm1, %v4322_v55 }
 0x4e0   :  { %1988 = vmatpush1.bf16.msra.mxu1 %v1927_v2  ;;  %2113 = vmatprep.mubr.bf16.mxu0 %v4417_v19 }
 0x4e1   :  { %v2025_v18 = vpop.permute.xlu0 %2024  ;;  %v2023_v12 = vpop.permute.xlu1 %2022 }
 0x4e2   :  { %v2039_v11 = vsel %vm626_vm4, %v2021_v5, %v2025_v18  ;;  %v2038_v15 = vsel %vm626_vm4, %v2019_v3, %v2023_v12 }
 0x4e3   :  { %v2069_v17 = vmul.f32 %v2051_v8, %v2039_v11  ;;  %v2065_v21 = vmul.f32 %v2051_v8, %v2038_v15  ;;  %4324 = vmatmul.mubr.msk.bf16.vlgmr.msra.gmra.mxu1 %vm288_vm1, %v4322_v55 }
 0x4e4   :  { %2154 = vmatprep.mubr.bf16.mxu1 %v4417_v19 }
 0x4e5   :  { %v2033_v23 = vpop.permute.xlu0 %2032  ;;  %v2031_v24 = vpop.permute.xlu1 %2030  ;;  %v2075_v25 = vpack.c.bf16 %v2069_v17, %v2065_v21 }
 0x4e6   :  { %v2041_v26 = vsel %vm626_vm4, %v2033_v23, %v2021_v5  ;;  %v2040_v28 = vsel %vm626_vm4, %v2031_v24, %v2019_v3  ;;  %v2303_v5 = vrot.slane %v4332_v44, %v4683_v20 }
 0x4e7   :  { %v2068_v27 = vmul.f32 %v2047_v13, %v2041_v26  ;;  %v2064_v16 = vmul.f32 %v2047_v13, %v2040_v28  ;;  %2095 = vmatprep.subr.bf16.mxu0 %v2075_v25  ;;  %v4336_v25 = vld [vmem:[%s5910_s1 + $0x6] ss:$8 sm:$0xf] }
 0x4e8   :  { %v2448_v44 = vrot.slane %v4336_v25, %v4689_v22 }
 0x4e9   :  { %v2074_v32 = vpack.c.bf16 %v2068_v27, %v2064_v16  ;;  %v2029_v29 = vpop.permute.xlu0 %2028  ;;  %v2027_v34 = vpop.permute.xlu1 %2026 }
 0x4ea   :  { %v2035_v38 = vsel %vm626_vm4, %v2029_v29, %v2033_v23  ;;  %v2037_v40 = vsel %vm626_vm4, %v2025_v18, %v2029_v29  ;;  %v2034_v41 = vsel %vm626_vm4, %v2027_v34, %v2031_v24  ;;  %v2036_v42 = vsel %vm626_vm4, %v2023_v12, %v2027_v34  ;;  %v4333_v24 = vld [vmem:[%s5915_s7 + $0xa] sm:$0x3] }
 0x4eb   :  { %v2070_v35 = vmul.f32 %v2055_v30, %v2037_v40  ;;  %v2071_v62 = vmul.f32 %v2059_v31, %v2035_v38  ;;  %v2066_v47 = vmul.f32 %v2055_v30, %v2036_v42  ;;  %v2067_v33 = vmul.f32 %v2059_v31, %v2034_v41  ;;  %2096 = vmatpush1.bf16.msra.mxu0 %v2074_v32 }
 0x4ec   :  { %2190 = vmatprep.subr.bf16.mxu0 %v2170_v37  ;;  %v2444_v30 = vrot.slane %v4336_v25, %v4666_v10  ;;  %v2440_v40 = vrot.slane %v4336_v25, %v4676_v14 }
 0x4ed   :  { %v2076_v51 = vpack.c.bf16 %v2070_v35, %v2066_v47  ;;  %v2269_v59 = vpop.permute.xlu0 %2268  ;;  %v2267_v36 = vpop.permute.xlu1 %2266  ;;  %v2077_v46 = vpack.c.bf16 %v2071_v62, %v2067_v33 }
 0x4ee   :  { %4327 = vmatmul.mubr.msk.bf16.vlgmr.msra.gmra.mxu0 %vm288_vm1, %v4326_v0 }
 0x4ef   :  { %2136 = vmatprep.subr.bf16.mxu1 %v2077_v46  ;;  %2191 = vmatpush1.bf16.msra.mxu0 %v2169_v50 }
 0x4f0   :  { %2137 = vmatpush1.bf16.msra.mxu1 %v2076_v51  ;;  %2208 = vmatprep.mubr.bf16.mxu0 %v4417_v19  ;;  %v2452_v51 = vrot.slane %v4336_v25, %v4683_v20 }
 0x4f1   :  { %v2273_v52 = vpop.permute.xlu0 %2272  ;;  %2231 = vmatprep.subr.bf16.mxu1 %v2172_v54  ;;  %v2271_v39 = vpop.permute.xlu1 %2270 }
 0x4f2   :  { %v2281_v45 = vsel %vm872_vm5, %v2269_v59, %v2273_v52  ;;  %v2280_v53 = vsel %vm872_vm5, %v2267_v36, %v2271_v39 }
 0x4f3   :  { %v2313_v49 = vmul.f32 %v2295_v48, %v2281_v45  ;;  %v2309_v56 = vmul.f32 %v2295_v48, %v2280_v53  ;;  %4328 = vmatmul.mubr.msk.bf16.vlgmr.msra.gmra.mxu1 %vm288_vm1, %v4326_v0 }
 0x4f4   :  { %2232 = vmatpush1.bf16.msra.mxu1 %v2171_v43  ;;  %2249 = vmatprep.mubr.bf16.mxu1 %v4417_v19 }
 0x4f5   :  { %v2265_v1 = vpop.permute.xlu0 %2264  ;;  %v2263_v58 = vpop.permute.xlu1 %2262  ;;  %v2319_v60 = vpack.c.bf16 %v2313_v49, %v2309_v56  ;;  %v4337_v49 = vld [vmem:[%s5915_s7 + $0xc] sm:$0x3]  ;;  %v4340_v56 = vld [vmem:[%s5910_s1 + $0x7] ss:$8 sm:$0xf] }
 0x4f6   :  { %v2283_v63 = vsel %vm872_vm5, %v2265_v1, %v2269_v59  ;;  %v2282_v61 = vsel %vm872_vm5, %v2263_v58, %v2267_v36  ;;  %4330 = vmatmul.mubr.msk.bf16.vlgmr.msra.gmra.mxu0 %vm288_vm1, %v4329_v57 }
 0x4f7   :  { %v2312_v55 = vmul.f32 %v2291_v4, %v2283_v63  ;;  %v2308_v2 = vmul.f32 %v2291_v4, %v2282_v61  ;;  %2339 = vmatprep.subr.bf16.mxu0 %v2319_v60  ;;  %2357 = vmatprep.mubr.bf16.mxu0 %v4417_v19  ;;  %v2593_v60 = vrot.slane %v4340_v56, %v4666_v10 }
 0x4f9   :  { %v2318_v3 = vpack.c.bf16 %v2312_v55, %v2308_v2  ;;  %v2277_v7 = vpop.permute.xlu0 %2276  ;;  %v2275_v8 = vpop.permute.xlu1 %2274 }
 0x4fa   :  { %v2279_v18 = vsel %vm872_vm5, %v2273_v52, %v2277_v7  ;;  %v2285_v12 = vsel %vm872_vm5, %v2277_v7, %v2265_v1  ;;  %v2278_v11 = vsel %vm872_vm5, %v2271_v39, %v2275_v8  ;;  %v2284_v15 = vsel %vm872_vm5, %v2275_v8, %v2263_v58 }
 0x4fb   :  { %v2314_v17 = vmul.f32 %v2299_v6, %v2279_v18  ;;  %v2315_v21 = vmul.f32 %v2303_v5, %v2285_v12  ;;  %v2310_v13 = vmul.f32 %v2299_v6, %v2278_v11  ;;  %v2311_v23 = vmul.f32 %v2303_v5, %v2284_v15  ;;  %4331 = vmatmul.mubr.msk.bf16.vlgmr.msra.gmra.mxu1 %vm288_vm1, %v4329_v57 }
 0x4fc   :  { %2340 = vmatpush1.bf16.msra.mxu0 %v2318_v3  ;;  %2398 = vmatprep.mubr.bf16.mxu1 %v4417_v19  ;;  %v2589_v3 = vrot.slane %v4340_v56, %v4676_v14 }
 0x4fd   :  { %v2320_v26 = vpack.c.bf16 %v2314_v17, %v2310_v13  ;;  %v2418_v28 = vpop.permute.xlu0 %2417  ;;  %v2416_v27 = vpop.permute.xlu1 %2415  ;;  %v2321_v16 = vpack.c.bf16 %v2315_v21, %v2311_v23  ;;  %v2597_v21 = vrot.slane %v4340_v56, %v4689_v22  ;;  %v2601_v13 = vrot.slane %v4340_v56, %v4683_v20 }
 0x4ff   :  { %4334 = vmatmul.mubr.msk.bf16.vlgmr.msra.gmra.mxu0 %vm288_vm1, %v4333_v24  ;;  %2380 = vmatprep.subr.bf16.mxu1 %v2321_v16 }
 0x500   :  { %2381 = vmatpush1.bf16.msra.mxu1 %v2320_v26  ;;  %2506 = vmatprep.mubr.bf16.mxu0 %v4417_v19 }
 0x501   :  { %v2422_v31 = vpop.permute.xlu0 %2421  ;;  %v2420_v32 = vpop.permute.xlu1 %2419 }
 0x502   :  { %v2430_v29 = vsel %vm1023_vm6, %v2418_v28, %v2422_v31  ;;  %v2429_v34 = vsel %vm1023_vm6, %v2416_v27, %v2420_v32 }
 0x503   :  { %v2462_v37 = vmul.f32 %v2444_v30, %v2430_v29  ;;  %v2458_v38 = vmul.f32 %v2444_v30, %v2429_v34  ;;  %4335 = vmatmul.mubr.msk.bf16.vlgmr.msra.gmra.mxu1 %vm288_vm1, %v4333_v24  ;;  %v4341_v34 = vld [vmem:[%s5915_s7 + $0xe] sm:$0x3] }
 0x504   :  { %2547 = vmatprep.mubr.bf16.mxu1 %v4417_v19 }
 0x505   :  { %v2414_v41 = vpop.permute.xlu0 %2413  ;;  %v2412_v42 = vpop.permute.xlu1 %2411  ;;  %v2468_v35 = vpack.c.bf16 %v2462_v37, %v2458_v38  ;;  %v4344_v37 = vld [vmem:[%s5910_s1 + $0x20] ss:$8 sm:$0xf] }
 0x506   :  { %v2432_v62 = vsel %vm1023_vm6, %v2414_v41, %v2418_v28  ;;  %v2431_v47 = vsel %vm1023_vm6, %v2412_v42, %v2416_v27 }
 0x507   :  { %v2461_v33 = vmul.f32 %v2440_v40, %v2432_v62  ;;  %v2457_v0 = vmul.f32 %v2440_v40, %v2431_v47  ;;  %2488 = vmatprep.subr.bf16.mxu0 %v2468_v35  ;;  %v2742_v35 = vrot.slane %v4344_v37, %v4666_v10 }
 0x509   :  { %v2467_v59 = vpack.c.bf16 %v2461_v33, %v2457_v0  ;;  %v2426_v36 = vpop.permute.xlu0 %2425  ;;  %v2424_v46 = vpop.permute.xlu1 %2423 }
 0x50a   :  { %v2428_v50 = vsel %vm1023_vm6, %v2422_v31, %v2426_v36  ;;  %v2434_v48 = vsel %vm1023_vm6, %v2426_v36, %v2414_v41  ;;  %v2427_v54 = vsel %vm1023_vm6, %v2420_v32, %v2424_v46  ;;  %v2433_v52 = vsel %vm1023_vm6, %v2424_v46, %v2412_v42 }
 0x50b   :  { %v2463_v39 = vmul.f32 %v2448_v44, %v2428_v50  ;;  %v2464_v45 = vmul.f32 %v2452_v51, %v2434_v48  ;;  %v2459_v53 = vmul.f32 %v2448_v44, %v2427_v54  ;;  %v2460_v43 = vmul.f32 %v2452_v51, %v2433_v52  ;;  %2489 = vmatpush1.bf16.msra.mxu0 %v2467_v59 }
 0x50c   :  { %v2738_v59 = vrot.slane %v4344_v37, %v4676_v14 }
 0x50d   :  { %v2469_v4 = vpack.c.bf16 %v2463_v39, %v2459_v53  ;;  %v2567_v57 = vpop.permute.xlu0 %2566  ;;  %v2565_v1 = vpop.permute.xlu1 %2564  ;;  %v2470_v58 = vpack.c.bf16 %v2464_v45, %v2460_v43  ;;  %v2746_v45 = vrot.slane %v4344_v37, %v4689_v22  ;;  %v2750_v53 = vrot.slane %v4344_v37, %v4683_v20 }
 0x50e   :  { %4338 = vmatmul.mubr.msk.bf16.vlgmr.msra.gmra.mxu0 %vm288_vm1, %v4337_v49 }
 0x50f   :  { %2529 = vmatprep.subr.bf16.mxu1 %v2470_v58  ;;  %2655 = vmatprep.mubr.bf16.mxu0 %v4417_v19 }
 0x510   :  { %2530 = vmatpush1.bf16.msra.mxu1 %v2469_v4 }
 0x511   :  { %v2571_v63 = vpop.permute.xlu0 %2570  ;;  %v2569_v61 = vpop.permute.xlu1 %2568 }
 0x512   :  { %v2579_v6 = vsel %vm1174_vm7, %v2567_v57, %v2571_v63  ;;  %v2578_v55 = vsel %vm1174_vm7, %v2565_v1, %v2569_v61 }
 0x513   :  { %v2611_v2 = vmul.f32 %v2593_v60, %v2579_v6  ;;  %v2607_v5 = vmul.f32 %v2593_v60, %v2578_v55  ;;  %4339 = vmatmul.mubr.msk.bf16.vlgmr.msra.gmra.mxu1 %vm288_vm1, %v4337_v49  ;;  %v4345_v55 = vld [vmem:[%s5915_s7 + $0x10] sm:$0x3] }
 0x514   :  { %2696 = vmatprep.mubr.bf16.mxu1 %v4417_v19 }
 0x515   :  { %v2563_v7 = vpop.permute.xlu0 %2562  ;;  %v2561_v8 = vpop.permute.xlu1 %2560  ;;  %v2617_v18 = vpack.c.bf16 %v2611_v2, %v2607_v5 }
 0x516   :  { %v2581_v12 = vsel %vm1174_vm7, %v2563_v7, %v2567_v57  ;;  %v2580_v11 = vsel %vm1174_vm7, %v2561_v8, %v2565_v1 }
 0x517   :  { %v2610_v15 = vmul.f32 %v2589_v3, %v2581_v12  ;;  %v2606_v17 = vmul.f32 %v2589_v3, %v2580_v11  ;;  %2637 = vmatprep.subr.bf16.mxu0 %v2617_v18 }
 0x519   :  { %v2616_v23 = vpack.c.bf16 %v2610_v15, %v2606_v17  ;;  %v2575_v24 = vpop.permute.xlu0 %2574  ;;  %v2573_v25 = vpop.permute.xlu1 %2572 }
 0x51a   :  { %v2577_v26 = vsel %vm1174_vm7, %v2571_v63, %v2575_v24  ;;  %v2583_v28 = vsel %vm1174_vm7, %v2575_v24, %v2563_v7  ;;  %v2576_v27 = vsel %vm1174_vm7, %v2569_v61, %v2573_v25  ;;  %v2582_v16 = vsel %vm1174_vm7, %v2573_v25, %v2561_v8 }
 0x51b   :  { %v2612_v30 = vmul.f32 %v2597_v21, %v2577_v26  ;;  %v2613_v31 = vmul.f32 %v2601_v13, %v2583_v28  ;;  %v2608_v32 = vmul.f32 %v2597_v21, %v2576_v27  ;;  %v2609_v29 = vmul.f32 %v2601_v13, %v2582_v16  ;;  %2638 = vmatpush1.bf16.msra.mxu0 %v2616_v23 }
 0x51d   :  { %v2618_v38 = vpack.c.bf16 %v2612_v30, %v2608_v32  ;;  %v2716_v40 = vpop.permute.xlu0 %2715  ;;  %v2714_v41 = vpop.permute.xlu1 %2713  ;;  %v2619_v42 = vpack.c.bf16 %v2613_v31, %v2609_v29 }
 0x51e   :  { %4342 = vmatmul.mubr.msk.bf16.vlgmr.msra.gmra.mxu0 %vm288_vm1, %v4341_v34 }
 0x51f   :  { %2678 = vmatprep.subr.bf16.mxu1 %v2619_v42  ;;  %2804 = vmatprep.mubr.bf16.mxu0 %v4417_v19 }
 0x520   :  { %2679 = vmatpush1.bf16.msra.mxu1 %v2618_v38 }
 0x521   :  { %v2720_v62 = vpop.permute.xlu0 %2719  ;;  %v2718_v47 = vpop.permute.xlu1 %2717 }
 0x522   :  { %v2728_v33 = vsel %vm1325_vm8, %v2716_v40, %v2720_v62  ;;  %v2727_v0 = vsel %vm1325_vm8, %v2714_v41, %v2718_v47 }
 0x523   :  { %v2760_v44 = vmul.f32 %v2742_v35, %v2728_v33  ;;  %v2756_v51 = vmul.f32 %v2742_v35, %v2727_v0  ;;  %4343 = vmatmul.mubr.msk.bf16.vlgmr.msra.gmra.mxu1 %vm288_vm1, %v4341_v34 }
 0x524   :  { %2845 = vmatprep.mubr.bf16.mxu1 %v4417_v19 }
 0x525   :  { %v2712_v36 = vpop.permute.xlu0 %2711  ;;  %v2710_v46 = vpop.permute.xlu1 %2709  ;;  %v2766_v50 = vpack.c.bf16 %v2760_v44, %v2756_v51 }
 0x526   :  { %v2730_v48 = vsel %vm1325_vm8, %v2712_v36, %v2716_v40  ;;  %v2729_v54 = vsel %vm1325_vm8, %v2710_v46, %v2714_v41 }
 0x527   :  { %v2759_v52 = vmul.f32 %v2738_v59, %v2730_v48  ;;  %v2755_v39 = vmul.f32 %v2738_v59, %v2729_v54  ;;  %2786 = vmatprep.subr.bf16.mxu0 %v2766_v50 }
 0x529   :  { %v2765_v43 = vpack.c.bf16 %v2759_v52, %v2755_v39  ;;  %v2724_v49 = vpop.permute.xlu0 %2723  ;;  %v2722_v56 = vpop.permute.xlu1 %2721 }
 0x52a   :  { %v2726_v4 = vsel %vm1325_vm8, %v2720_v62, %v2724_v49  ;;  %v2732_v57 = vsel %vm1325_vm8, %v2724_v49, %v2712_v36  ;;  %v2725_v1 = vsel %vm1325_vm8, %v2718_v47, %v2722_v56  ;;  %v2731_v58 = vsel %vm1325_vm8, %v2722_v56, %v2710_v46 }
 0x52b   :  { %v2761_v60 = vmul.f32 %v2746_v45, %v2726_v4  ;;  %v2762_v63 = vmul.f32 %v2750_v53, %v2732_v57  ;;  %v2757_v61 = vmul.f32 %v2746_v45, %v2725_v1  ;;  %v2758_v6 = vmul.f32 %v2750_v53, %v2731_v58  ;;  %2787 = vmatpush1.bf16.msra.mxu0 %v2765_v43 }
 0x52d   :  { %v2767_v2 = vpack.c.bf16 %v2761_v60, %v2757_v61  ;;  %v2768_v5 = vpack.c.bf16 %v2762_v63, %v2758_v6 }
 0x52e   :  { %4346 = vmatmul.mubr.msk.bf16.vlgmr.msra.gmra.mxu0 %vm288_vm1, %v4345_v55 }
 0x52f   :  { %2827 = vmatprep.subr.bf16.mxu1 %v2768_v5  ;;  %3120 = vmatprep.mubr.bf16.mxu0 %v4417_v19 }
 0x530   :  { %2828 = vmatpush1.bf16.msra.mxu1 %v2767_v2 }
 0x533   :  { %4347 = vmatmul.mubr.msk.bf16.vlgmr.msra.gmra.mxu1 %vm288_vm1, %v4345_v55 }
 0x534   :  { %3161 = vmatprep.mubr.bf16.mxu1 %v4417_v19 }
 0x57e   :  { %v1736_v3 = vpop.f32.mrf.mxu0 }
 0x580   :  { %v1738_v7 = vpop.f32.mrf.mxu0 }
 0x582   :  { %v1740_v8 = vpop.f32.mrf.mxu0 }
 0x583   :  { %v1777_v18 = vpop.f32.mrf.mxu1 }
 0x584   :  { %v1741_v12 = vpop.f32.mrf.mxu0 }
 0x585   :  { %v1779_v11 = vpop.f32.mrf.mxu1 }
 0x587   :  { %v1781_v15 = vpop.f32.mrf.mxu1 }
 0x589   :  { %v1782_v17 = vpop.f32.mrf.mxu1 }
 0x58e   :  { %v1821_v21 = vpop.f32.mrf.mxu0 }
 0x58f   :  { %v1822_v13 = vadd.f32 %v1821_v21, %v1736_v3 }
 0x590   :  { %v1823_v23 = vpop.f32.mrf.mxu0 }
 0x591   :  { %v1824_v24 = vadd.f32 %v1823_v23, %v1738_v7 }
 0x592   :  { %v1825_v25 = vpop.f32.mrf.mxu0 }
 0x593   :  { %v1862_v26 = vpop.f32.mrf.mxu1 }
 0x594   :  { %v1863_v28 = vadd.f32 %v1862_v26, %v1777_v18  ;;  %v1826_v27 = vpop.f32.mrf.mxu0 }
 0x595   :  { %v1864_v16 = vpop.f32.mrf.mxu1 }
 0x596   :  { %v1865_v30 = vadd.f32 %v1864_v16, %v1779_v11 }
 0x597   :  { %v1866_v31 = vpop.f32.mrf.mxu1 }
 0x599   :  { %v1867_v32 = vpop.f32.mrf.mxu1 }
 0x59f   :  { %v1966_v29 = vpop.f32.mrf.mxu0 }
 0x5a0   :  { %v2014_v34 = vadd.f32 %v1966_v29, %v1822_v13 }
 0x5a1   :  { %v1968_v37 = vpop.f32.mrf.mxu0 }
 0x5a2   :  { %v2015_v38 = vadd.f32 %v1968_v37, %v1824_v24 }
 0x5a3   :  { %v1970_v40 = vpop.f32.mrf.mxu0  ;;  %v2007_v41 = vpop.f32.mrf.mxu1 }
 0x5a4   :  { %v2016_v42 = vadd.f32 %v2007_v41, %v1863_v28 }
 0x5a5   :  { %v1971_v35 = vpop.f32.mrf.mxu0  ;;  %v2009_v62 = vpop.f32.mrf.mxu1 }
 0x5a6   :  { %v2017_v47 = vadd.f32 %v2009_v62, %v1865_v30 }
 0x5a7   :  { %v2011_v33 = vpop.f32.mrf.mxu1 }
 0x5a9   :  { %v2012_v0 = vpop.f32.mrf.mxu1 }
 0x5ae   :  { %v2115_v44 = vpop.f32.mrf.mxu0 }
 0x5af   :  { %v2163_v13 = vadd.f32 %v2115_v44, %v2014_v34 }
 0x5b0   :  { %v2117_v51 = vpop.f32.mrf.mxu0 }
 0x5b1   :  { %v2164_v26 = vadd.f32 %v2117_v51, %v2015_v38 }
 0x5b2   :  { %v2119_v59 = vpop.f32.mrf.mxu0 }
 0x5b3   :  { %v2156_v36 = vpop.f32.mrf.mxu1 }
 0x5b4   :  { %v2120_v46 = vpop.f32.mrf.mxu0  ;;  %v2165_v32 = vadd.f32 %v2156_v36, %v2016_v42 }
 0x5b5   :  { %v2158_v50 = vpop.f32.mrf.mxu1 }
 0x5b6   :  { %v2210_v48 = vpop.f32.mrf.mxu0  ;;  %v2166_v40 = vadd.f32 %v2158_v50, %v2017_v47 }
 0x5b7   :  { %v2160_v54 = vpop.f32.mrf.mxu1  ;;  %v2258_v28 = vadd.f32 %v2210_v48, %v2163_v13 }
 0x5b8   :  { %v2212_v52 = vpop.f32.mrf.mxu0 }
 0x5b9   :  { %v2161_v39 = vpop.f32.mrf.mxu1  ;;  %v2259_v16 = vadd.f32 %v2212_v52, %v2164_v26  ;;  %v2874_v26 = vpop.xlane.xlu1 %2873 }
 0x5ba   :  { %v2214_v45 = vpop.f32.mrf.mxu0 }
 0x5bb   :  { %v2251_v53 = vpop.f32.mrf.mxu1 }
 0x5bc   :  { %v2215_v43 = vpop.f32.mrf.mxu0  ;;  %v2260_v41 = vadd.f32 %v2251_v53, %v2165_v32 }
 0x5bd   :  { %v2253_v49 = vpop.f32.mrf.mxu1 }
 0x5be   :  { %v2261_v33 = vadd.f32 %v2253_v49, %v2166_v40 }
 0x5bf   :  { %v2359_v56 = vpop.f32.mrf.mxu0  ;;  %v2255_v4 = vpop.f32.mrf.mxu1 }
 0x5c0   :  { %v2407_v30 = vadd.f32 %v2359_v56, %v2258_v28  ;;  %v5435_v56 = vld [vmem:[%s5912_s11 + $0x8] sm:$0xff] }
 0x5c1   :  { %v2361_v57 = vpop.f32.mrf.mxu0  ;;  %v2256_v1 = vpop.f32.mrf.mxu1  ;;  %v2881_v4 = vmul.f32 %v5435_v56, %v5435_v56 }
 0x5c2   :  { %v2408_v29 = vadd.f32 %v2361_v57, %v2259_v16 }
 0x5c3   :  { %v2400_v58 = vpop.f32.mrf.mxu1  ;;  %v2363_v60 = vpop.f32.mrf.mxu0 }
 0x5c4   :  { %v2409_v0 = vadd.f32 %v2400_v58, %v2260_v41  ;;  %v5444_v58 = vld [vmem:[%s5912_s11] sm:$0xff] }
 0x5c5   :  { %v2402_v63 = vpop.f32.mrf.mxu1  ;;  %v2364_v61 = vpop.f32.mrf.mxu0  ;;  %v2880_v60 = vmul.f32 %v5444_v58, %v5444_v58 }
 0x5c6   :  { %v2410_v46 = vadd.f32 %v2402_v63, %v2261_v33 }
 0x5c7   :  { %v2404_v6 = vpop.f32.mrf.mxu1 }
 0x5c9   :  { %v2405_v55 = vpop.f32.mrf.mxu1 }
 0x5ca   :  { %v5457_v55 = vld [vmem:[%s5912_s11 + $0x20] sm:$0xff] }
 0x5ce   :  { %v2508_v2 = vpop.f32.mrf.mxu0 }
 0x5cf   :  { %v2556_v37 = vadd.f32 %v2508_v2, %v2407_v30  ;;  %v2882_v2 = vmul.f32 %v5457_v55, %v5457_v55 }
 0x5d0   :  { %v2510_v5 = vpop.f32.mrf.mxu0 }
 0x5d1   :  { %v2557_v35 = vadd.f32 %v2510_v5, %v2408_v29  ;;  %v2888_v5 = vadd.f32 %v2881_v4, %v2880_v60 }
 0x5d2   :  { %v2512_v3 = vpop.f32.mrf.mxu0 }
 0x5d3   :  { %v2549_v7 = vpop.f32.mrf.mxu1 }
 0x5d4   :  { %v2513_v8 = vpop.f32.mrf.mxu0  ;;  %v2558_v54 = vadd.f32 %v2549_v7, %v2409_v0 }
 0x5d5   :  { %v2551_v18 = vpop.f32.mrf.mxu1 }
 0x5d6   :  { %v2559_v48 = vadd.f32 %v2551_v18, %v2410_v46  ;;  %v2908_v46 = vld [vmem:[%s5916_s8] sm:$0xff] }
 0x5d7   :  { %v2553_v12 = vpop.f32.mrf.mxu1 }
 0x5d9   :  { %v2554_v11 = vpop.f32.mrf.mxu1 }
 0x5da   :  { %v5471_v11 = vld [vmem:[%s5912_s11 + $0x28] sm:$0xff] }
 0x5de   :  { %v2657_v15 = vpop.f32.mrf.mxu0 }
 0x5df   :  { %v2705_v62 = vadd.f32 %v2657_v15, %v2556_v37  ;;  %v2883_v15 = vmul.f32 %v5471_v11, %v5471_v11 }
 0x5e0   :  { %v2659_v17 = vpop.f32.mrf.mxu0 }
 0x5e1   :  { %v2706_v34 = vadd.f32 %v2659_v17, %v2557_v35 }
 0x5e2   :  { %v2661_v21 = vpop.f32.mrf.mxu0 }
 0x5e3   :  { %v2698_v23 = vpop.f32.mrf.mxu1 }
 0x5e4   :  { %v2662_v24 = vpop.f32.mrf.mxu0  ;;  %v2707_v52 = vadd.f32 %v2698_v23, %v2558_v54  ;;  %v2889_v23 = vadd.f32 %v2888_v5, %v2882_v2 }
 0x5e5   :  { %v2700_v25 = vpop.f32.mrf.mxu1 }
 0x5e6   :  { %v2708_v36 = vadd.f32 %v2700_v25, %v2559_v48  ;;  %v2890_v25 = vadd.f32 %v2889_v23, %v2883_v15 }
 0x5e7   :  { %v2702_v27 = vpop.f32.mrf.mxu1 }
 0x5e8   :  { %v2898_v27 = vmul.f32 0.001953125, %v2874_v26 }
 0x5e9   :  { %v2703_v31 = vpop.f32.mrf.mxu1 }
 0x5ea   :  { %v2902_v37 = vmul.f32 %v2898_v27, %v2898_v27 }
 0x5ee   :  { %v2806_v59 = vpop.f32.mrf.mxu0 }
 0x5ef   :  { %v2854_v44 = vadd.f32 %v2806_v59, %v2705_v62 }
 0x5f0   :  { %v2808_v38 = vpop.f32.mrf.mxu0 }
 0x5f1   :  { %2858 = vst [vmem:[#allocation2 + $0x8] sm:$0xf] %v2854_v44  ;;  %v2855_v51 = vadd.f32 %v2808_v38, %v2706_v34  ;;  %v2909_v34 = vld [vmem:[%s5916_s8 + $0x8] sm:$0xff] }
 0x5f2   :  { %v2810_v39 = vpop.f32.mrf.mxu0 }
 0x5f3   :  { %2859 = vst [vmem:[#allocation2 + $0x20] sm:$0xf] %v2855_v51  ;;  %v2847_v42 = vpop.f32.mrf.mxu1  ;;  %v2916_v39 = vld [vmem:[%s5917_s9] sm:$0xff] }
 0x5f4   :  { %v2856_v47 = vadd.f32 %v2847_v42, %v2707_v52  ;;  %v2811_v50 = vpop.f32.mrf.mxu0  ;;  %v2917_v52 = vld [vmem:[%s5917_s9 + $0x8] sm:$0xff] }
 0x5f5   :  { %v2849_v45 = vpop.f32.mrf.mxu1 }
 0x5f6   :  { %2860 = vst [vmem:[#allocation2 + $0x28] sm:$0xf] %v2856_v47  ;;  %v2857_v53 = vadd.f32 %v2849_v45, %v2708_v36 }
 0x5f7   :  { %v2851_v43 = vpop.f32.mrf.mxu1 }
 0x5f8   :  { %2861 = vst [vmem:[#allocation2 + $0x38] sm:$0xf] %v2857_v53  ;;  %v5430_v49 = vld [vmem:[#allocation2 + $0x8] sm:$0xff] }
 0x5f9   :  { %v2852_v57 = vpop.f32.mrf.mxu1  ;;  %v2884_v61 = vmul.f32 %v5430_v49, %v5430_v49 }
 0x5fa   :  { %v5439_v1 = vld [vmem:[#allocation2 + $0x20] sm:$0xff] }
 0x5fb   :  { %v2875_v63 = vadd.f32 %v5439_v1, %v5430_v49  ;;  %v2885_v6 = vmul.f32 %v5439_v1, %v5439_v1 }
 0x5fd   :  { %v5461_v3 = vld [vmem:[#allocation2 + $0x28] sm:$0xff]  ;;  %v2893_v7 = vadd.f32 %v2885_v6, %v2884_v61 }
 0x5fe   :  { %v2876_v8 = vadd.f32 %v2875_v63, %v5461_v3  ;;  %v2886_v18 = vmul.f32 %v5461_v3, %v5461_v3 }
 0x5ff   :  { %v5466_v12 = vld [vmem:[#allocation2 + $0x38] sm:$0xff] }
 0x600   :  { %v2877_v17 = vadd.f32 %v2876_v8, %v5466_v12  ;;  %v2887_v21 = vmul.f32 %v5466_v12, %v5466_v12  ;;  %v2894_v13 = vadd.f32 %v2893_v7, %v2886_v18 }
 0x602   :  { %2878 = vadd.xlane.f32.xlu0 %v2877_v17  ;;  %v2895_v24 = vadd.f32 %v2894_v13, %v2887_v21 }
 0x604   :  { %2896 = vadd.xlane.f32.xlu1 %v2895_v24 }
 0x606   :  { %2891 = vadd.xlane.f32.xlu0 %v2890_v25 }
 0x68b   :  { %v2879_v28 = vpop.xlane.xlu0 %2878 }
 0x68c   :  { %v2899_v16 = vmul.f32 0.001953125, %v2879_v28 }
 0x68d   :  { %v2897_v30 = vpop.xlane.xlu1 %2896 }
 0x68e   :  { %v2903_v31 = vmul.f32 %v2899_v16, %v2899_v16  ;;  %v2901_v32 = vmul.f32 0.001953125, %v2897_v30 }
 0x68f   :  { %v2892_v29 = vpop.xlane.xlu0 %2891 }
 0x690   :  { %v2905_v40 = vsub.f32 %v2901_v32, %v2903_v31  ;;  %v2900_v41 = vmul.f32 0.001953125, %v2892_v29 }
 0x692   :  { %v2907_v35 = vmax.f32 %v2905_v40, 0.0  ;;  %v2904_v62 = vsub.f32 %v2900_v41, %v2902_v37 }
 0x694   :  { %v2911_v33 = vadd.f32 1e-05, %v2907_v35  ;;  %v2906_v0 = vmax.f32 %v2904_v62, 0.0 }
 0x696   :  { %4407 = vrsqrt.f32 %v2911_v33  ;;  %v2910_v59 = vadd.f32 1e-05, %v2906_v0 }
 0x698   :  { %4409 = vrsqrt.f32 %v2910_v59 }
 0x6a3   :  { %v4408_v44 = vpop.eup %4407 }
 0x6a4   :  { %v2915_v54 = vmul.f32 %v4408_v44, %v2909_v34 }
 0x6a5   :  { %v4410_v38 = vpop.eup %4409 }
 0x6a6   :  { %2929 = vperm.xlu1 %4396, %v2915_v54   ;;  %v2914_v51 = vmul.f32 %v4410_v38, %v2908_v46  ;;  %v2919_v48 = vmul.f32 %v2915_v54, %v2899_v16 }
 0x6a8   :  { %2924 = vperm.xlu0 %4395, %v2914_v51   ;;  %v2918_v42 = vmul.f32 %v2914_v51, %v2898_v27  ;;  %v2921_v36 = vsub.f32 %v2917_v52, %v2919_v48 }
 0x6aa   :  { %v2920_v47 = vsub.f32 %v2916_v39, %v2918_v42 }
 0x6ac   :  { %2947 = vperm.xlu0 %4395, %v2921_v36   ;;  %2942 = vperm.xlu1 %4396, %v2920_v47  }
 0x721   :  { %v2930_v50 = vpop.permute.xlu1 %2929 }
 0x722   :  { %v2936_v53 = vmul.f32 %v2930_v50, %v5430_v49  ;;  %v2937_v60 = vmul.f32 %v2930_v50, %v5439_v1  ;;  %v2938_v18 = vmul.f32 %v2930_v50, %v5461_v3  ;;  %v2939_v17 = vmul.f32 %v2930_v50, %v5466_v12  ;;  %v2990_v50 = vld [vmem:[%s5910_s1] ss:$8 sm:$0xf] }
 0x723   :  { %v2925_v45 = vpop.permute.xlu0 %2924 }
 0x724   :  { %v2932_v43 = vmul.f32 %v5444_v58, %v2925_v45  ;;  %v2933_v61 = vmul.f32 %v5435_v56, %v2925_v45  ;;  %v2934_v49 = vmul.f32 %v5457_v55, %v2925_v45  ;;  %v2935_v3 = vmul.f32 %v5471_v11, %v2925_v45  ;;  %v4348_v11 = vld [vmem:[%s5910_s1 + $0x1] ss:$8 sm:$0xf] }
 0x725   :  { %v3058_v28 = vrot.slane %v4348_v11, %v4666_v10  ;;  %v3062_v40 = vrot.slane %v4348_v11, %v4689_v22  ;;  %v3054_v0 = vrot.slane %v4348_v11, %v4676_v14  ;;  %v3066_v59 = vrot.slane %v4348_v11, %v4683_v20 }
 0x726   :  { %v2995_v11 = vrot.slane %v2990_v50, %v4676_v14 }
 0x727   :  { %v2948_v4 = vpop.permute.xlu0 %2947  ;;  %v2943_v57 = vpop.permute.xlu1 %2942 }
 0x728   :  { %v2954_v63 = vadd.f32 %v2948_v4, %v2936_v53  ;;  %v2950_v6 = vadd.f32 %v2943_v57, %v2932_v43  ;;  %v2955_v2 = vadd.f32 %v2948_v4, %v2937_v60  ;;  %v2951_v7 = vadd.f32 %v2943_v57, %v2933_v61 }
 0x729   :  { %v2956_v1 = vadd.f32 %v2948_v4, %v2938_v18  ;;  %v2952_v56 = vadd.f32 %v2943_v57, %v2934_v49  ;;  %v2957_v55 = vadd.f32 %v2948_v4, %v2939_v17  ;;  %v2953_v13 = vadd.f32 %v2943_v57, %v2935_v3 }
 0x72a   :  { %v5494_v5 = vmax.f32 %v2954_v63, 0.0  ;;  %v5496_v8 = vmax.f32 %v2950_v6, 0.0  ;;  %v5504_v58 = vmax.f32 %v2955_v2, 0.0  ;;  %v5506_v15 = vmax.f32 %v2951_v7, 0.0  ;;  %v4349_v63 = vld [vmem:[%s5918_s10 + $0x2] sm:$0x3] }
 0x72b   :  { %v5514_v21 = vmax.f32 %v2956_v1, 0.0  ;;  %v5516_v23 = vmax.f32 %v2952_v56, 0.0  ;;  %v5522_v12 = vmax.f32 %v2957_v55, 0.0  ;;  %v5524_v24 = vmax.f32 %v2953_v13, 0.0 }
 0x72c   :  { %3027 = vrot.lane.b32.xlu0 %v5494_v5, %s4418_s2  ;;  %3025 = vrot.lane.b32.xlu1 %v5496_v8, %s4418_s2  ;;  %v2999_v60 = vrot.slane %v2990_v50, %v4666_v10  ;;  %v3003_v56 = vrot.slane %v2990_v50, %v4689_v22 }
 0x730   :  { %3031 = vrot.lane.b32.xlu0 %v5504_v58, %s4418_s2  ;;  %3029 = vrot.lane.b32.xlu1 %v5506_v15, %s4418_s2 }
 0x734   :  { %3035 = vrot.lane.b32.xlu0 %v5514_v21, %s4418_s2  ;;  %3033 = vrot.lane.b32.xlu1 %v5516_v23, %s4418_s2 }
 0x738   :  { %3039 = vrot.lane.b32.xlu0 %v5522_v12, %s4418_s2  ;;  %3037 = vrot.lane.b32.xlu1 %v5524_v24, %s4418_s2 }
 0x73c   :  { %2968 = vrot.lane.b32.xlu0 %v5494_v5, %s4419_s3  ;;  %2966 = vrot.lane.b32.xlu1 %v5496_v8, %s4419_s3 }
 0x740   :  { %2972 = vrot.lane.b32.xlu0 %v5504_v58, %s4419_s3  ;;  %2970 = vrot.lane.b32.xlu1 %v5506_v15, %s4419_s3 }
 0x744   :  { %2976 = vrot.lane.b32.xlu0 %v5514_v21, %s4419_s3  ;;  %2974 = vrot.lane.b32.xlu1 %v5516_v23, %s4419_s3 }
 0x748   :  { %2980 = vrot.lane.b32.xlu0 %v5522_v12, %s4419_s3  ;;  %2978 = vrot.lane.b32.xlu1 %v5524_v24, %s4419_s3 }
 0x74c   :  { %3257 = vrot.lane.b32.xlu0 %v5494_v5, %s4420_s28  ;;  %3255 = vrot.lane.b32.xlu1 %v5496_v8, %s4420_s28 }
 0x750   :  { %3261 = vrot.lane.b32.xlu0 %v5504_v58, %s4420_s28  ;;  %3259 = vrot.lane.b32.xlu1 %v5506_v15, %s4420_s28 }
 0x754   :  { %3265 = vrot.lane.b32.xlu0 %v5514_v21, %s4420_s28  ;;  %3263 = vrot.lane.b32.xlu1 %v5516_v23, %s4420_s28 }
 0x758   :  { %3269 = vrot.lane.b32.xlu0 %v5522_v12, %s4420_s28  ;;  %3267 = vrot.lane.b32.xlu1 %v5524_v24, %s4420_s28 }
 0x75c   :  { %3406 = vrot.lane.b32.xlu0 %v5494_v5, %s4421_s29  ;;  %3404 = vrot.lane.b32.xlu1 %v5496_v8, %s4421_s29 }
 0x760   :  { %3410 = vrot.lane.b32.xlu0 %v5504_v58, %s4421_s29  ;;  %3408 = vrot.lane.b32.xlu1 %v5506_v15, %s4421_s29 }
 0x764   :  { %3414 = vrot.lane.b32.xlu0 %v5514_v21, %s4421_s29  ;;  %3412 = vrot.lane.b32.xlu1 %v5516_v23, %s4421_s29 }
 0x768   :  { %3418 = vrot.lane.b32.xlu0 %v5522_v12, %s4421_s29  ;;  %3416 = vrot.lane.b32.xlu1 %v5524_v24, %s4421_s29 }
 0x76c   :  { %3650 = vrot.lane.b32.xlu0 %v5494_v5, %s4422_s30  ;;  %3648 = vrot.lane.b32.xlu1 %v5496_v8, %s4422_s30 }
 0x770   :  { %3654 = vrot.lane.b32.xlu0 %v5504_v58, %s4422_s30  ;;  %3652 = vrot.lane.b32.xlu1 %v5506_v15, %s4422_s30 }
 0x774   :  { %3658 = vrot.lane.b32.xlu0 %v5514_v21, %s4422_s30  ;;  %3656 = vrot.lane.b32.xlu1 %v5516_v23, %s4422_s30 }
 0x778   :  { %3662 = vrot.lane.b32.xlu0 %v5522_v12, %s4422_s30  ;;  %3660 = vrot.lane.b32.xlu1 %v5524_v24, %s4422_s30 }
 0x77c   :  { %3799 = vrot.lane.b32.xlu0 %v5494_v5, %s4423_s12  ;;  %3797 = vrot.lane.b32.xlu1 %v5496_v8, %s4423_s12 }
 0x780   :  { %3803 = vrot.lane.b32.xlu0 %v5504_v58, %s4423_s12  ;;  %3801 = vrot.lane.b32.xlu1 %v5506_v15, %s4423_s12 }
 0x784   :  { %3807 = vrot.lane.b32.xlu0 %v5514_v21, %s4423_s12  ;;  %3805 = vrot.lane.b32.xlu1 %v5516_v23, %s4423_s12 }
 0x788   :  { %3811 = vrot.lane.b32.xlu0 %v5522_v12, %s4423_s12  ;;  %3809 = vrot.lane.b32.xlu1 %v5524_v24, %s4423_s12 }
 0x78c   :  { %3948 = vrot.lane.b32.xlu0 %v5494_v5, %s4424_s13  ;;  %3946 = vrot.lane.b32.xlu1 %v5496_v8, %s4424_s13 }
 0x790   :  { %3952 = vrot.lane.b32.xlu0 %v5504_v58, %s4424_s13  ;;  %3950 = vrot.lane.b32.xlu1 %v5506_v15, %s4424_s13 }
 0x794   :  { %3956 = vrot.lane.b32.xlu0 %v5514_v21, %s4424_s13  ;;  %3954 = vrot.lane.b32.xlu1 %v5516_v23, %s4424_s13 }
 0x798   :  { %3960 = vrot.lane.b32.xlu0 %v5522_v12, %s4424_s13  ;;  %3958 = vrot.lane.b32.xlu1 %v5524_v24, %s4424_s13 }
 0x79c   :  { %4097 = vrot.lane.b32.xlu0 %v5494_v5, %s4425_s14  ;;  %4095 = vrot.lane.b32.xlu1 %v5496_v8, %s4425_s14 }
 0x79e   :  { %v3028_v25 = vpop.permute.xlu0 %3027  ;;  %v3026_v26 = vpop.permute.xlu1 %3025 }
 0x7a0   :  { %4101 = vrot.lane.b32.xlu0 %v5504_v58, %s4425_s14  ;;  %4099 = vrot.lane.b32.xlu1 %v5506_v15, %s4425_s14 }
 0x7a2   :  { %v3032_v27 = vpop.permute.xlu0 %3031  ;;  %v3030_v30 = vpop.permute.xlu1 %3029 }
 0x7a3   :  { %v3046_v16 = vsel %vm242_vm0, %v3028_v25, %v3032_v27  ;;  %v3045_v32 = vsel %vm242_vm0, %v3026_v26, %v3030_v30 }
 0x7a4   :  { %v3076_v31 = vmul.f32 %v3058_v28, %v3046_v16  ;;  %4105 = vrot.lane.b32.xlu0 %v5514_v21, %s4425_s14  ;;  %v3072_v29 = vmul.f32 %v3058_v28, %v3045_v32  ;;  %4103 = vrot.lane.b32.xlu1 %v5516_v23, %s4425_s14 }
 0x7a6   :  { %v3036_v37 = vpop.permute.xlu0 %3035  ;;  %v3034_v41 = vpop.permute.xlu1 %3033  ;;  %v3082_v35 = vpack.c.bf16 %v3076_v31, %v3072_v29 }
 0x7a7   :  { %v3044_v62 = vsel %vm242_vm0, %v3032_v27, %v3036_v37  ;;  %v3043_v33 = vsel %vm242_vm0, %v3030_v30, %v3034_v41 }
 0x7a8   :  { %4109 = vrot.lane.b32.xlu0 %v5522_v12, %s4425_s14  ;;  %4107 = vrot.lane.b32.xlu1 %v5524_v24, %s4425_s14  ;;  %v3077_v44 = vmul.f32 %v3062_v40, %v3044_v62  ;;  %v3073_v46 = vmul.f32 %v3062_v40, %v3043_v33  ;;  %v4354_v62 = vld [vmem:[%s5910_s1 + $0x2] ss:$8 sm:$0xf] }
 0x7a9   :  { %3102 = vmatprep.subr.bf16.mxu0 %v3082_v35 }
 0x7aa   :  { %v3040_v34 = vpop.permute.xlu0 %3039  ;;  %v3038_v51 = vpop.permute.xlu1 %3037  ;;  %v3083_v57 = vpack.c.bf16 %v3077_v44, %v3073_v46  ;;  %v3288_v46 = vrot.slane %v4354_v62, %v4666_v10 }
 0x7ab   :  { %v3042_v54 = vsel %vm242_vm0, %v3036_v37, %v3040_v34  ;;  %v3048_v38 = vsel %vm242_vm0, %v3040_v34, %v3028_v25  ;;  %v3041_v39 = vsel %vm242_vm0, %v3034_v41, %v3038_v51  ;;  %v3047_v42 = vsel %vm242_vm0, %v3038_v51, %v3026_v26 }
 0x7ac   :  { %v3075_v48 = vmul.f32 %v3054_v0, %v3048_v38  ;;  %v3078_v52 = vmul.f32 %v3066_v59, %v3042_v54  ;;  %v3071_v36 = vmul.f32 %v3054_v0, %v3047_v42  ;;  %v3074_v47 = vmul.f32 %v3066_v59, %v3041_v39  ;;  %v3020_v54 = vld [vmem:[%s5918_s10] sm:$0x3] }
 0x7ad   :  { %v3007_v25 = vrot.slane %v2990_v50, %v4683_v20 }
 0x7ae   :  { %v2969_v45 = vpop.permute.xlu0 %2968  ;;  %v3081_v53 = vpack.c.bf16 %v3075_v48, %v3071_v36  ;;  %v2967_v43 = vpop.permute.xlu1 %2966  ;;  %v3084_v4 = vpack.c.bf16 %v3078_v52, %v3074_v47  ;;  %v3292_v47 = vrot.slane %v4354_v62, %v4689_v22 }
 0x7b0   :  { %3103 = vmatpush1.bf16.msra.mxu0 %v3081_v53  ;;  %3143 = vmatprep.subr.bf16.mxu1 %v3084_v4  ;;  %v3284_v4 = vrot.slane %v4354_v62, %v4676_v14 }
 0x7b1   :  { %3144 = vmatpush1.bf16.msra.mxu1 %v3083_v57  ;;  %v3296_v57 = vrot.slane %v4354_v62, %v4683_v20 }
 0x7b2   :  { %v2973_v61 = vpop.permute.xlu0 %2972  ;;  %v2971_v2 = vpop.permute.xlu1 %2970 }
 0x7b3   :  { %v2987_v6 = vsel %vm182_vm2, %v2969_v45, %v2973_v61  ;;  %v2986_v18 = vsel %vm182_vm2, %v2967_v43, %v2971_v2  ;;  %4350 = vmatmul.mubr.msk.bf16.vlgmr.msra.gmra.mxu0 %vm288_vm1, %v4349_v63 }
 0x7b4   :  { %v3017_v7 = vmul.f32 %v2999_v60, %v2987_v6  ;;  %v3013_v49 = vmul.f32 %v2999_v60, %v2986_v18  ;;  %4351 = vmatmul.mubr.msk.bf16.vlgmr.msra.gmra.mxu1 %vm288_vm1, %v4349_v63  ;;  %3205 = vmatprep.mubr.bf16.mxu0 %v4417_v19 }
 0x7b5   :  { %3246 = vmatprep.mubr.bf16.mxu1 %v4417_v19 }
 0x7b6   :  { %v2977_v1 = vpop.permute.xlu0 %2976  ;;  %v2975_v17 = vpop.permute.xlu1 %2974  ;;  %v3022_v3 = vpack.c.bf16 %v3017_v7, %v3013_v49 }
 0x7b7   :  { %v2985_v55 = vsel %vm182_vm2, %v2973_v61, %v2977_v1  ;;  %v2984_v13 = vsel %vm182_vm2, %v2971_v2, %v2975_v17 }
 0x7b8   :  { %3187 = vmatprep.subr.bf16.mxu0 %v3022_v3  ;;  %v3018_v28 = vmul.f32 %v3003_v56, %v2985_v55  ;;  %v3014_v27 = vmul.f32 %v3003_v56, %v2984_v13  ;;  %v4358_v55 = vld [vmem:[%s5910_s1 + $0x3] ss:$8 sm:$0xf] }
 0x7ba   :  { %v2981_v26 = vpop.permute.xlu0 %2980  ;;  %v2979_v31 = vpop.permute.xlu1 %2978  ;;  %v3023_v44 = vpack.c.bf16 %v3018_v28, %v3014_v27  ;;  %v3437_v27 = vrot.slane %v4358_v55, %v4666_v10 }
 0x7bb   :  { %v2983_v16 = vsel %vm182_vm2, %v2977_v1, %v2981_v26  ;;  %v2989_v30 = vsel %vm182_vm2, %v2981_v26, %v2969_v45  ;;  %v2982_v37 = vsel %vm182_vm2, %v2975_v17, %v2979_v31  ;;  %v2988_v40 = vsel %vm182_vm2, %v2979_v31, %v2967_v43 }
 0x7bc   :  { %v3016_v32 = vmul.f32 %v2995_v11, %v2989_v30  ;;  %v3019_v29 = vmul.f32 %v3007_v25, %v2983_v16  ;;  %v3012_v41 = vmul.f32 %v2995_v11, %v2988_v40  ;;  %v3015_v35 = vmul.f32 %v3007_v25, %v2982_v37  ;;  %v4355_v16 = vld [vmem:[%s5918_s10 + $0x4] sm:$0x3] }
 0x7be   :  { %v3258_v33 = vpop.permute.xlu0 %3257  ;;  %v3021_v0 = vpack.c.bf16 %v3016_v32, %v3012_v41  ;;  %v3256_v59 = vpop.permute.xlu1 %3255  ;;  %v3024_v34 = vpack.c.bf16 %v3019_v29, %v3015_v35  ;;  %v3441_v35 = vrot.slane %v4358_v55, %v4689_v22 }
 0x7c0   :  { %3188 = vmatpush1.bf16.msra.mxu0 %v3021_v0  ;;  %3228 = vmatprep.subr.bf16.mxu1 %v3024_v34  ;;  %v3433_v34 = vrot.slane %v4358_v55, %v4676_v14 }
 0x7c1   :  { %3229 = vmatpush1.bf16.msra.mxu1 %v3023_v44  ;;  %v3445_v44 = vrot.slane %v4358_v55, %v4683_v20 }
 0x7c2   :  { %v3262_v38 = vpop.permute.xlu0 %3261  ;;  %v3260_v48 = vpop.permute.xlu1 %3259 }
 0x7c3   :  { %v3276_v51 = vsel %vm475_vm3, %v3258_v33, %v3262_v38  ;;  %v3275_v39 = vsel %vm475_vm3, %v3256_v59, %v3260_v48  ;;  %4352 = vmatmul.mubr.msk.bf16.vlgmr.msra.gmra.mxu0 %vm288_vm1, %v3020_v54 }
 0x7c4   :  { %v3306_v52 = vmul.f32 %v3288_v46, %v3276_v51  ;;  %v3302_v42 = vmul.f32 %v3288_v46, %v3275_v39  ;;  %4353 = vmatmul.mubr.msk.bf16.vlgmr.msra.gmra.mxu1 %vm288_vm1, %v3020_v54  ;;  %3350 = vmatprep.mubr.bf16.mxu0 %v4417_v19 }
 0x7c5   :  { %3391 = vmatprep.mubr.bf16.mxu1 %v4417_v19 }
 0x7c6   :  { %v3266_v36 = vpop.permute.xlu0 %3265  ;;  %v3264_v50 = vpop.permute.xlu1 %3263  ;;  %v3312_v45 = vpack.c.bf16 %v3306_v52, %v3302_v42 }
 0x7c7   :  { %v3274_v53 = vsel %vm475_vm3, %v3262_v38, %v3266_v36  ;;  %v3273_v43 = vsel %vm475_vm3, %v3260_v48, %v3264_v50 }
 0x7c8   :  { %3332 = vmatprep.subr.bf16.mxu0 %v3312_v45  ;;  %v3307_v63 = vmul.f32 %v3292_v47, %v3274_v53  ;;  %v3303_v61 = vmul.f32 %v3292_v47, %v3273_v43 }
 0x7ca   :  { %v3270_v60 = vpop.permute.xlu0 %3269  ;;  %v3268_v7 = vpop.permute.xlu1 %3267  ;;  %v3313_v28 = vpack.c.bf16 %v3307_v63, %v3303_v61  ;;  %v3556_v63 = vpack.c.bf16 %v5504_v58, %v5506_v15  ;;  %v4365_v61 = vld [vmem:[%s5910_s1 + $0x5] ss:$8 sm:$0xf]  ;;  %v3555_v15 = vpack.c.bf16 %v5494_v5, %v5496_v8 }
 0x7cb   :  { %v3272_v6 = vsel %vm475_vm3, %v3266_v36, %v3270_v60  ;;  %v3278_v2 = vsel %vm475_vm3, %v3270_v60, %v3258_v33  ;;  %v3271_v1 = vsel %vm475_vm3, %v3264_v50, %v3268_v7  ;;  %v3277_v56 = vsel %vm475_vm3, %v3268_v7, %v3256_v59 }
 0x7cc   :  { %v3305_v18 = vmul.f32 %v3284_v4, %v3278_v2  ;;  %v3308_v49 = vmul.f32 %v3296_v57, %v3272_v6  ;;  %v3301_v17 = vmul.f32 %v3284_v4, %v3277_v56  ;;  %v3304_v3 = vmul.f32 %v3296_v57, %v3271_v1  ;;  %v4359_v2 = vld [vmem:[%s5918_s10 + $0x6] sm:$0x3] }
 0x7cd   :  { %v3558_v6 = vpack.c.bf16 %v5522_v12, %v5524_v24  ;;  %v3557_v24 = vpack.c.bf16 %v5514_v21, %v5516_v23  ;;  %v3681_v1 = vrot.slane %v4365_v61, %v4666_v10  ;;  %v3685_v23 = vrot.slane %v4365_v61, %v4689_v22 }
 0x7ce   :  { %v3407_v13 = vpop.permute.xlu0 %3406  ;;  %v3311_v11 = vpack.c.bf16 %v3305_v18, %v3301_v17  ;;  %v3405_v25 = vpop.permute.xlu1 %3404  ;;  %v3314_v26 = vpack.c.bf16 %v3308_v49, %v3304_v3  ;;  %v3677_v18 = vrot.slane %v4365_v61, %v4676_v14 }
 0x7d0   :  { %3333 = vmatpush1.bf16.msra.mxu0 %v3311_v11  ;;  %3373 = vmatprep.subr.bf16.mxu1 %v3314_v26 }
 0x7d1   :  { %3374 = vmatpush1.bf16.msra.mxu1 %v3313_v28 }
 0x7d2   :  { %v3411_v30 = vpop.permute.xlu0 %3410  ;;  %v3409_v32 = vpop.permute.xlu1 %3408 }
 0x7d3   :  { %v3425_v31 = vsel %vm626_vm4, %v3407_v13, %v3411_v30  ;;  %v3424_v37 = vsel %vm626_vm4, %v3405_v25, %v3409_v32  ;;  %4356 = vmatmul.mubr.msk.bf16.vlgmr.msra.gmra.mxu0 %vm288_vm1, %v4355_v16 }
 0x7d4   :  { %v3455_v29 = vmul.f32 %v3437_v27, %v3425_v31  ;;  %v3451_v40 = vmul.f32 %v3437_v27, %v3424_v37  ;;  %4357 = vmatmul.mubr.msk.bf16.vlgmr.msra.gmra.mxu1 %vm288_vm1, %v4355_v16  ;;  %3499 = vmatprep.mubr.bf16.mxu0 %v4417_v19 }
 0x7d5   :  { %3540 = vmatprep.mubr.bf16.mxu1 %v4417_v19 }
 0x7d6   :  { %v3415_v41 = vpop.permute.xlu0 %3414  ;;  %v3413_v62 = vpop.permute.xlu1 %3412  ;;  %v3461_v33 = vpack.c.bf16 %v3455_v29, %v3451_v40 }
 0x7d7   :  { %v3423_v0 = vsel %vm626_vm4, %v3411_v30, %v3415_v41  ;;  %v3422_v59 = vsel %vm626_vm4, %v3409_v32, %v3413_v62 }
 0x7d8   :  { %3481 = vmatprep.subr.bf16.mxu0 %v3461_v33  ;;  %v3456_v54 = vmul.f32 %v3441_v35, %v3423_v0  ;;  %v3452_v38 = vmul.f32 %v3441_v35, %v3422_v59 }
 0x7da   :  { %v3419_v46 = vpop.permute.xlu0 %3418  ;;  %v3417_v52 = vpop.permute.xlu1 %3416  ;;  %v3462_v60 = vpack.c.bf16 %v3456_v54, %v3452_v38 }
 0x7db   :  { %v3421_v51 = vsel %vm626_vm4, %v3415_v41, %v3419_v46  ;;  %v3427_v48 = vsel %vm626_vm4, %v3419_v46, %v3407_v13  ;;  %v3420_v36 = vsel %vm626_vm4, %v3413_v62, %v3417_v52  ;;  %v3426_v47 = vsel %vm626_vm4, %v3417_v52, %v3405_v25  ;;  %v4362_v25 = vld [vmem:[%s5918_s10 + $0x8] sm:$0x3] }
 0x7dc   :  { %v3454_v39 = vmul.f32 %v3433_v34, %v3427_v48  ;;  %v3457_v42 = vmul.f32 %v3445_v44, %v3421_v51  ;;  %v3450_v50 = vmul.f32 %v3433_v34, %v3426_v47  ;;  %v3453_v45 = vmul.f32 %v3445_v44, %v3420_v36  ;;  %v4369_v34 = vld [vmem:[%s5910_s1 + $0x6] ss:$8 sm:$0xf]  ;;  %v4366_v44 = vld [vmem:[%s5918_s10 + $0xa] sm:$0x3] }
 0x7dd   :  { %v3689_v13 = vrot.slane %v4365_v61, %v4683_v20  ;;  %v3826_v54 = vrot.slane %v4369_v34, %v4676_v14  ;;  %v3830_v52 = vrot.slane %v4369_v34, %v4666_v10 }
 0x7de   :  { %v3651_v53 = vpop.permute.xlu0 %3650  ;;  %v3460_v43 = vpack.c.bf16 %v3454_v39, %v3450_v50  ;;  %v3649_v4 = vpop.permute.xlu1 %3648  ;;  %v3463_v57 = vpack.c.bf16 %v3457_v42, %v3453_v45 }
 0x7e0   :  { %3482 = vmatpush1.bf16.msra.mxu0 %v3460_v43  ;;  %3522 = vmatprep.subr.bf16.mxu1 %v3463_v57  ;;  %v3834_v43 = vrot.slane %v4369_v34, %v4689_v22 }
 0x7e1   :  { %3523 = vmatpush1.bf16.msra.mxu1 %v3462_v60  ;;  %3576 = vmatprep.subr.bf16.mxu0 %v3556_v63 }
 0x7e2   :  { %v3655_v7 = vpop.permute.xlu0 %3654  ;;  %3617 = vmatprep.subr.bf16.mxu1 %v3558_v6  ;;  %v3653_v58 = vpop.permute.xlu1 %3652 }
 0x7e3   :  { %v3669_v49 = vsel %vm872_vm5, %v3651_v53, %v3655_v7  ;;  %v3668_v12 = vsel %vm872_vm5, %v3649_v4, %v3653_v58  ;;  %4360 = vmatmul.mubr.msk.bf16.vlgmr.msra.gmra.mxu0 %vm288_vm1, %v4359_v2 }
 0x7e4   :  { %4361 = vmatmul.mubr.msk.bf16.vlgmr.msra.gmra.mxu1 %vm288_vm1, %v4359_v2  ;;  %3577 = vmatpush1.bf16.msra.mxu0 %v3555_v15  ;;  %v3698_v5 = vmul.f32 %v3677_v18, %v3669_v49  ;;  %v3694_v8 = vmul.f32 %v3677_v18, %v3668_v12 }
 0x7e5   :  { %3618 = vmatpush1.bf16.msra.mxu1 %v3557_v24  ;;  %3594 = vmatprep.mubr.bf16.mxu0 %v4417_v19 }
 0x7e6   :  { %v3659_v56 = vpop.permute.xlu0 %3658  ;;  %v3657_v3 = vpop.permute.xlu1 %3656  ;;  %3635 = vmatprep.mubr.bf16.mxu1 %v4417_v19  ;;  %v3704_v28 = vpack.c.bf16 %v3698_v5, %v3694_v8 }
 0x7e7   :  { %v3667_v17 = vsel %vm872_vm5, %v3655_v7, %v3659_v56  ;;  %v3666_v21 = vsel %vm872_vm5, %v3653_v58, %v3657_v3 }
 0x7e8   :  { %v3699_v55 = vmul.f32 %v3681_v1, %v3667_v17  ;;  %v3695_v11 = vmul.f32 %v3681_v1, %v3666_v21 }
 0x7ea   :  { %v3663_v26 = vpop.permute.xlu0 %3662  ;;  %v3661_v30 = vpop.permute.xlu1 %3660  ;;  %v3705_v31 = vpack.c.bf16 %v3699_v55, %v3695_v11 }
 0x7eb   :  { %v3665_v27 = vsel %vm872_vm5, %v3659_v56, %v3663_v26  ;;  %v3671_v16 = vsel %vm872_vm5, %v3663_v26, %v3651_v53  ;;  %v3664_v37 = vsel %vm872_vm5, %v3657_v3, %v3661_v30  ;;  %v3670_v40 = vsel %vm872_vm5, %v3661_v30, %v3649_v4  ;;  %4363 = vmatmul.mubr.msk.bf16.vlgmr.msra.gmra.mxu0 %vm288_vm1, %v4362_v25  ;;  %v4370_v56 = vld [vmem:[%s5918_s10 + $0xc] sm:$0x3]  ;;  %v4373_v3 = vld [vmem:[%s5910_s1 + $0x7] ss:$8 sm:$0xf] }
 0x7ec   :  { %v3700_v32 = vmul.f32 %v3685_v23, %v3665_v27  ;;  %v3701_v29 = vmul.f32 %v3689_v13, %v3671_v16  ;;  %v3696_v41 = vmul.f32 %v3685_v23, %v3664_v37  ;;  %v3697_v35 = vmul.f32 %v3689_v13, %v3670_v40  ;;  %4364 = vmatmul.mubr.msk.bf16.vlgmr.msra.gmra.mxu1 %vm288_vm1, %v4362_v25 }
 0x7ed   :  { %3725 = vmatprep.subr.bf16.mxu0 %v3705_v31  ;;  %3743 = vmatprep.mubr.bf16.mxu0 %v4417_v19  ;;  %v3838_v4 = vrot.slane %v4369_v34, %v4683_v20  ;;  %v3975_v21 = vrot.slane %v4373_v3, %v4676_v14  ;;  %v3979_v25 = vrot.slane %v4373_v3, %v4666_v10 }
 0x7ee   :  { %3726 = vmatpush1.bf16.msra.mxu0 %v3704_v28  ;;  %v3800_v62 = vpop.permute.xlu0 %3799  ;;  %v3706_v33 = vpack.c.bf16 %v3700_v32, %v3696_v41  ;;  %v3798_v0 = vpop.permute.xlu1 %3797  ;;  %v3707_v59 = vpack.c.bf16 %v3701_v29, %v3697_v35  ;;  %3784 = vmatprep.mubr.bf16.mxu1 %v4417_v19  ;;  %v3983_v29 = vrot.slane %v4373_v3, %v4689_v22 }
 0x7ef   :  { %v3987_v37 = vrot.slane %v4373_v3, %v4683_v20  ;;  %v4378_v3 = vld [vmem:[%s5918_s10 + $0x10] sm:$0x3] }
 0x7f0   :  { %3766 = vmatprep.subr.bf16.mxu1 %v3707_v59 }
 0x7f1   :  { %3767 = vmatpush1.bf16.msra.mxu1 %v3706_v33 }
 0x7f2   :  { %v3804_v46 = vpop.permute.xlu0 %3803  ;;  %v3802_v38 = vpop.permute.xlu1 %3801 }
 0x7f3   :  { %v3818_v51 = vsel %vm1023_vm6, %v3800_v62, %v3804_v46  ;;  %v3817_v48 = vsel %vm1023_vm6, %v3798_v0, %v3802_v38  ;;  %4367 = vmatmul.mubr.msk.bf16.vlgmr.msra.gmra.mxu0 %vm288_vm1, %v4366_v44 }
 0x7f4   :  { %4368 = vmatmul.mubr.msk.bf16.vlgmr.msra.gmra.mxu1 %vm288_vm1, %v4366_v44  ;;  %3892 = vmatprep.mubr.bf16.mxu0 %v4417_v19  ;;  %v3847_v42 = vmul.f32 %v3826_v54, %v3818_v51  ;;  %v3843_v36 = vmul.f32 %v3826_v54, %v3817_v48 }
 0x7f5   :  { %3933 = vmatprep.mubr.bf16.mxu1 %v4417_v19 }
 0x7f6   :  { %v3808_v39 = vpop.permute.xlu0 %3807  ;;  %v3806_v50 = vpop.permute.xlu1 %3805  ;;  %v3853_v63 = vpack.c.bf16 %v3847_v42, %v3843_v36 }
 0x7f7   :  { %v3816_v47 = vsel %vm1023_vm6, %v3804_v46, %v3808_v39  ;;  %v3815_v53 = vsel %vm1023_vm6, %v3802_v38, %v3806_v50 }
 0x7f8   :  { %v3848_v45 = vmul.f32 %v3830_v52, %v3816_v47  ;;  %v3844_v57 = vmul.f32 %v3830_v52, %v3815_v53  ;;  %v4374_v52 = vld [vmem:[%s5918_s10 + $0xe] sm:$0x3]  ;;  %v4377_v47 = vld [vmem:[%s5910_s1 + $0x20] ss:$8 sm:$0xf] }
 0x7fa   :  { %v3812_v60 = vpop.permute.xlu0 %3811  ;;  %v3810_v2 = vpop.permute.xlu1 %3809  ;;  %v3854_v7 = vpack.c.bf16 %v3848_v45, %v3844_v57  ;;  %v4124_v45 = vrot.slane %v4377_v47, %v4676_v14  ;;  %v4128_v57 = vrot.slane %v4377_v47, %v4666_v10 }
 0x7fb   :  { %v3814_v61 = vsel %vm1023_vm6, %v3808_v39, %v3812_v60  ;;  %v3820_v6 = vsel %vm1023_vm6, %v3812_v60, %v3800_v62  ;;  %v3813_v15 = vsel %vm1023_vm6, %v3806_v50, %v3810_v2  ;;  %v3819_v49 = vsel %vm1023_vm6, %v3810_v2, %v3798_v0 }
 0x7fc   :  { %v3849_v18 = vmul.f32 %v3834_v43, %v3814_v61  ;;  %v3850_v58 = vmul.f32 %v3838_v4, %v3820_v6  ;;  %v3845_v12 = vmul.f32 %v3834_v43, %v3813_v15  ;;  %v3846_v24 = vmul.f32 %v3838_v4, %v3819_v49  ;;  %3874 = vmatprep.subr.bf16.mxu0 %v3854_v7 }
 0x7fd   :  { %3875 = vmatpush1.bf16.msra.mxu0 %v3853_v63 }
 0x7fe   :  { %v3949_v1 = vpop.permute.xlu0 %3948  ;;  %v3855_v5 = vpack.c.bf16 %v3849_v18, %v3845_v12  ;;  %v3947_v8 = vpop.permute.xlu1 %3946  ;;  %v3856_v17 = vpack.c.bf16 %v3850_v58, %v3846_v24  ;;  %v4132_v18 = vrot.slane %v4377_v47, %v4689_v22  ;;  %v4136_v58 = vrot.slane %v4377_v47, %v4683_v20 }
 0x800   :  { %4371 = vmatmul.mubr.msk.bf16.vlgmr.msra.gmra.mxu0 %vm288_vm1, %v4370_v56  ;;  %3915 = vmatprep.subr.bf16.mxu1 %v3856_v17 }
 0x801   :  { %3916 = vmatpush1.bf16.msra.mxu1 %v3855_v5  ;;  %4041 = vmatprep.mubr.bf16.mxu0 %v4417_v19 }
 0x802   :  { %v3953_v55 = vpop.permute.xlu0 %3952  ;;  %v3951_v23 = vpop.permute.xlu1 %3950 }
 0x803   :  { %v3967_v13 = vsel %vm1174_vm7, %v3949_v1, %v3953_v55  ;;  %v3966_v11 = vsel %vm1174_vm7, %v3947_v8, %v3951_v23 }
 0x804   :  { %4372 = vmatmul.mubr.msk.bf16.vlgmr.msra.gmra.mxu1 %vm288_vm1, %v4370_v56  ;;  %v3996_v28 = vmul.f32 %v3975_v21, %v3967_v13  ;;  %v3992_v27 = vmul.f32 %v3975_v21, %v3966_v11 }
 0x805   :  { %4082 = vmatprep.mubr.bf16.mxu1 %v4417_v19 }
 0x806   :  { %v3957_v26 = vpop.permute.xlu0 %3956  ;;  %v3955_v30 = vpop.permute.xlu1 %3954  ;;  %v4002_v35 = vpack.c.bf16 %v3996_v28, %v3992_v27 }
 0x807   :  { %v3965_v16 = vsel %vm1174_vm7, %v3953_v55, %v3957_v26  ;;  %v3964_v32 = vsel %vm1174_vm7, %v3951_v23, %v3955_v30 }
 0x808   :  { %v3997_v31 = vmul.f32 %v3979_v25, %v3965_v16  ;;  %v3993_v40 = vmul.f32 %v3979_v25, %v3964_v32 }
 0x80a   :  { %v3961_v41 = vpop.permute.xlu0 %3960  ;;  %v3959_v0 = vpop.permute.xlu1 %3958  ;;  %v4003_v59 = vpack.c.bf16 %v3997_v31, %v3993_v40 }
 0x80b   :  { %v3963_v62 = vsel %vm1174_vm7, %v3957_v26, %v3961_v41  ;;  %v3969_v33 = vsel %vm1174_vm7, %v3961_v41, %v3949_v1  ;;  %v3962_v46 = vsel %vm1174_vm7, %v3955_v30, %v3959_v0  ;;  %v3968_v54 = vsel %vm1174_vm7, %v3959_v0, %v3947_v8 }
 0x80c   :  { %v3998_v34 = vmul.f32 %v3983_v29, %v3963_v62  ;;  %v3999_v44 = vmul.f32 %v3987_v37, %v3969_v33  ;;  %v3994_v38 = vmul.f32 %v3983_v29, %v3962_v46  ;;  %v3995_v51 = vmul.f32 %v3987_v37, %v3968_v54  ;;  %4023 = vmatprep.subr.bf16.mxu0 %v4003_v59 }
 0x80d   :  { %4024 = vmatpush1.bf16.msra.mxu0 %v4002_v35 }
 0x80e   :  { %v4098_v48 = vpop.permute.xlu0 %4097  ;;  %v4004_v39 = vpack.c.bf16 %v3998_v34, %v3994_v38  ;;  %v4096_v42 = vpop.permute.xlu1 %4095  ;;  %v4005_v36 = vpack.c.bf16 %v3999_v44, %v3995_v51 }
 0x810   :  { %4375 = vmatmul.mubr.msk.bf16.vlgmr.msra.gmra.mxu0 %vm288_vm1, %v4374_v52  ;;  %4064 = vmatprep.subr.bf16.mxu1 %v4005_v36 }
 0x811   :  { %4065 = vmatpush1.bf16.msra.mxu1 %v4004_v39  ;;  %4190 = vmatprep.mubr.bf16.mxu0 %v4417_v19 }
 0x812   :  { %v4102_v50 = vpop.permute.xlu0 %4101  ;;  %v4100_v53 = vpop.permute.xlu1 %4099 }
 0x813   :  { %v4116_v43 = vsel %vm1325_vm8, %v4098_v48, %v4102_v50  ;;  %v4115_v4 = vsel %vm1325_vm8, %v4096_v42, %v4100_v53 }
 0x814   :  { %4376 = vmatmul.mubr.msk.bf16.vlgmr.msra.gmra.mxu1 %vm288_vm1, %v4374_v52  ;;  %v4145_v63 = vmul.f32 %v4124_v45, %v4116_v43  ;;  %v4141_v61 = vmul.f32 %v4124_v45, %v4115_v4 }
 0x815   :  { %4231 = vmatprep.mubr.bf16.mxu1 %v4417_v19 }
 0x816   :  { %v4106_v60 = vpop.permute.xlu0 %4105  ;;  %v4104_v14 = vpop.permute.xlu1 %4103  ;;  %v4151_v49 = vpack.c.bf16 %v4145_v63, %v4141_v61 }
 0x817   :  { %v4114_v6 = vsel %vm1325_vm8, %v4102_v50, %v4106_v60  ;;  %v4113_v7 = vsel %vm1325_vm8, %v4100_v53, %v4104_v14 }
 0x818   :  { %v4146_v2 = vmul.f32 %v4128_v57, %v4114_v6  ;;  %v4142_v10 = vmul.f32 %v4128_v57, %v4113_v7 }
 0x81a   :  { %v4110_v15 = vpop.permute.xlu0 %4109  ;;  %v4108_v24 = vpop.permute.xlu1 %4107  ;;  %v4152_v1 = vpack.c.bf16 %v4146_v2, %v4142_v10 }
 0x81b   :  { %v4112_v19 = vsel %vm1325_vm8, %v4106_v60, %v4110_v15  ;;  %v4118_v12 = vsel %vm1325_vm8, %v4110_v15, %v4098_v48  ;;  %v4111_v8 = vsel %vm1325_vm8, %v4104_v14, %v4108_v24  ;;  %v4117_v22 = vsel %vm1325_vm8, %v4108_v24, %v4096_v42 }
 0x81c   :  { %v4147_v56 = vmul.f32 %v4132_v18, %v4112_v19  ;;  %v4148_v5 = vmul.f32 %v4136_v58, %v4118_v12  ;;  %v4143_v20 = vmul.f32 %v4132_v18, %v4111_v8  ;;  %v4144_v17 = vmul.f32 %v4136_v58, %v4117_v22  ;;  %4172 = vmatprep.subr.bf16.mxu0 %v4152_v1 }
 0x81d   :  { %4173 = vmatpush1.bf16.msra.mxu0 %v4151_v49 }
 0x81e   :  { %v4153_v55 = vpack.c.bf16 %v4147_v56, %v4143_v20  ;;  %v4154_v21 = vpack.c.bf16 %v4148_v5, %v4144_v17 }
 0x820   :  { %4379 = vmatmul.mubr.msk.bf16.vlgmr.msra.gmra.mxu0 %vm288_vm1, %v4378_v3  ;;  %4213 = vmatprep.subr.bf16.mxu1 %v4154_v21 }
 0x821   :  { %4214 = vmatpush1.bf16.msra.mxu1 %v4153_v55 }
 0x824   :  { %4380 = vmatmul.mubr.msk.bf16.vlgmr.msra.gmra.mxu1 %vm288_vm1, %v4378_v3 }
 0x873   :  { %v3122_v23 = vpop.f32.mrf.mxu0 }
 0x874   :  { %v3163_v13 = vpop.f32.mrf.mxu1 }
 0x875   :  { %v3124_v9 = vpop.f32.mrf.mxu0 }
 0x876   :  { %v3165_v11 = vpop.f32.mrf.mxu1 }
 0x877   :  { %v3126_v25 = vpop.f32.mrf.mxu0 }
 0x878   :  { %v3167_v26 = vpop.f32.mrf.mxu1 }
 0x879   :  { %v3127_v28 = vpop.f32.mrf.mxu0 }
 0x87a   :  { %v3168_v27 = vpop.f32.mrf.mxu1 }
 0x883   :  { %v3207_v16 = vpop.f32.mrf.mxu0 }
 0x884   :  { %v3208_v30 = vadd.f32 %v3207_v16, %v3122_v23  ;;  %v3248_v31 = vpop.f32.mrf.mxu1 }
 0x885   :  { %v3249_v32 = vadd.f32 %v3248_v31, %v3163_v13  ;;  %v3209_v29 = vpop.f32.mrf.mxu0 }
 0x886   :  { %v3210_v37 = vadd.f32 %v3209_v29, %v3124_v9  ;;  %v3250_v40 = vpop.f32.mrf.mxu1 }
 0x887   :  { %v3251_v41 = vadd.f32 %v3250_v40, %v3165_v11  ;;  %v3211_v35 = vpop.f32.mrf.mxu0 }
 0x888   :  { %v3252_v62 = vpop.f32.mrf.mxu1 }
 0x889   :  { %v3212_v33 = vpop.f32.mrf.mxu0 }
 0x88a   :  { %v3253_v0 = vpop.f32.mrf.mxu1 }
 0x893   :  { %v3352_v59 = vpop.f32.mrf.mxu0 }
 0x894   :  { %v3400_v34 = vadd.f32 %v3352_v59, %v3208_v30  ;;  %v3393_v44 = vpop.f32.mrf.mxu1 }
 0x895   :  { %v3402_v46 = vadd.f32 %v3393_v44, %v3249_v32  ;;  %v3354_v54 = vpop.f32.mrf.mxu0 }
 0x896   :  { %v3401_v38 = vadd.f32 %v3354_v54, %v3210_v37  ;;  %v3395_v51 = vpop.f32.mrf.mxu1 }
 0x897   :  { %v3403_v48 = vadd.f32 %v3395_v51, %v3251_v41  ;;  %v3356_v52 = vpop.f32.mrf.mxu0 }
 0x898   :  { %v3397_v39 = vpop.f32.mrf.mxu1 }
 0x899   :  { %v3357_v42 = vpop.f32.mrf.mxu0 }
 0x89a   :  { %v3398_v36 = vpop.f32.mrf.mxu1 }
 0x8a3   :  { %v3501_v47 = vpop.f32.mrf.mxu0 }
 0x8a4   :  { %v3542_v50 = vpop.f32.mrf.mxu1  ;;  %v3549_v25 = vadd.f32 %v3501_v47, %v3400_v34 }
 0x8a5   :  { %v3503_v45 = vpop.f32.mrf.mxu0  ;;  %v3551_v32 = vadd.f32 %v3542_v50, %v3402_v46 }
 0x8a6   :  { %v3544_v53 = vpop.f32.mrf.mxu1  ;;  %v3550_v16 = vadd.f32 %v3503_v45, %v3401_v38 }
 0x8a7   :  { %v3505_v43 = vpop.f32.mrf.mxu0  ;;  %v3552_v40 = vadd.f32 %v3544_v53, %v3403_v48 }
 0x8a8   :  { %v3546_v4 = vpop.f32.mrf.mxu1 }
 0x8a9   :  { %v3506_v57 = vpop.f32.mrf.mxu0 }
 0x8aa   :  { %v3547_v60 = vpop.f32.mrf.mxu1 }
 0x8ab   :  { %v3596_v63 = vpop.f32.mrf.mxu0 }
 0x8ac   :  { %v3637_v61 = vpop.f32.mrf.mxu1  ;;  %v3644_v30 = vadd.f32 %v3596_v63, %v3549_v25 }
 0x8ad   :  { %v3598_v6 = vpop.f32.mrf.mxu0  ;;  %v3646_v41 = vadd.f32 %v3637_v61, %v3551_v32 }
 0x8ae   :  { %v3639_v14 = vpop.f32.mrf.mxu1  ;;  %v3645_v29 = vadd.f32 %v3598_v6, %v3550_v16 }
 0x8af   :  { %v3600_v2 = vpop.f32.mrf.mxu0  ;;  %v3647_v33 = vadd.f32 %v3639_v14, %v3552_v40 }
 0x8b0   :  { %v3641_v7 = vpop.f32.mrf.mxu1 }
 0x8b1   :  { %v3601_v18 = vpop.f32.mrf.mxu0 }
 0x8b2   :  { %v3642_v58 = vpop.f32.mrf.mxu1 }
 0x8b3   :  { %v3745_v10 = vpop.f32.mrf.mxu0 }
 0x8b4   :  { %v3786_v15 = vpop.f32.mrf.mxu1  ;;  %v3793_v37 = vadd.f32 %v3745_v10, %v3644_v30 }
 0x8b5   :  { %v3747_v49 = vpop.f32.mrf.mxu0  ;;  %v3795_v0 = vadd.f32 %v3786_v15, %v3646_v41 }
 0x8b6   :  { %v3788_v19 = vpop.f32.mrf.mxu1  ;;  %v3794_v35 = vadd.f32 %v3747_v49, %v3645_v29 }
 0x8b7   :  { %v3749_v12 = vpop.f32.mrf.mxu0  ;;  %v3796_v51 = vadd.f32 %v3788_v19, %v3647_v33 }
 0x8b8   :  { %v3790_v24 = vpop.f32.mrf.mxu1 }
 0x8b9   :  { %v3750_v1 = vpop.f32.mrf.mxu0 }
 0x8ba   :  { %v3791_v56 = vpop.f32.mrf.mxu1 }
 0x8c0   :  { %v3894_v5 = vpop.f32.mrf.mxu0 }
 0x8c1   :  { %v3942_v62 = vadd.f32 %v3894_v5, %v3793_v37 }
 0x8c2   :  { %v3896_v8 = vpop.f32.mrf.mxu0 }
 0x8c3   :  { %v3943_v59 = vadd.f32 %v3896_v8, %v3794_v35 }
 0x8c4   :  { %v3935_v22 = vpop.f32.mrf.mxu1  ;;  %v3898_v20 = vpop.f32.mrf.mxu0 }
 0x8c5   :  { %v3944_v34 = vadd.f32 %v3935_v22, %v3795_v0 }
 0x8c6   :  { %v3937_v17 = vpop.f32.mrf.mxu1  ;;  %v3899_v3 = vpop.f32.mrf.mxu0 }
 0x8c7   :  { %v3945_v38 = vadd.f32 %v3937_v17, %v3796_v51 }
 0x8c8   :  { %v3939_v55 = vpop.f32.mrf.mxu1 }
 0x8ca   :  { %v3940_v21 = vpop.f32.mrf.mxu1 }
 0x8d0   :  { %v4043_v23 = vpop.f32.mrf.mxu0 }
 0x8d1   :  { %v4091_v44 = vadd.f32 %v4043_v23, %v3942_v62 }
 0x8d2   :  { %v4045_v13 = vpop.f32.mrf.mxu0 }
 0x8d3   :  { %v4092_v52 = vadd.f32 %v4045_v13, %v3943_v59 }
 0x8d4   :  { %v4084_v9 = vpop.f32.mrf.mxu1  ;;  %v4047_v11 = vpop.f32.mrf.mxu0 }
 0x8d5   :  { %v4093_v36 = vadd.f32 %v4084_v9, %v3944_v34 }
 0x8d6   :  { %v4086_v26 = vpop.f32.mrf.mxu1  ;;  %v4048_v28 = vpop.f32.mrf.mxu0 }
 0x8d7   :  { %v4094_v48 = vadd.f32 %v4086_v26, %v3945_v38 }
 0x8d8   :  { %v4088_v27 = vpop.f32.mrf.mxu1 }
 0x8da   :  { %v4089_v31 = vpop.f32.mrf.mxu1 }
 0x8e0   :  { %v4192_v54 = vpop.f32.mrf.mxu0 }
 0x8e1   :  { %v4240_v39 = vadd.f32 %v4192_v54, %v4091_v44 }
 0x8e2   :  { %v4194_v42 = vpop.f32.mrf.mxu0 }
 0x8e3   :  { %v4248_v47 = vrot.slane %v4240_v39, 4  ;;  %v4241_v46 = vadd.f32 %v4194_v42, %v4092_v52 }
 0x8e4   :  { %v4233_v50 = vpop.f32.mrf.mxu1  ;;  %v4196_v45 = vpop.f32.mrf.mxu0 }
 0x8e5   :  { %4256 = vst [vmem:[#allocation2 + $0x8] sm:$0xf0] %v4248_v47  ;;  %v4249_v53 = vrot.slane %v4241_v46, 4  ;;  %v4242_v43 = vadd.f32 %v4233_v50, %v4093_v36 }
 0x8e6   :  { %v4235_v4 = vpop.f32.mrf.mxu1  ;;  %v4197_v57 = vpop.f32.mrf.mxu0 }
 0x8e7   :  { %4257 = vst [vmem:[#allocation2 + $0x20] sm:$0xf0] %v4249_v53  ;;  %v4250_v60 = vrot.slane %v4242_v43, 4  ;;  %v4243_v63 = vadd.f32 %v4235_v4, %v4094_v48 }
 0x8e8   :  { %v4237_v61 = vpop.f32.mrf.mxu1 }
 0x8e9   :  { %4258 = vst [vmem:[#allocation2 + $0x28] sm:$0xf0] %v4250_v60  ;;  %v4251_v6 = vrot.slane %v4243_v63, 4 }
 0x8ea   :  { %v4238_v14 = vpop.f32.mrf.mxu1 }
 0x8eb   :  { %4259 = vst [vmem:[#allocation2 + $0x38] sm:$0xf0] %v4251_v6 }
 0x8ec   :  { %v4262_v2 = vld [vmem:[#allocation2 + $0x8] sm:$0xff] }
 0x8ed   :  { %4266 = vst [vmem:[%s5912_s11 + $0x10] sm:$0xff] %v4262_v2 }
 0x8ee   :  { %v4263_v7 = vld [vmem:[#allocation2 + $0x20] sm:$0xff] }
 0x8ef   :  { %4267 = vst [vmem:[%s5912_s11 + $0x18] sm:$0xff] %v4263_v7 }
 0x8f0   :  { %v4270_v18 = vld [vmem:[#allocation2 + $0x28] sm:$0xff] }
 0x8f1   :  { %4383 = vst [vmem:[%s5912_s11 + $0x30] sm:$0xff] %v4270_v18 }
 0x8f2   :  { %v4271_v58 = vld [vmem:[#allocation2 + $0x38] sm:$0xff] }
 0x8f3   :  { %4384 = vst [vmem:[%s5912_s11 + $0x38] sm:$0xff] %v4271_v58 }

</bundles_post_ra>
